<compile_context>
chip_gen: v7x
topology: tpu7x:2x2x1
jax: 0.10.0
libtpu: 0.0.40
codegen_flags: <defaults>
</compile_context>

<pallas_src>
import functools

import jax
import jax.numpy as jnp
from jax.experimental import pallas as pl
from jax.experimental.pallas import tpu as pltpu


_VMEM_BUDGET = 40 << 20   # per-step working-set target; fits v7x's 64 MiB VMEM


def _vmem_bytes(bt, H, W, C, io_itemsize):
    """Approximate per-step VMEM footprint for a batch block of size bt."""
    io = 2 * 2 * bt * H * W * C * io_itemsize                   # x + out blocks, double-buffered
    wts = 2 * 2 * (9 * C * 2 * C + C * C + 9 * C * C) + 2 * 4 * C  # bf16 weights (2-buf) + f32 bias
    pad = bt * (H + 2) * (W + 2) * C * 2                        # bf16 padded scratch
    patch = bt * H * W * 9 * C * 2                              # bf16 im2col patch scratch
    return io + wts + pad + patch


def _pick_bt(B, H, W, C, io_itemsize):
    """Largest batch block that fits the VMEM budget, preferring >=4 grid steps
    (>=2 pipelined steps per TensorCore when v7x megacore shards the batch axis),
    then >=2 steps, then whatever divides B."""
    divisors = [d for d in range(B, 0, -1) if B % d == 0]
    for min_steps in (4, 2, 1):
        for bt in divisors:
            if B // bt >= min_steps and _vmem_bytes(bt, H, W, C, io_itemsize) <= _VMEM_BUDGET:
                return bt
    return 1


def attention_branch_kernel(x_ref, w13_ref, w2_ref, b2_ref, w4_ref,
                            o_ref, xpad, pmat, *, Bt, H, W, C):
    f32 = jnp.float32
    bf16 = jnp.bfloat16
    N = Bt * H * W

    # SAME padding: one dense zero of the whole padded scratch, then overwrite
    # the interior with the input block.
    xpad[...] = jnp.zeros((Bt, H + 2, W + 2, C), bf16)
    xpad[:, 1:H + 1, 1:W + 1, :] = x_ref[...].astype(bf16)

    def build_patches():
        # im2col: write each (dy,dx)-shifted slab into its lane range of the
        # shared (N, 9C) bf16 patch scratch (reused for both 3x3-conv inputs).
        xp = xpad[...]
        k = 0
        for dy in range(3):
            for dx in range(3):
                pmat[:, k * C:(k + 1) * C] = (
                    xp[:, dy:dy + H, dx:dx + W, :].reshape(N, C))
                k += 1

    build_patches()

    # fused k1 || k3: single bf16 MXU pass against the concatenated (9C, 2C) weight
    r = jnp.dot(pmat[...], w13_ref[...], preferred_element_type=f32)   # (N, 2C) f32
    att = r[:, :C]                                                      # k1(x)
    y = r[:, C:]                                                        # k3(x)

    # attention = sigmoid(k2(lrelu(k1(x))))   -- elementwise epilogue in f32
    att = jnp.where(att >= 0, att, 0.2 * att)                           # LeakyReLU(0.2)
    att = jnp.dot(att.astype(bf16), w2_ref[...],
                  preferred_element_type=f32) + b2_ref[...]             # 1x1 conv + bias
    att = jax.nn.sigmoid(att)

    out = (y * att).reshape(Bt, H, W, C)

    # out = k4(y * att): reuse the SAME padded scratch (its borders are still
    # zero) and the SAME patch scratch.
    xpad[:, 1:H + 1, 1:W + 1, :] = out.astype(bf16)
    build_patches()
    o = jnp.dot(pmat[...], w4_ref[...], preferred_element_type=f32)

    o_ref[...] = o.reshape(Bt, H, W, C).astype(o_ref.dtype)


def attention_branch(x, w1, w2, b2, w3, w4):
    """x: (B, H, W, C) NHWC; w1/w3/w4: (3,3,C,C) HWIO; w2: (C,C); b2: (1,C)."""
    B, H, W, C = x.shape
    bf16 = jnp.bfloat16
    itemsize = jnp.dtype(x.dtype).itemsize
    bt = _pick_bt(B, H, W, C, itemsize)

    # host-side weight prep (done once in HBM): im2col reshape, k1||k3 fusion,
    # bf16 casts so every MXU operand is native bf16.
    w13 = jnp.concatenate(
        [w1.reshape(9 * C, C), w3.reshape(9 * C, C)], axis=1).astype(bf16)   # (9C, 2C)
    w2b = w2.astype(bf16)                                                    # (C, C)
    b2f = b2.reshape(1, C).astype(jnp.float32)                               # (1, C)
    w4r = w4.reshape(9 * C, C).astype(bf16)                                  # (9C, C)

    need = _vmem_bytes(bt, H, W, C, itemsize)
    vmem_limit = int(min(max(2 * need, 16 << 20), 56 << 20))

    kernel = functools.partial(attention_branch_kernel, Bt=bt, H=H, W=W, C=C)
    return pl.pallas_call(
        kernel,
        out_shape=jax.ShapeDtypeStruct((B, H, W, C), x.dtype),
        grid=(B // bt,),
        in_specs=[
            pl.BlockSpec((bt, H, W, C), lambda b: (b, 0, 0, 0)),
            pl.BlockSpec((9 * C, 2 * C), lambda b: (0, 0)),
            pl.BlockSpec((C, C), lambda b: (0, 0)),
            pl.BlockSpec((1, C), lambda b: (0, 0)),
            pl.BlockSpec((9 * C, C), lambda b: (0, 0)),
        ],
        out_specs=pl.BlockSpec((bt, H, W, C), lambda b: (b, 0, 0, 0)),
        scratch_shapes=[
            pltpu.VMEM((bt, H + 2, W + 2, C), bf16),       # padded x / (y*att), shared
            pltpu.VMEM((bt * H * W, 9 * C), bf16),         # shared im2col patch matrix
        ],
        compiler_params=pltpu.CompilerParams(
            dimension_semantics=("parallel",),
            vmem_limit_bytes=vmem_limit),
    )(x, w13, w2b, b2f, w4r)


def reference_forward(x, w1, w2, b2, w3, w4):
    """Pure-JAX reference (matches the PyTorch forward, in NHWC)."""
    C = x.shape[-1]
    dn = ('NHWC', 'HWIO', 'NHWC')
    conv = lambda a, w: jax.lax.conv_general_dilated(
        a, w, window_strides=(1, 1), padding='SAME', dimension_numbers=dn,
        precision=jax.lax.Precision.HIGHEST)
    att = conv(x, w1)
    att = jnp.where(att >= 0, att, 0.2 * att)
    att = conv(att, w2.reshape(1, 1, C, C)) + b2.reshape(1, 1, 1, C)
    att = jax.nn.sigmoid(att)
    y = conv(x, w3)
    return conv(y * att, w4)


if __name__ == "__main__":
    B, H, W, C = 2, 16, 16, 4  # small synthetic shapes

    key = jax.random.PRNGKey(0)
    kx, k1, k2, k2b, k3, k4 = jax.random.split(key, 6)

    x = jax.random.normal(kx, (B, H, W, C), dtype=jnp.float32)
    w1 = 0.1 * jax.random.normal(k1, (3, 3, C, C), dtype=jnp.float32)
    w2 = 0.1 * jax.random.normal(k2, (C, C), dtype=jnp.float32)
    b2 = 0.1 * jax.random.normal(k2b, (1, C), dtype=jnp.float32)
    w3 = 0.1 * jax.random.normal(k3, (3, 3, C, C), dtype=jnp.float32)
    w4 = 0.1 * jax.random.normal(k4, (3, 3, C, C), dtype=jnp.float32)

    out = attention_branch(x, w1, w2, b2, w3, w4)
    out = jax.block_until_ready(out)

    ref = jax.block_until_ready(reference_forward(x, w1, w2, b2, w3, w4))
    assert out.shape == (B, H, W, C)
    assert jnp.allclose(out, ref, rtol=2e-2, atol=2e-2), (
        float(jnp.max(jnp.abs(out - ref))))

    print("KERNEL_OK")
</pallas_src>

<mosaic_0001>
module attributes {stable_mosaic.version = 11 : i64} {
  func.func @attention_branch_kernel(%arg0: i32, %arg1: memref<1x16x16x4xf32, #tpu.memory_space<vmem>>, %arg2: memref<36x8xbf16, #tpu.memory_space<vmem>>, %arg3: memref<4x4xbf16, #tpu.memory_space<vmem>>, %arg4: memref<1x4xf32, #tpu.memory_space<vmem>>, %arg5: memref<36x4xbf16, #tpu.memory_space<vmem>>, %arg6: memref<1x16x16x4xf32, #tpu.memory_space<vmem>>, %arg7: memref<1x18x18x4xbf16, #tpu.memory_space<vmem>>, %arg8: memref<256x36xbf16, #tpu.memory_space<vmem>>) attributes {dimension_semantics = [#tpu.dimension_semantics<parallel>], iteration_bounds = array<i64: 2>, scalar_prefetch = 0 : i64, scratch_operands = 2 : i64, tpu.core_type = #tpu.core_type<tc>, window_params = [{transform_indices = @transform_0, window_bounds = array<i64: 1, 16, 16, 4>}, {pipeline_mode = #tpu.pipeline_mode<synchronous>, transform_indices = @transform_1, window_bounds = array<i64: 36, 8>}, {pipeline_mode = #tpu.pipeline_mode<synchronous>, transform_indices = @transform_2, window_bounds = array<i64: 4, 4>}, {pipeline_mode = #tpu.pipeline_mode<synchronous>, transform_indices = @transform_3, window_bounds = array<i64: 1, 4>}, {pipeline_mode = #tpu.pipeline_mode<synchronous>, transform_indices = @transform_4, window_bounds = array<i64: 36, 4>}, {transform_indices = @transform_5, window_bounds = array<i64: 1, 16, 16, 4>}]} {
    %cst = arith.constant 0.000000e+00 : bf16
    %0 = vector.broadcast %cst : bf16 to vector<1x18x18x4xbf16>
    %c0 = arith.constant 0 : index
    %c0_0 = arith.constant 0 : index
    %c0_1 = arith.constant 0 : index
    %c0_2 = arith.constant 0 : index
    %1 = vector.load %arg7[%c0, %c0_0, %c0_1, %c0_2] : memref<1x18x18x4xbf16, #tpu.memory_space<vmem>>, vector<1x18x18x4xbf16>
    tpu.vector_store %arg7[%c0, %c0_0, %c0_1, %c0_2], %0 {strides = array<i32>} : memref<1x18x18x4xbf16, #tpu.memory_space<vmem>>, vector<1x18x18x4xbf16>,
    %c0_3 = arith.constant 0 : index
    %c0_4 = arith.constant 0 : index
    %c0_5 = arith.constant 0 : index
    %c0_6 = arith.constant 0 : index
    %2 = vector.load %arg1[%c0_3, %c0_4, %c0_5, %c0_6] : memref<1x16x16x4xf32, #tpu.memory_space<vmem>>, vector<1x16x16x4xf32>
    %3 = arith.truncf %2 : vector<1x16x16x4xf32> to vector<1x16x16x4xbf16>
    %c0_7 = arith.constant 0 : index
    %c1 = arith.constant 1 : index
    %c1_8 = arith.constant 1 : index
    %c0_9 = arith.constant 0 : index
    %4 = vector.load %arg7[%c0_7, %c1, %c1_8, %c0_9] : memref<1x18x18x4xbf16, #tpu.memory_space<vmem>>, vector<1x16x16x4xbf16>
    tpu.vector_store %arg7[%c0_7, %c1, %c1_8, %c0_9], %3 {strides = array<i32>} : memref<1x18x18x4xbf16, #tpu.memory_space<vmem>>, vector<1x16x16x4xbf16>,
    %c0_10 = arith.constant 0 : index
    %c0_11 = arith.constant 0 : index
    %c0_12 = arith.constant 0 : index
    %c0_13 = arith.constant 0 : index
    %5 = vector.load %arg7[%c0_10, %c0_11, %c0_12, %c0_13] : memref<1x18x18x4xbf16, #tpu.memory_space<vmem>>, vector<1x18x18x4xbf16>
    %6 = vector.extract_strided_slice %5 {offsets = [0, 0, 0, 0], sizes = [1, 16, 16, 4], strides = [1, 1, 1, 1]} : vector<1x18x18x4xbf16> to vector<1x16x16x4xbf16>
    %7 = vector.shape_cast %6 : vector<1x16x16x4xbf16> to vector<256x4xbf16>
    %c0_14 = arith.constant 0 : index
    %c0_15 = arith.constant 0 : index
    %8 = vector.load %arg8[%c0_14, %c0_15] : memref<256x36xbf16, #tpu.memory_space<vmem>>, vector<256x4xbf16>
    tpu.vector_store %arg8[%c0_14, %c0_15], %7 {strides = array<i32>} : memref<256x36xbf16, #tpu.memory_space<vmem>>, vector<256x4xbf16>,
    %9 = vector.extract_strided_slice %5 {offsets = [0, 0, 1, 0], sizes = [1, 16, 16, 4], strides = [1, 1, 1, 1]} : vector<1x18x18x4xbf16> to vector<1x16x16x4xbf16>
    %10 = vector.shape_cast %9 : vector<1x16x16x4xbf16> to vector<256x4xbf16>
    %c0_16 = arith.constant 0 : index
    %c4 = arith.constant 4 : index
    %11 = vector.load %arg8[%c0_16, %c4] : memref<256x36xbf16, #tpu.memory_space<vmem>>, vector<256x4xbf16>
    tpu.vector_store %arg8[%c0_16, %c4], %10 {strides = array<i32>} : memref<256x36xbf16, #tpu.memory_space<vmem>>, vector<256x4xbf16>,
    %12 = vector.extract_strided_slice %5 {offsets = [0, 0, 2, 0], sizes = [1, 16, 16, 4], strides = [1, 1, 1, 1]} : vector<1x18x18x4xbf16> to vector<1x16x16x4xbf16>
    %13 = vector.shape_cast %12 : vector<1x16x16x4xbf16> to vector<256x4xbf16>
    %c0_17 = arith.constant 0 : index
    %c8 = arith.constant 8 : index
    %14 = vector.load %arg8[%c0_17, %c8] : memref<256x36xbf16, #tpu.memory_space<vmem>>, vector<256x4xbf16>
    tpu.vector_store %arg8[%c0_17, %c8], %13 {strides = array<i32>} : memref<256x36xbf16, #tpu.memory_space<vmem>>, vector<256x4xbf16>,
    %15 = vector.extract_strided_slice %5 {offsets = [0, 1, 0, 0], sizes = [1, 16, 16, 4], strides = [1, 1, 1, 1]} : vector<1x18x18x4xbf16> to vector<1x16x16x4xbf16>
    %16 = vector.shape_cast %15 : vector<1x16x16x4xbf16> to vector<256x4xbf16>
    %c0_18 = arith.constant 0 : index
    %c12 = arith.constant 12 : index
    %17 = vector.load %arg8[%c0_18, %c12] : memref<256x36xbf16, #tpu.memory_space<vmem>>, vector<256x4xbf16>
    tpu.vector_store %arg8[%c0_18, %c12], %16 {strides = array<i32>} : memref<256x36xbf16, #tpu.memory_space<vmem>>, vector<256x4xbf16>,
    %18 = vector.extract_strided_slice %5 {offsets = [0, 1, 1, 0], sizes = [1, 16, 16, 4], strides = [1, 1, 1, 1]} : vector<1x18x18x4xbf16> to vector<1x16x16x4xbf16>
    %19 = vector.shape_cast %18 : vector<1x16x16x4xbf16> to vector<256x4xbf16>
    %c0_19 = arith.constant 0 : index
    %c16 = arith.constant 16 : index
    %20 = vector.load %arg8[%c0_19, %c16] : memref<256x36xbf16, #tpu.memory_space<vmem>>, vector<256x4xbf16>
    tpu.vector_store %arg8[%c0_19, %c16], %19 {strides = array<i32>} : memref<256x36xbf16, #tpu.memory_space<vmem>>, vector<256x4xbf16>,
    %21 = vector.extract_strided_slice %5 {offsets = [0, 1, 2, 0], sizes = [1, 16, 16, 4], strides = [1, 1, 1, 1]} : vector<1x18x18x4xbf16> to vector<1x16x16x4xbf16>
    %22 = vector.shape_cast %21 : vector<1x16x16x4xbf16> to vector<256x4xbf16>
    %c0_20 = arith.constant 0 : index
    %c20 = arith.constant 20 : index
    %23 = vector.load %arg8[%c0_20, %c20] : memref<256x36xbf16, #tpu.memory_space<vmem>>, vector<256x4xbf16>
    tpu.vector_store %arg8[%c0_20, %c20], %22 {strides = array<i32>} : memref<256x36xbf16, #tpu.memory_space<vmem>>, vector<256x4xbf16>,
    %24 = vector.extract_strided_slice %5 {offsets = [0, 2, 0, 0], sizes = [1, 16, 16, 4], strides = [1, 1, 1, 1]} : vector<1x18x18x4xbf16> to vector<1x16x16x4xbf16>
    %25 = vector.shape_cast %24 : vector<1x16x16x4xbf16> to vector<256x4xbf16>
    %c0_21 = arith.constant 0 : index
    %c24 = arith.constant 24 : index
    %26 = vector.load %arg8[%c0_21, %c24] : memref<256x36xbf16, #tpu.memory_space<vmem>>, vector<256x4xbf16>
    tpu.vector_store %arg8[%c0_21, %c24], %25 {strides = array<i32>} : memref<256x36xbf16, #tpu.memory_space<vmem>>, vector<256x4xbf16>,
    %27 = vector.extract_strided_slice %5 {offsets = [0, 2, 1, 0], sizes = [1, 16, 16, 4], strides = [1, 1, 1, 1]} : vector<1x18x18x4xbf16> to vector<1x16x16x4xbf16>
    %28 = vector.shape_cast %27 : vector<1x16x16x4xbf16> to vector<256x4xbf16>
    %c0_22 = arith.constant 0 : index
    %c28 = arith.constant 28 : index
    %29 = vector.load %arg8[%c0_22, %c28] : memref<256x36xbf16, #tpu.memory_space<vmem>>, vector<256x4xbf16>
    tpu.vector_store %arg8[%c0_22, %c28], %28 {strides = array<i32>} : memref<256x36xbf16, #tpu.memory_space<vmem>>, vector<256x4xbf16>,
    %30 = vector.extract_strided_slice %5 {offsets = [0, 2, 2, 0], sizes = [1, 16, 16, 4], strides = [1, 1, 1, 1]} : vector<1x18x18x4xbf16> to vector<1x16x16x4xbf16>
    %31 = vector.shape_cast %30 : vector<1x16x16x4xbf16> to vector<256x4xbf16>
    %c0_23 = arith.constant 0 : index
    %c32 = arith.constant 32 : index
    %32 = vector.load %arg8[%c0_23, %c32] : memref<256x36xbf16, #tpu.memory_space<vmem>>, vector<256x4xbf16>
    tpu.vector_store %arg8[%c0_23, %c32], %31 {strides = array<i32>} : memref<256x36xbf16, #tpu.memory_space<vmem>>, vector<256x4xbf16>,
    %c0_24 = arith.constant 0 : index
    %c0_25 = arith.constant 0 : index
    %33 = vector.load %arg8[%c0_24, %c0_25] : memref<256x36xbf16, #tpu.memory_space<vmem>>, vector<256x36xbf16>
    %c0_26 = arith.constant 0 : index
    %c0_27 = arith.constant 0 : index
    %34 = vector.load %arg2[%c0_26, %c0_27] : memref<36x8xbf16, #tpu.memory_space<vmem>>, vector<36x8xbf16>
    %cst_28 = arith.constant dense<0.000000e+00> : vector<256x8xf32>
    %35 = tpu.matmul %33, %34, %cst_28 {dimension_numbers = #tpu.dot_dimension_numbers<[1], [0], [0], [1], [0, 0, 1, 1], [], []>} : vector<256x36xbf16>, vector<36x8xbf16>, vector<256x8xf32> -> vector<256x8xf32>
    %36 = vector.extract_strided_slice %35 {offsets = [0, 0], sizes = [256, 4], strides = [1, 1]} : vector<256x8xf32> to vector<256x4xf32>
    %37 = vector.extract_strided_slice %35 {offsets = [0, 4], sizes = [256, 4], strides = [1, 1]} : vector<256x8xf32> to vector<256x4xf32>
    %cst_29 = arith.constant 0.000000e+00 : f32
    %38 = vector.broadcast %cst_29 : f32 to vector<256x4xf32>
    %39 = arith.cmpf oge, %36, %38 : vector<256x4xf32>
    %cst_30 = arith.constant 2.000000e-01 : f32
    %40 = vector.broadcast %cst_30 : f32 to vector<256x4xf32>
    %41 = arith.mulf %40, %36 : vector<256x4xf32>
    %42 = arith.select %39, %36, %41 : vector<256x4xi1>, vector<256x4xf32>
    %43 = arith.truncf %42 : vector<256x4xf32> to vector<256x4xbf16>
    %c0_31 = arith.constant 0 : index
    %c0_32 = arith.constant 0 : index
    %44 = vector.load %arg3[%c0_31, %c0_32] : memref<4x4xbf16, #tpu.memory_space<vmem>>, vector<4x4xbf16>
    %cst_33 = arith.constant dense<0.000000e+00> : vector<256x4xf32>
    %45 = tpu.matmul %43, %44, %cst_33 {dimension_numbers = #tpu.dot_dimension_numbers<[1], [0], [0], [1], [0, 0, 1, 1], [], []>} : vector<256x4xbf16>, vector<4x4xbf16>, vector<256x4xf32> -> vector<256x4xf32>
    %c0_34 = arith.constant 0 : index
    %c0_35 = arith.constant 0 : index
    %46 = vector.load %arg4[%c0_34, %c0_35] : memref<1x4xf32, #tpu.memory_space<vmem>>, vector<1x4xf32>
    %47 = vector.broadcast %46 : vector<1x4xf32> to vector<256x4xf32>
    %48 = arith.addf %45, %47 : vector<256x4xf32>
    %49 = arith.negf %48 : vector<256x4xf32>
    %50 = math.exp %49 : vector<256x4xf32>
    %cst_36 = arith.constant 1.000000e+00 : f32
    %51 = vector.broadcast %cst_36 : f32 to vector<256x4xf32>
    %52 = arith.addf %51, %50 : vector<256x4xf32>
    %53 = arith.divf %51, %52 : vector<256x4xf32>
    %54 = arith.mulf %37, %53 : vector<256x4xf32>
    %55 = vector.shape_cast %54 : vector<256x4xf32> to vector<1x16x16x4xf32>
    %56 = arith.truncf %55 : vector<1x16x16x4xf32> to vector<1x16x16x4xbf16>
    %c0_37 = arith.constant 0 : index
    %c1_38 = arith.constant 1 : index
    %c1_39 = arith.constant 1 : index
    %c0_40 = arith.constant 0 : index
    %57 = vector.load %arg7[%c0_37, %c1_38, %c1_39, %c0_40] : memref<1x18x18x4xbf16, #tpu.memory_space<vmem>>, vector<1x16x16x4xbf16>
    tpu.vector_store %arg7[%c0_37, %c1_38, %c1_39, %c0_40], %56 {strides = array<i32>} : memref<1x18x18x4xbf16, #tpu.memory_space<vmem>>, vector<1x16x16x4xbf16>,
    %c0_41 = arith.constant 0 : index
    %c0_42 = arith.constant 0 : index
    %c0_43 = arith.constant 0 : index
    %c0_44 = arith.constant 0 : index
    %58 = vector.load %arg7[%c0_41, %c0_42, %c0_43, %c0_44] : memref<1x18x18x4xbf16, #tpu.memory_space<vmem>>, vector<1x18x18x4xbf16>
    %59 = vector.extract_strided_slice %58 {offsets = [0, 0, 0, 0], sizes = [1, 16, 16, 4], strides = [1, 1, 1, 1]} : vector<1x18x18x4xbf16> to vector<1x16x16x4xbf16>
    %60 = vector.shape_cast %59 : vector<1x16x16x4xbf16> to vector<256x4xbf16>
    %c0_45 = arith.constant 0 : index
    %c0_46 = arith.constant 0 : index
    %61 = vector.load %arg8[%c0_45, %c0_46] : memref<256x36xbf16, #tpu.memory_space<vmem>>, vector<256x4xbf16>
    tpu.vector_store %arg8[%c0_45, %c0_46], %60 {strides = array<i32>} : memref<256x36xbf16, #tpu.memory_space<vmem>>, vector<256x4xbf16>,
    %62 = vector.extract_strided_slice %58 {offsets = [0, 0, 1, 0], sizes = [1, 16, 16, 4], strides = [1, 1, 1, 1]} : vector<1x18x18x4xbf16> to vector<1x16x16x4xbf16>
    %63 = vector.shape_cast %62 : vector<1x16x16x4xbf16> to vector<256x4xbf16>
    %c0_47 = arith.constant 0 : index
    %c4_48 = arith.constant 4 : index
    %64 = vector.load %arg8[%c0_47, %c4_48] : memref<256x36xbf16, #tpu.memory_space<vmem>>, vector<256x4xbf16>
    tpu.vector_store %arg8[%c0_47, %c4_48], %63 {strides = array<i32>} : memref<256x36xbf16, #tpu.memory_space<vmem>>, vector<256x4xbf16>,
    %65 = vector.extract_strided_slice %58 {offsets = [0, 0, 2, 0], sizes = [1, 16, 16, 4], strides = [1, 1, 1, 1]} : vector<1x18x18x4xbf16> to vector<1x16x16x4xbf16>
    %66 = vector.shape_cast %65 : vector<1x16x16x4xbf16> to vector<256x4xbf16>
    %c0_49 = arith.constant 0 : index
    %c8_50 = arith.constant 8 : index
    %67 = vector.load %arg8[%c0_49, %c8_50] : memref<256x36xbf16, #tpu.memory_space<vmem>>, vector<256x4xbf16>
    tpu.vector_store %arg8[%c0_49, %c8_50], %66 {strides = array<i32>} : memref<256x36xbf16, #tpu.memory_space<vmem>>, vector<256x4xbf16>,
    %68 = vector.extract_strided_slice %58 {offsets = [0, 1, 0, 0], sizes = [1, 16, 16, 4], strides = [1, 1, 1, 1]} : vector<1x18x18x4xbf16> to vector<1x16x16x4xbf16>
    %69 = vector.shape_cast %68 : vector<1x16x16x4xbf16> to vector<256x4xbf16>
    %c0_51 = arith.constant 0 : index
    %c12_52 = arith.constant 12 : index
    %70 = vector.load %arg8[%c0_51, %c12_52] : memref<256x36xbf16, #tpu.memory_space<vmem>>, vector<256x4xbf16>
    tpu.vector_store %arg8[%c0_51, %c12_52], %69 {strides = array<i32>} : memref<256x36xbf16, #tpu.memory_space<vmem>>, vector<256x4xbf16>,
    %71 = vector.extract_strided_slice %58 {offsets = [0, 1, 1, 0], sizes = [1, 16, 16, 4], strides = [1, 1, 1, 1]} : vector<1x18x18x4xbf16> to vector<1x16x16x4xbf16>
    %72 = vector.shape_cast %71 : vector<1x16x16x4xbf16> to vector<256x4xbf16>
    %c0_53 = arith.constant 0 : index
    %c16_54 = arith.constant 16 : index
    %73 = vector.load %arg8[%c0_53, %c16_54] : memref<256x36xbf16, #tpu.memory_space<vmem>>, vector<256x4xbf16>
    tpu.vector_store %arg8[%c0_53, %c16_54], %72 {strides = array<i32>} : memref<256x36xbf16, #tpu.memory_space<vmem>>, vector<256x4xbf16>,
    %74 = vector.extract_strided_slice %58 {offsets = [0, 1, 2, 0], sizes = [1, 16, 16, 4], strides = [1, 1, 1, 1]} : vector<1x18x18x4xbf16> to vector<1x16x16x4xbf16>
    %75 = vector.shape_cast %74 : vector<1x16x16x4xbf16> to vector<256x4xbf16>
    %c0_55 = arith.constant 0 : index
    %c20_56 = arith.constant 20 : index
    %76 = vector.load %arg8[%c0_55, %c20_56] : memref<256x36xbf16, #tpu.memory_space<vmem>>, vector<256x4xbf16>
    tpu.vector_store %arg8[%c0_55, %c20_56], %75 {strides = array<i32>} : memref<256x36xbf16, #tpu.memory_space<vmem>>, vector<256x4xbf16>,
    %77 = vector.extract_strided_slice %58 {offsets = [0, 2, 0, 0], sizes = [1, 16, 16, 4], strides = [1, 1, 1, 1]} : vector<1x18x18x4xbf16> to vector<1x16x16x4xbf16>
    %78 = vector.shape_cast %77 : vector<1x16x16x4xbf16> to vector<256x4xbf16>
    %c0_57 = arith.constant 0 : index
    %c24_58 = arith.constant 24 : index
    %79 = vector.load %arg8[%c0_57, %c24_58] : memref<256x36xbf16, #tpu.memory_space<vmem>>, vector<256x4xbf16>
    tpu.vector_store %arg8[%c0_57, %c24_58], %78 {strides = array<i32>} : memref<256x36xbf16, #tpu.memory_space<vmem>>, vector<256x4xbf16>,
    %80 = vector.extract_strided_slice %58 {offsets = [0, 2, 1, 0], sizes = [1, 16, 16, 4], strides = [1, 1, 1, 1]} : vector<1x18x18x4xbf16> to vector<1x16x16x4xbf16>
    %81 = vector.shape_cast %80 : vector<1x16x16x4xbf16> to vector<256x4xbf16>
    %c0_59 = arith.constant 0 : index
    %c28_60 = arith.constant 28 : index
    %82 = vector.load %arg8[%c0_59, %c28_60] : memref<256x36xbf16, #tpu.memory_space<vmem>>, vector<256x4xbf16>
    tpu.vector_store %arg8[%c0_59, %c28_60], %81 {strides = array<i32>} : memref<256x36xbf16, #tpu.memory_space<vmem>>, vector<256x4xbf16>,
    %83 = vector.extract_strided_slice %58 {offsets = [0, 2, 2, 0], sizes = [1, 16, 16, 4], strides = [1, 1, 1, 1]} : vector<1x18x18x4xbf16> to vector<1x16x16x4xbf16>
    %84 = vector.shape_cast %83 : vector<1x16x16x4xbf16> to vector<256x4xbf16>
    %c0_61 = arith.constant 0 : index
    %c32_62 = arith.constant 32 : index
    %85 = vector.load %arg8[%c0_61, %c32_62] : memref<256x36xbf16, #tpu.memory_space<vmem>>, vector<256x4xbf16>
    tpu.vector_store %arg8[%c0_61, %c32_62], %84 {strides = array<i32>} : memref<256x36xbf16, #tpu.memory_space<vmem>>, vector<256x4xbf16>,
    %c0_63 = arith.constant 0 : index
    %c0_64 = arith.constant 0 : index
    %86 = vector.load %arg8[%c0_63, %c0_64] : memref<256x36xbf16, #tpu.memory_space<vmem>>, vector<256x36xbf16>
    %c0_65 = arith.constant 0 : index
    %c0_66 = arith.constant 0 : index
    %87 = vector.load %arg5[%c0_65, %c0_66] : memref<36x4xbf16, #tpu.memory_space<vmem>>, vector<36x4xbf16>
    %cst_67 = arith.constant dense<0.000000e+00> : vector<256x4xf32>
    %88 = tpu.matmul %86, %87, %cst_67 {dimension_numbers = #tpu.dot_dimension_numbers<[1], [0], [0], [1], [0, 0, 1, 1], [], []>} : vector<256x36xbf16>, vector<36x4xbf16>, vector<256x4xf32> -> vector<256x4xf32>
    %89 = vector.shape_cast %88 : vector<256x4xf32> to vector<1x16x16x4xf32>
    %c0_68 = arith.constant 0 : index
    %c0_69 = arith.constant 0 : index
    %c0_70 = arith.constant 0 : index
    %c0_71 = arith.constant 0 : index
    %90 = vector.load %arg6[%c0_68, %c0_69, %c0_70, %c0_71] : memref<1x16x16x4xf32, #tpu.memory_space<vmem>>, vector<1x16x16x4xf32>
    tpu.vector_store %arg6[%c0_68, %c0_69, %c0_70, %c0_71], %89 {strides = array<i32>} : memref<1x16x16x4xf32, #tpu.memory_space<vmem>>, vector<1x16x16x4xf32>,
    return
  }
  func.func @transform_0(%arg0: i32) -> (i32, i32, i32, i32) {
    %c0_i32 = arith.constant 0 : i32
    %c0_i32_0 = arith.constant 0 : i32
    %c0_i32_1 = arith.constant 0 : i32
    %c0_i32_2 = arith.constant 0 : i32
    return %arg0, %c0_i32, %c0_i32_0, %c0_i32_1 : i32, i32, i32, i32
  }
  func.func @transform_1(%arg0: i32) -> (i32, i32) {
    %c0_i32 = arith.constant 0 : i32
    %c0_i32_0 = arith.constant 0 : i32
    %c0_i32_1 = arith.constant 0 : i32
    return %c0_i32, %c0_i32_0 : i32, i32
  }
  func.func @transform_2(%arg0: i32) -> (i32, i32) {
    %c0_i32 = arith.constant 0 : i32
    %c0_i32_0 = arith.constant 0 : i32
    %c0_i32_1 = arith.constant 0 : i32
    return %c0_i32, %c0_i32_0 : i32, i32
  }
  func.func @transform_3(%arg0: i32) -> (i32, i32) {
    %c0_i32 = arith.constant 0 : i32
    %c0_i32_0 = arith.constant 0 : i32
    %c0_i32_1 = arith.constant 0 : i32
    return %c0_i32, %c0_i32_0 : i32, i32
  }
  func.func @transform_4(%arg0: i32) -> (i32, i32) {
    %c0_i32 = arith.constant 0 : i32
    %c0_i32_0 = arith.constant 0 : i32
    %c0_i32_1 = arith.constant 0 : i32
    return %c0_i32, %c0_i32_0 : i32, i32
  }
  func.func @transform_5(%arg0: i32) -> (i32, i32, i32, i32) {
    %c0_i32 = arith.constant 0 : i32
    %c0_i32_0 = arith.constant 0 : i32
    %c0_i32_1 = arith.constant 0 : i32
    %c0_i32_2 = arith.constant 0 : i32
    return %arg0, %c0_i32, %c0_i32_0, %c0_i32_1 : i32, i32, i32, i32
  }
}

</mosaic_0001>

<bundles_post_ra>
// kernel: tpu_custom_call.1
= control target key start
LH: loop header
LB: loop body
LE: loop exit
PB: predicated region body
PF: predicated region fallthrough
CT: control target
= control target key end

     0   :  { %s6283_s18 = smov 0   ;;  %s9069_s0 = inlined_call_operand.vmem [shape: f32[2,16,16,4], index: 0, kind: input, shape index: {}]   ;;  %s9070_s1 = inlined_call_operand.vmem [shape: bf16[36,8], index: 1, kind: input, shape index: {}]   ;;  %s9071_s2 = inlined_call_operand.vmem [shape: bf16[4,4], index: 2, kind: input, shape index: {}]   ;;  %s9072_s3 = inlined_call_operand.vmem [shape: f32[1,4], index: 3, kind: input, shape index: {}]   ;;  %s9073_s4 = inlined_call_operand.vmem [shape: bf16[36,4], index: 4, kind: input, shape index: {}]   ;;  %s9074_s5 = inlined_call_operand.vmem [shape: f32[2,16,16,4], index: 5, kind: output, shape index: {}]  }
   0x1 LB: > { %s5503_s19 = sadd.s32 4294967295, %s6241_s18   ;;  %p5507_p0 = scmp.ge.s32.totalorder %s6241_s18, 1  ;;  %s6241_s18 = sphi %s6283_s18, %s15_s18  }
   0x2   : > { %p187_p1 = scmp.lt.s32.totalorder %s6241_s18, 3 }
   0x4   : > { %p188_p2 = pnand %p5507_p0, %p187_p1 }
   0x6   : > { %191 = sbr.rel (%p188_p2) target bundleno = 1628 (0x65c), region = 40 }
   0xd   : > { %vm9075_vm0 = vcmask 27648   ;;  %vm229_vm1 = vcmask 24576   ;;  %v6243_v0 = vmov 0   ;;  %p215_p3 = scmp.lt.s32.totalorder %s5503_s19, 1  ;;  %vm1018_vm2 = vsmask.f32 3328 }
   0xe   : > { %227 = vst.msk [vmem:[#allocation2] sm:$0xf] %vm9075_vm0, %v6243_v0  ;;  %228 = vst.msk [vmem:[#allocation2 + $0x4] sm:$0xf] %vm9075_vm0, %v6243_v0  ;;  %vm1019_vm3 = vsmask.f32 7440 }
   0xf   : > { %230 = vst.msk [vmem:[#allocation2 + $0x8] sm:$0x1] %vm229_vm1, %v6243_v0  ;;  %233 = vst.msk [vmem:[#allocation2 + $0x14] sm:$0x1] %vm229_vm1, %v6243_v0  ;;  %s9180_s19 = smov (!%p215_p3, %s5503_s19), 1  ;;  %vm1534_vm4 = vcmask 1042432  }
  0x10   : > { %231 = vst.msk [vmem:[#allocation2 + $0xc] sm:$0xf] %vm9075_vm0, %v6243_v0  ;;  %232 = vst.msk [vmem:[#allocation2 + $0x10] sm:$0xf] %vm9075_vm0, %v6243_v0  ;;  %vm1535_vm5 = vcmask 1046532   ;;  %s5809_s20 = sshll.u32 %s9180_s19, 8 }
  0x11   : > { %234 = vst.msk [vmem:[#allocation2 + $0x18] sm:$0xf] %vm9075_vm0, %v6243_v0  ;;  %235 = vst.msk [vmem:[#allocation2 + $0x1c] sm:$0xf] %vm9075_vm0, %v6243_v0  ;;  %vm410_vm6 = vsmask.f32 256  ;;  %s6357_s23 = scalar_lea.vmem %s9069_s0, %s5809_s20 }
  0x12   : > { %236 = vst.msk [vmem:[#allocation2 + $0x20] sm:$0x1] %vm229_vm1, %v6243_v0  ;;  %239 = vst.msk [vmem:[#allocation2 + $0x2c] sm:$0x1] %vm229_vm1, %v6243_v0  ;;  %vm411_vm7 = vsmask.f32 4368 }
  0x13   : > { %237 = vst.msk [vmem:[#allocation2 + $0x24] sm:$0xf] %vm9075_vm0, %v6243_v0  ;;  %238 = vst.msk [vmem:[#allocation2 + $0x28] sm:$0xf] %vm9075_vm0, %v6243_v0  ;;  %vm735_vm8 = vsmask.f32 7938 }
  0x14   : > { %240 = vst.msk [vmem:[#allocation2 + $0x30] sm:$0xf] %vm9075_vm0, %v6243_v0  ;;  %241 = vst.msk [vmem:[#allocation2 + $0x34] sm:$0xf] %vm9075_vm0, %v6243_v0  ;;  %v9086_v8 = vmov 0  ;;  %v282_v9 = vld [vmem:[%s6357_s23] sm:$0xff] }
  0x15   : > { %242 = vst.msk [vmem:[#allocation2 + $0x38] sm:$0x1] %vm229_vm1, %v6243_v0  ;;  %245 = vst.msk [vmem:[#allocation2 + $0x44] sm:$0x1] %vm229_vm1, %v6243_v0  ;;  %v6359_v1 = vld [vmem:[#allocation2] sm:$0xf]  ;;  %v5811_v24 = vpack.c.bf16 %v282_v9, %v282_v9 }
  0x16   : > { %243 = vst.msk [vmem:[#allocation2 + $0x3c] sm:$0xf] %vm9075_vm0, %v6243_v0  ;;  %244 = vst.msk [vmem:[#allocation2 + $0x40] sm:$0xf] %vm9075_vm0, %v6243_v0  ;;  %v6361_v2 = vld [vmem:[#allocation2 + $0x4] sm:$0xf] }
  0x17   : > { %246 = vst.msk [vmem:[#allocation2 + $0x48] sm:$0xf] %vm9075_vm0, %v6243_v0  ;;  %247 = vst.msk [vmem:[#allocation2 + $0x4c] sm:$0xf] %vm9075_vm0, %v6243_v0  ;;  %v853_v3 = vld [vmem:[#allocation2 + $0x8] sm:$0x1] }
  0x18   : > { %248 = vst.msk [vmem:[#allocation2 + $0x50] sm:$0x1] %vm229_vm1, %v6243_v0  ;;  %251 = vst.msk [vmem:[#allocation2 + $0x5c] sm:$0x1] %vm229_vm1, %v6243_v0  ;;  %v1022_v4 = vshrl.u32 %v6359_v1, 16  ;;  %v1025_v5 = vshll.u32 %v6359_v1, 16 }
  0x19   : > { %249 = vst.msk [vmem:[#allocation2 + $0x54] sm:$0xf] %vm9075_vm0, %v6243_v0  ;;  %250 = vst.msk [vmem:[#allocation2 + $0x58] sm:$0xf] %vm9075_vm0, %v6243_v0  ;;  %v1031_v6 = vshll.u32 %v6361_v2, 16  ;;  %v1035_v7 = vshrl.u32 %v6361_v2, 16 }
  0x1a   : > { %252 = vst.msk [vmem:[#allocation2 + $0x60] sm:$0xf] %vm9075_vm0, %v6243_v0  ;;  %253 = vst.msk [vmem:[#allocation2 + $0x64] sm:$0xf] %vm9075_vm0, %v6243_v0  ;;  %v1041_v10 = vshll.u32 %v853_v3, 16  ;;  %v5576_v11 = vrot.slane %v6359_v1, 9 }
  0x1b   : > { %254 = vst.msk [vmem:[#allocation2 + $0x68] sm:$0x1] %vm229_vm1, %v6243_v0  ;;  %257 = vst.msk [vmem:[#allocation2 + $0x74] sm:$0x1] %vm229_vm1, %v6243_v0  ;;  %v1539_v12 = vrot.slane %v6361_v2, 5  ;;  %v1542_v13 = vrot.slane %v853_v3, 5 }
  0x1c   : > { %255 = vst.msk [vmem:[#allocation2 + $0x6c] sm:$0xf] %vm9075_vm0, %v6243_v0  ;;  %256 = vst.msk [vmem:[#allocation2 + $0x70] sm:$0xf] %vm9075_vm0, %v6243_v0  ;;  %v283_v14 = vld [vmem:[%s6357_s23 + $0x8] sm:$0xff]  ;;  %v1024_v15 = vrot.slane %v1022_v4, 4 }
  0x1d   : > { %258 = vst.msk [vmem:[#allocation2 + $0x78] sm:$0xf] %vm9075_vm0, %v6243_v0  ;;  %259 = vst.msk [vmem:[#allocation2 + $0x7c] sm:$0xf] %vm9075_vm0, %v6243_v0  ;;  %v1027_v16 = vrot.slane %v1025_v5, 5  ;;  %v1033_v17 = vrot.slane %v1031_v6, 5  ;;  %v5812_v27 = vpack.c.bf16 %v283_v14, %v283_v14 }
  0x1e   : > { %260 = vst.msk [vmem:[#allocation2 + $0x80] sm:$0x1] %vm229_vm1, %v6243_v0  ;;  %263 = vst.msk [vmem:[#allocation2 + $0x8c] sm:$0x1] %vm229_vm1, %v6243_v0  ;;  %v1037_v18 = vrot.slane %v1035_v7, 4  ;;  %v284_v19 = vld [vmem:[%s6357_s23 + $0x10] sm:$0xff] }
  0x1f   : > { %261 = vst.msk [vmem:[#allocation2 + $0x84] sm:$0xf] %vm9075_vm0, %v6243_v0  ;;  %262 = vst.msk [vmem:[#allocation2 + $0x88] sm:$0xf] %vm9075_vm0, %v6243_v0  ;;  %v285_v20 = vld [vmem:[%s6357_s23 + $0x18] sm:$0xff]  ;;  %v1043_v21 = vrot.slane %v1041_v10, 5  ;;  %v1028_v25 = vor.u32 %v1027_v16, %v1024_v15  ;;  %v5813_v28 = vpack.c.bf16 %v284_v19, %v284_v19 }
  0x20   : > { %264 = vst.msk [vmem:[#allocation2 + $0x90] sm:$0xf] %vm9075_vm0, %v6243_v0  ;;  %265 = vst.msk [vmem:[#allocation2 + $0x94] sm:$0xf] %vm9075_vm0, %v6243_v0  ;;  %v1541_v23 = vrot.slane %v1539_v12, 4  ;;  %v1038_v26 = vor.u32 %v1037_v18, %v1033_v17  ;;  %v9089_v29 = vmov 0  ;;  %v5814_v33 = vpack.c.bf16 %v285_v20, %v285_v20 }
  0x21   : > { %266 = vst.msk [vmem:[#allocation2 + $0x98] sm:$0x1] %vm229_vm1, %v6243_v0  ;;  %269 = vst.msk [vmem:[#allocation2 + $0xa4] sm:$0x1] %vm229_vm1, %v6243_v0  ;;  %v414_v31 = vshrl.u32 %v5811_v24, 16  ;;  %v417_v32 = vshll.u32 %v5811_v24, 16 }
  0x22   : > { %267 = vst.msk [vmem:[#allocation2 + $0x9c] sm:$0xf] %vm9075_vm0, %v6243_v0  ;;  %268 = vst.msk [vmem:[#allocation2 + $0xa0] sm:$0xf] %vm9075_vm0, %v6243_v0  ;;  %v1029_v34 = vrot.slane %v1028_v25, 4  ;;  %v1039_v35 = vrot.slane %v1038_v26, 4 }
  0x23   : > { %270 = vst.msk [vmem:[#allocation2 + $0xa8] sm:$0xf] %vm9075_vm0, %v6243_v0  ;;  %271 = vst.msk [vmem:[#allocation2 + $0xac] sm:$0xf] %vm9075_vm0, %v6243_v0  ;;  %v422_v37 = vshrl.u32 %v5812_v27, 16  ;;  %v416_v38 = vrot.slane %v414_v31, 7 }
  0x24   : > { %272 = vst.msk [vmem:[#allocation2 + $0xb0] sm:$0x1] %vm229_vm1, %v6243_v0  ;;  %275 = vst.msk [vmem:[#allocation2 + $0xbc] sm:$0x1] %vm229_vm1, %v6243_v0  ;;  %v425_v39 = vshll.u32 %v5812_v27, 16  ;;  %v431_v40 = vshrl.u32 %v5813_v28, 16 }
  0x25   : > { %273 = vst.msk [vmem:[#allocation2 + $0xb4] sm:$0xf] %vm9075_vm0, %v6243_v0  ;;  %274 = vst.msk [vmem:[#allocation2 + $0xb8] sm:$0xf] %vm9075_vm0, %v6243_v0  ;;  %v434_v41 = vshll.u32 %v5813_v28, 16  ;;  %v286_v42 = vld [vmem:[%s6357_s23 + $0x20] sm:$0xff]  ;;  %v419_v52 = vor.u32 %v417_v32, %v416_v38 }
  0x26   : > { %276 = vst.msk [vmem:[#allocation2 + $0xc0] sm:$0xf] %vm9075_vm0, %v6243_v0  ;;  %277 = vst.msk [vmem:[#allocation2 + $0xc4] sm:$0xf] %vm9075_vm0, %v6243_v0  ;;  %s6244_s24 = smov 8   ;;  %v424_v45 = vrot.slane %v422_v37, 7  ;;  %v5815_v59 = vpack.c.bf16 %v286_v42, %v286_v42 }
  0x27   : > { %278 = vst.msk [vmem:[#allocation2 + $0xc8] sm:$0x1] %vm229_vm1, %v6243_v0  ;;  %281 = vst.msk [vmem:[#allocation2 + $0xd4] sm:$0x1] %vm229_vm1, %v6243_v0  ;;  %v737_v47 = vld [vmem:[#allocation2 + $0xc] sm:$0xf] }
  0x28   : > { %279 = vst.msk [vmem:[#allocation2 + $0xcc] sm:$0xf] %vm9075_vm0, %v6243_v0  ;;  %280 = vst.msk [vmem:[#allocation2 + $0xd0] sm:$0xf] %vm9075_vm0, %v6243_v0  ;;  %v439_v48 = vshrl.u32 %v5814_v33, 16  ;;  %v287_v49 = vld [vmem:[%s6357_s23 + $0x28] sm:$0xff]  ;;  %v427_v55 = vor.u32 %v425_v39, %v424_v45 }
  0x29   : > { %vm6367_vm9 = vmor %vm1534_vm4, %vm1535_vm5  ;;  %v420_v53 = vrot.slane %v416_v38, 4  ;;  %v433_v54 = vrot.slane %v431_v40, 7  ;;  %v442_v57 = vshll.u32 %v5814_v33, 16  ;;  %v746_v58 = vld [vmem:[#allocation2 + $0x18] sm:$0xf]  ;;  %v9096_v60 = vmov 0 }
  0x2a   : > { %v9087_v8 = vsel %vm6367_vm9, 4294967295, %v9086_v8  ;;  %v1540_v22 = vsel %vm6367_vm9, %v5576_v11, %v1539_v12  ;;  %vm6381_vm10 = vmor %vm1018_vm2, %vm1019_vm3  ;;  %v1543_v30 = vsel %vm6367_vm9, %v1541_v23, %v1542_v13  ;;  %v441_v56 = vrot.slane %v439_v48, 7  ;;  %s6245_s25 = smov 4   ;;  %v288_v3 = vld [vmem:[%s6357_s23 + $0x30] sm:$0xff]  ;;  %v289_v10 = vld [vmem:[%s6357_s23 + $0x38] sm:$0xff]  ;;  %s6246_s26 = smov 12  }
  0x2b   : > { %9088 = vst [vmem:[#allocation4_spill] sm:$0xff] %v9087_v8  ;;  %v9090_v29 = vsel %vm6381_vm10, 4294967295, %v9089_v29  ;;  %v5592_v36 = vcombine.low %v1540_v22, %v1543_v30  ;;  %v1034_v43 = vsel %vm6381_vm10, %v1029_v34, %v1033_v17  ;;  %v1044_v44 = vsel %vm6381_vm10, %v1039_v35, %v1043_v21  ;;  %vm6395_vm11 = vmand %vm9075_vm0, %vm735_vm8  ;;  %v743_v9 = vld [vmem:[#allocation2 + $0x14] sm:$0x1]  ;;  %v290_v11 = vld [vmem:[%s6357_s23 + $0x40] sm:$0xff]  ;;  %s6247_s27 = smov 24  }
  0x2c   : > { %9091 = vst [vmem:[#allocation5_spill] sm:$0xff] %v9090_v29  ;;  %v5560_v50 = vcombine.low %v1034_v43, %v1044_v44  ;;  %vm6402_vm12 = vmor %vm410_vm6, %vm411_vm7  ;;  %v738_v61 = vsel %vm6395_vm11, %v419_v52, %v737_v47  ;;  %v436_v62 = vor.u32 %v434_v41, %v433_v54  ;;  %v437_v63 = vrot.slane %v433_v54, 4  ;;  %v750_v16 = vld [vmem:[#allocation2 + $0x20] sm:$0x1]  ;;  %v753_v22 = vld [vmem:[#allocation2 + $0x24] sm:$0xf] }
  0x2d   : > { %1697 = vrot.lane.b32.xlu1 %v5592_v36, %s6244_s24  ;;  %vm6408_vm13 = vmand %vm229_vm1, %vm410_vm6  ;;  %v5816_v0 = vpack.c.bf16 %v287_v49, %v287_v49  ;;  %v428_v4 = vsel %vm6402_vm12, %v420_v53, %v427_v55  ;;  %739 = vst [vmem:[#allocation2 + $0xc] sm:$0xf] %v738_v61  ;;  %v444_v5 = vor.u32 %v442_v57, %v441_v56  ;;  %v448_v6 = vshrl.u32 %v5815_v59, 16  ;;  %v291_v25 = vld [vmem:[%s6357_s23 + $0x48] sm:$0xff]  ;;  %s6248_s28 = smov 20   ;;  %s6249_s29 = smov 32  }
  0x2e   : > { %v9097_v60 = vsel %vm6408_vm13, 4294967295, %v9096_v60  ;;  %1453 = vrot.lane.b32.xlu0 %v5560_v50, %s6245_s25  ;;  %v451_v7 = vshll.u32 %v5815_v59, 16  ;;  %740 = vst.msk [vmem:[#allocation2 + $0x10] sm:$0xf] %vm9075_vm0, %v428_v4  ;;  %v747_v12 = vsel %vm6395_vm11, %v436_v62, %v746_v58  ;;  %v429_v15 = vrot.slane %v424_v45, 4  ;;  %s6250_s9 = smov 16  }
  0x2f   : > { %9098 = vst [vmem:[#allocation6_spill] sm:$0xff] %v9097_v60  ;;  %v456_v13 = vshrl.u32 %v5816_v0, 16  ;;  %v459_v14 = vshll.u32 %v5816_v0, 16  ;;  %v445_v17 = vsel %vm6402_vm12, %v437_v63, %v444_v5  ;;  %748 = vst [vmem:[#allocation2 + $0x18] sm:$0xf] %v747_v12  ;;  %v450_v18 = vrot.slane %v448_v6, 7 }
  0x30   : > { %v446_v19 = vrot.slane %v441_v56, 4  ;;  %v5817_v20 = vpack.c.bf16 %v288_v3, %v288_v3  ;;  %749 = vst.msk [vmem:[#allocation2 + $0x1c] sm:$0xf] %vm9075_vm0, %v445_v17  ;;  %v744_v23 = vsel %vm6408_vm13, %v429_v15, %v743_v9  ;;  %v6428_v24 = vpack.c.bf16 %v289_v10, %v289_v10  ;;  %v757_v31 = vld [vmem:[#allocation2 + $0x2c] sm:$0x1]  ;;  %s6251_s10 = smov 28  }
  0x31   : > { %v458_v21 = vrot.slane %v456_v13, 7  ;;  %v6431_v26 = vpack.c.bf16 %v290_v11, %v290_v11  ;;  %v453_v27 = vor.u32 %v451_v7, %v450_v18  ;;  %v454_v28 = vrot.slane %v450_v18, 4  ;;  %745 = vst [vmem:[#allocation2 + $0x14] sm:$0x1] %v744_v23  ;;  %s6252_s17 = smov 124  }
  0x32   : > { %v751_v30 = vsel %vm6408_vm13, %v446_v19, %v750_v16  ;;  %v465_v32 = vshrl.u32 %v5817_v20, 16  ;;  %v468_v35 = vshll.u32 %v5817_v20, 16  ;;  %v473_v36 = vshrl.u32 %v6428_v24, 16 }
  0x33   : > { %v461_v33 = vor.u32 %v459_v14, %v458_v21  ;;  %752 = vst [vmem:[#allocation2 + $0x20] sm:$0x1] %v751_v30  ;;  %v463_v34 = vrot.slane %v458_v21, 4  ;;  %v754_v37 = vsel %vm6395_vm11, %v453_v27, %v753_v22  ;;  %v476_v39 = vshll.u32 %v6428_v24, 16 }
  0x34   : > { %v6438_v38 = vrot.slane %v465_v32, 7  ;;  %v6441_v40 = vpack.c.bf16 %v291_v25, %v291_v25  ;;  %v854_v41 = vld [vmem:[#allocation2 + $0xc] sm:$0xf]  ;;  %755 = vst [vmem:[#allocation2 + $0x24] sm:$0xf] %v754_v37  ;;  %v6447_v44 = vrot.slane %v473_v36, 7 }
  0x35   : > { %v462_v42 = vsel %vm6402_vm12, %v454_v28, %v461_v33  ;;  %v758_v43 = vsel %vm6408_vm13, %v463_v34, %v757_v31  ;;  %v482_v45 = vshrl.u32 %v6431_v26, 16  ;;  %v855_v47 = vld [vmem:[#allocation2 + $0x10] sm:$0xf]  ;;  %v5577_v48 = vrot.slane %v854_v41, 9 }
  0x36   : > { %756 = vst.msk [vmem:[#allocation2 + $0x28] sm:$0xf] %vm9075_vm0, %v462_v42  ;;  %759 = vst [vmem:[#allocation2 + $0x2c] sm:$0x1] %v758_v43  ;;  %v1046_v49 = vshrl.u32 %v854_v41, 16  ;;  %v1049_v50 = vshll.u32 %v854_v41, 16  ;;  %v6452_v52 = vor.u32 %v468_v35, %v6438_v38  ;;  %v6454_v53 = vcombine.low %v854_v41, %v855_v47 }
  0x37   : > { %v857_v54 = vld [vmem:[#allocation2 + $0x18] sm:$0xf]  ;;  %v1546_v55 = vrot.slane %v855_v47, 5  ;;  %v1055_v56 = vshll.u32 %v855_v47, 16  ;;  %v1059_v57 = vshrl.u32 %v855_v47, 16  ;;  %vm1001_vm14 = vcmask 31744  }
  0x38   : > { %v858_v58 = vld [vmem:[#allocation2 + $0x1c] sm:$0xf]  ;;  %v5578_v59 = vrot.slane %v857_v54, 9  ;;  %v1070_v61 = vshrl.u32 %v857_v54, 16  ;;  %v1073_v62 = vshll.u32 %v857_v54, 16  ;;  %v1048_v63 = vrot.slane %v1046_v49, 4  ;;  %1767 = vrot.lane.b32.xlu0 %v6454_v53, %s6246_s26 }
  0x39   : > { %v6458_v0 = vcombine.low %v857_v54, %v858_v58  ;;  %v856_v3 = vld [vmem:[#allocation2 + $0x14] sm:$0x1]  ;;  %v1547_v4 = vsel %vm6367_vm9, %v5577_v48, %v1546_v55  ;;  %v1548_v5 = vrot.slane %v1546_v55, 4  ;;  %v1553_v6 = vrot.slane %v858_v58, 5  ;;  %1003 = vst.msk [vmem:[#allocation3 + $0x8] sm:$0xff] %vm1001_vm14, %v6454_v53 }
  0x3a   : > { %v1549_v7 = vrot.slane %v856_v3, 5  ;;  %v859_v9 = vld [vmem:[#allocation2 + $0x20] sm:$0x1]  ;;  %v1072_v10 = vrot.slane %v1070_v61, 4  ;;  %v1075_v11 = vrot.slane %v1073_v62, 5  ;;  %v1079_v12 = vshll.u32 %v858_v58, 16 }
  0x3b   : > { %1769 = vrot.lane.b32.xlu1 %v6458_v0, %s6246_s26  ;;  %v1554_v13 = vsel %vm6367_vm9, %v5578_v59, %v1553_v6  ;;  %v1555_v14 = vrot.slane %v1553_v6, 4  ;;  %v1556_v15 = vrot.slane %v859_v9, 5  ;;  %v1083_v16 = vshrl.u32 %v858_v58, 16  ;;  %v860_v17 = vld [vmem:[#allocation2 + $0x24] sm:$0xf]  ;;  %1004 = vst.msk [vmem:[#allocation3 + $0x10] sm:$0xff] %vm1001_vm14, %v6458_v0 }
  0x3c   : > { %v1550_v18 = vsel %vm6367_vm9, %v1548_v5, %v1549_v7  ;;  %v1076_v19 = vor.u32 %v1075_v11, %v1072_v10  ;;  %v1081_v20 = vrot.slane %v1079_v12, 5  ;;  %v1089_v21 = vshll.u32 %v859_v9, 16  ;;  %2005 = vrot.lane.b32.xlu0 %v6458_v0, %s6247_s27 }
  0x3d   : > { %v861_v22 = vld [vmem:[#allocation2 + $0x28] sm:$0xf]  ;;  %v5593_v23 = vcombine.low %v1547_v4, %v1550_v18  ;;  %v1557_v25 = vsel %vm6367_vm9, %v1555_v14, %v1556_v15  ;;  %v862_v27 = vld [vmem:[#allocation2 + $0x2c] sm:$0x1]  ;;  %v5579_v28 = vrot.slane %v860_v17, 9  ;;  %v1085_v30 = vrot.slane %v1083_v16, 4 }
  0x3e   : > { %v6472_v31 = vcombine.low %v860_v17, %v861_v22  ;;  %v6474_v32 = vcombine.low %v1554_v13, %v1557_v25  ;;  %v1560_v33 = vrot.slane %v861_v22, 5  ;;  %v1563_v34 = vrot.slane %v862_v27, 5  ;;  %v760_v13 = vld [vmem:[#allocation2 + $0x30] sm:$0xf]  ;;  %v6074_v18 = vld [vmem:[%s9070_s1] sm:$0xff]  }
  0x3f   : > { %v1077_v35 = vrot.slane %v1076_v19, 4  ;;  %v1086_v36 = vor.u32 %v1085_v30, %v1081_v20  ;;  %v1091_v37 = vrot.slane %v1089_v21, 5  ;;  %v1051_v41 = vrot.slane %v1049_v50, 5  ;;  %v292_v25 = vld [vmem:[%s6357_s23 + $0x50] sm:$0xff]  ;;  %5930 = vmatprep.subr.bf16.mxu0 %v6074_v18 }
  0x40   : > { %2007 = vrot.lane.b32.xlu1 %v6472_v31, %s6247_s27  ;;  %v1561_v42 = vsel %vm6367_vm9, %v5579_v28, %v1560_v33  ;;  %v1562_v43 = vrot.slane %v1560_v33, 4  ;;  %v1057_v47 = vrot.slane %v1055_v56, 5  ;;  %v1061_v48 = vrot.slane %v1059_v57, 4  ;;  %1935 = vrot.lane.b32.xlu0 %v5593_v23, %s6248_s28  ;;  %1005 = vst.msk [vmem:[#allocation3 + $0x18] sm:$0xff] %vm1001_vm14, %v6472_v31 }
  0x41   : > { %v1082_v49 = vsel %vm6381_vm10, %v1077_v35, %v1081_v20  ;;  %v1087_v54 = vrot.slane %v1086_v36, 4  ;;  %v1052_v55 = vor.u32 %v1051_v41, %v1048_v63  ;;  %v1065_v58 = vshll.u32 %v856_v3, 16  ;;  %v293_v35 = vld [vmem:[%s6357_s23 + $0x58] sm:$0xff]  ;;  %5931 = vmatpush3.bf16.msra.mxu0 %v6074_v18 }
  0x42   : > { %v1564_v50 = vsel %vm6367_vm9, %v1562_v43, %v1563_v34  ;;  %v1062_v59 = vor.u32 %v1061_v48, %v1057_v47  ;;  %v1094_v61 = vshrl.u32 %v860_v17, 16  ;;  %v1097_v62 = vshll.u32 %v860_v17, 16  ;;  %v771_v48 = vld [vmem:[#allocation2 + $0x44] sm:$0x1] }
  0x43   : > { %v6485_v4 = vcombine.low %v1561_v42, %v1564_v50  ;;  %v1092_v56 = vsel %vm6381_vm10, %v1087_v54, %v1091_v37  ;;  %v1053_v57 = vrot.slane %v1052_v55, 4  ;;  %v1067_v5 = vrot.slane %v1065_v58, 5  ;;  %v767_v37 = vld [vmem:[#allocation2 + $0x3c] sm:$0xf] }
  0x44   : > { %1699 = vrot.lane.b32.xlu1 %v5593_v23, %s6244_s24  ;;  %v6490_v6 = vcombine.low %v1082_v49, %v1092_v56  ;;  %v1063_v7 = vrot.slane %v1062_v59, 4  ;;  %v1096_v63 = vrot.slane %v1094_v61, 4  ;;  %v1099_v3 = vrot.slane %v1097_v62, 5  ;;  %2173 = vrot.lane.b32.xlu0 %v6474_v32, %s6249_s29  ;;  %v764_v23 = vld [vmem:[#allocation2 + $0x38] sm:$0x1] }
  0x45   : > { %v1058_v9 = vsel %vm6381_vm10, %v1053_v57, %v1057_v47  ;;  %v1103_v10 = vshll.u32 %v861_v22, 16  ;;  %v1107_v11 = vshrl.u32 %v861_v22, 16  ;;  %v1113_v12 = vshll.u32 %v862_v27, 16 }
  0x46   : > { %v1068_v14 = vsel %vm6381_vm10, %v1063_v7, %v1067_v5  ;;  %v1100_v15 = vor.u32 %v1099_v3, %v1096_v63  ;;  %v471_v16 = vrot.slane %v6438_v38, 4  ;;  %v478_v17 = vor.u32 %v476_v39, %v6447_v44 }
  0x47   : > { %v5561_v19 = vcombine.low %v1058_v9, %v1068_v14  ;;  %v1105_v20 = vrot.slane %v1103_v10, 5  ;;  %v1109_v21 = vrot.slane %v1107_v11, 4  ;;  %v1115_v22 = vrot.slane %v1113_v12, 5 }
  0x48   : > { %1937 = vrot.lane.b32.xlu1 %v6474_v32, %s6248_s28  ;;  %v1101_v27 = vrot.slane %v1100_v15, 4  ;;  %v479_v38 = vsel %vm6402_vm12, %v471_v16, %v478_v17  ;;  %v761_v24 = vsel %vm6395_vm11, %v6452_v52, %v760_v13  ;;  %v480_v39 = vrot.slane %v6447_v44, 4  ;;  %2175 = vrot.lane.b32.xlu0 %v6485_v4, %s6249_s29  ;;  %v294_v15 = vld [vmem:[%s6357_s23 + $0x60] sm:$0xff] }
  0x49   : > { %v1110_v28 = vor.u32 %v1109_v21, %v1105_v20  ;;  %762 = vst [vmem:[#allocation2 + $0x30] sm:$0xf] %v761_v24  ;;  %763 = vst.msk [vmem:[#allocation2 + $0x34] sm:$0xf] %vm9075_vm0, %v479_v38  ;;  %v484_v30 = vrot.slane %v482_v45, 7  ;;  %v485_v33 = vshll.u32 %v6431_v26, 16  ;;  %v5821_v41 = vpack.c.bf16 %v292_v25, %v292_v25 }
  0x4a   : > { %v490_v34 = vshrl.u32 %v6441_v40, 16  ;;  %v1106_v44 = vsel %vm6381_vm10, %v1101_v27, %v1105_v20  ;;  %v765_v52 = vsel %vm6408_vm13, %v480_v39, %v764_v23  ;;  %v493_v36 = vshll.u32 %v6441_v40, 16  ;;  %v6075_v45 = vld [vmem:[%s9070_s1 + $0x8] sm:$0xff]  }
  0x4b   : > { %v1111_v42 = vrot.slane %v1110_v28, 4  ;;  %766 = vst [vmem:[#allocation2 + $0x38] sm:$0x1] %v765_v52  ;;  %v487_v26 = vor.u32 %v485_v33, %v484_v30  ;;  %v488_v43 = vrot.slane %v484_v30, 4  ;;  %v5822_v49 = vpack.c.bf16 %v293_v35, %v293_v35  ;;  %5932 = vmatprep.subr.bf16.mxu0 %v6075_v45  ;;  %v774_v20 = vld [vmem:[#allocation2 + $0x48] sm:$0xf] }
  0x4c   : > { %v492_v47 = vrot.slane %v490_v34, 7  ;;  %1861 = vrot.lane.b32.xlu1 %v6490_v6, %s6250_s9  ;;  %v499_v54 = vshrl.u32 %v5821_v41, 16  ;;  %v502_v55 = vshll.u32 %v5821_v41, 16  ;;  %1455 = vrot.lane.b32.xlu0 %v5561_v19, %s6245_s25  ;;  %v5823_v25 = vpack.c.bf16 %v294_v15, %v294_v15 }
  0x4d   : > { %v1116_v40 = vsel %vm6381_vm10, %v1111_v42, %v1115_v22  ;;  %v768_v50 = vsel %vm6395_vm11, %v487_v26, %v767_v37  ;;  %5933 = vmatpush3.bf16.msra.mxu0 %v6075_v45  ;;  %v507_v56 = vshrl.u32 %v5822_v49, 16  ;;  %v510_v57 = vshll.u32 %v5822_v49, 16 }
  0x4e   : > { %v495_v58 = vor.u32 %v493_v36, %v492_v47  ;;  %v497_v59 = vrot.slane %v492_v47, 4  ;;  %v6537_v61 = vcombine.low %v1106_v44, %v1116_v40  ;;  %769 = vst [vmem:[#allocation2 + $0x3c] sm:$0xf] %v768_v50  ;;  %v501_v62 = vrot.slane %v499_v54, 7 }
  0x4f   : > { %v509_v10 = vrot.slane %v507_v56, 7  ;;  %v516_v52 = vshrl.u32 %v5823_v25, 16  ;;  %vm2323_vm15 = vcmask 1041408   ;;  %vm1501_vm1 = vcmask 64544  }
  0x50   : > { %v496_v5 = vsel %vm6402_vm12, %v488_v43, %v495_v58  ;;  %v772_v7 = vsel %vm6408_vm13, %v497_v59, %v771_v48  ;;  %2099 = vrot.lane.b32.xlu1 %v6537_v61, %s6251_s10  ;;  %v6545_v63 = vld [vmem:[#allocation2 + $0x30] sm:$0xf]  ;;  %v6547_v3 = vld [vmem:[#allocation2 + $0x34] sm:$0xf]  ;;  %v504_v9 = vor.u32 %v502_v55, %v501_v62  ;;  %1859 = vrot.lane.b32.xlu0 %v5561_v19, %s6250_s9  ;;  %v505_v14 = vrot.slane %v501_v62, 4 }
  0x51   : > { %770 = vst.msk [vmem:[#allocation2 + $0x40] sm:$0xf] %vm9075_vm0, %v496_v5  ;;  %773 = vst [vmem:[#allocation2 + $0x44] sm:$0x1] %v772_v7  ;;  %v1118_v11 = vshrl.u32 %v6545_v63, 16  ;;  %v1121_v12 = vshll.u32 %v6545_v63, 16  ;;  %v512_v18 = vor.u32 %v510_v57, %v509_v10  ;;  %v6580_v42 = vcombine.low %v6545_v63, %v6547_v3 }
  0x52   : > { %v1127_v13 = vshll.u32 %v6547_v3, 16  ;;  %v865_v16 = vld [vmem:[#allocation2 + $0x38] sm:$0x1]  ;;  %v1131_v17 = vshrl.u32 %v6547_v3, 16  ;;  %v775_v28 = vsel %vm6395_vm11, %v504_v9, %v774_v20  ;;  %v1567_v33 = vrot.slane %v6547_v3, 5  ;;  %v296_v5 = vld [vmem:[%s6357_s23 + $0x70] sm:$0xff] }
  0x53   : > { %v1120_v21 = vrot.slane %v1118_v11, 4  ;;  %v1123_v22 = vrot.slane %v1121_v12, 5  ;;  %v1137_v38 = vshll.u32 %v865_v16, 16  ;;  %v513_v39 = vsel %vm6402_vm12, %v505_v14, %v512_v18  ;;  %776 = vst [vmem:[#allocation2 + $0x48] sm:$0xf] %v775_v28  ;;  %v297_v9 = vld [vmem:[%s6357_s23 + $0x78] sm:$0xff] }
  0x54   : > { %v1129_v23 = vrot.slane %v1127_v13, 5  ;;  %1457 = vrot.lane.b32.xlu1 %v6490_v6, %s6245_s25  ;;  %v1133_v19 = vrot.slane %v1131_v17, 4  ;;  %2097 = vrot.lane.b32.xlu0 %v6490_v6, %s6251_s10  ;;  %777 = vst.msk [vmem:[#allocation2 + $0x4c] sm:$0xf] %vm9075_vm0, %v513_v39  ;;  %v5580_v26 = vrot.slane %v6545_v63, 9  ;;  %v1569_v47 = vrot.slane %v1567_v33, 4 }
  0x55   : > { %v1124_v27 = vor.u32 %v1123_v22, %v1120_v21  ;;  %v6560_v24 = vld [vmem:[#allocation2 + $0x3c] sm:$0xf]  ;;  %v1139_v37 = vrot.slane %v1137_v38, 5  ;;  %v778_v43 = vld [vmem:[#allocation2 + $0x50] sm:$0x1]  ;;  %v1570_v48 = vrot.slane %v865_v16, 5  ;;  %v5544_v7 = vcombine.low %v6359_v1, %v6361_v2 }
  0x56   : > { %v1134_v30 = vor.u32 %v1133_v19, %v1129_v23  ;;  %v1142_v6 = vshrl.u32 %v6560_v24, 16  ;;  %v1145_v35 = vshll.u32 %v6560_v24, 16  ;;  %v514_v59 = vrot.slane %v509_v10, 4  ;;  %v781_v16 = vld [vmem:[#allocation2 + $0x54] sm:$0xf]  ;;  %1006 = vst.msk [vmem:[#allocation3 + $0x20] sm:$0xff] %vm1001_vm14, %v6580_v42 }
  0x57   : > { %v1125_v44 = vrot.slane %v1124_v27, 4  ;;  %v6596_v56 = vrot.slane %v516_v52, 7  ;;  %v519_v57 = vshll.u32 %v5823_v25, 16  ;;  %v1568_v10 = vsel %vm6367_vm9, %v5580_v26, %v1567_v33  ;;  %v785_v52 = vld [vmem:[#allocation2 + $0x5c] sm:$0x1]  ;;  %1002 = vst.msk [vmem:[#allocation3] sm:$0xff] %vm1001_vm14, %v5544_v7 }
  0x58   : > { %v6568_v34 = vld [vmem:[#allocation2 + $0x40] sm:$0xf]  ;;  %1459 = vrot.lane.b32.xlu1 %v6537_v61, %s6245_s25  ;;  %1701 = vrot.lane.b32.xlu0 %v6474_v32, %s6244_s24  ;;  %v1135_v36 = vrot.slane %v1134_v30, 4  ;;  %v1144_v49 = vrot.slane %v1142_v6, 4  ;;  %v1147_v54 = vrot.slane %v1145_v35, 5  ;;  %v295_v32 = vld [vmem:[%s6357_s23 + $0x68] sm:$0xff]  ;;  %v779_v63 = vsel %vm6408_vm13, %v514_v59, %v778_v43 }
  0x59   : > { %v1151_v41 = vshll.u32 %v6568_v34, 16  ;;  %v1155_v45 = vshrl.u32 %v6568_v34, 16  ;;  %v1130_v55 = vsel %vm6381_vm10, %v1125_v44, %v1129_v23  ;;  %v6588_v40 = vld [vmem:[#allocation2 + $0x44] sm:$0x1]  ;;  %v5824_v3 = vpack.c.bf16 %v295_v32, %v295_v32  ;;  %780 = vst [vmem:[#allocation2 + $0x50] sm:$0x1] %v779_v63 }
  0x5a   : > { %v1140_v62 = vsel %vm6381_vm10, %v1135_v36, %v1139_v37  ;;  %v1571_v11 = vsel %vm6367_vm9, %v1569_v47, %v1570_v48  ;;  %v1148_v12 = vor.u32 %v1147_v54, %v1144_v49  ;;  %v1161_v13 = vshll.u32 %v6588_v40, 16  ;;  %v6624_v22 = vld [vmem:[#allocation2 + $0x48] sm:$0xf]  ;;  %v788_v47 = vld [vmem:[#allocation2 + $0x60] sm:$0xf] }
  0x5b   : > { %v6590_v58 = vrot.slane %v1151_v41, 5  ;;  %v1157_v50 = vrot.slane %v1155_v45, 4  ;;  %v6611_v14 = vcombine.low %v1130_v55, %v1140_v62  ;;  %v5825_v2 = vpack.c.bf16 %v296_v5, %v296_v5  ;;  %v6626_v23 = vld [vmem:[#allocation2 + $0x4c] sm:$0xf]  ;;  %v298_v32 = vld [vmem:[%s6357_s23 + $0x80] sm:$0xff] }
  0x5c   : > { %1703 = vrot.lane.b32.xlu1 %v6485_v4, %s6244_s24  ;;  %1771 = vrot.lane.b32.xlu0 %v6472_v31, %s6246_s26  ;;  %v521_v15 = vor.u32 %v519_v57, %v6596_v56  ;;  %v5826_v17 = vpack.c.bf16 %v297_v9, %v297_v9  ;;  %v6617_v18 = vcombine.low %v1568_v10, %v1571_v11  ;;  %v1574_v21 = vrot.slane %v6568_v34, 5  ;;  %v299_v57 = vld [vmem:[%s6357_s23 + $0x88] sm:$0xff] }
  0x5d   : > { %v1158_v1 = vor.u32 %v1157_v50, %v6590_v58  ;;  %v6621_v20 = vcombine.low %v6560_v24, %v6568_v34  ;;  %v1149_v19 = vrot.slane %v1148_v12, 4  ;;  %v1163_v25 = vrot.slane %v1161_v13, 5  ;;  %v792_v50 = vld [vmem:[#allocation2 + $0x68] sm:$0x1] }
  0x5e   : > { %v524_v27 = vshrl.u32 %v5824_v3, 16  ;;  %v527_v39 = vshll.u32 %v5824_v3, 16  ;;  %v782_v28 = vsel %vm6395_vm11, %v521_v15, %v781_v16  ;;  %v533_v30 = vshrl.u32 %v5825_v2, 16 }
  0x5f   : > { %v1159_v38 = vrot.slane %v1158_v1, 4  ;;  %v522_v33 = vrot.slane %v6596_v56, 4  ;;  %783 = vst [vmem:[#allocation2 + $0x54] sm:$0xf] %v782_v28  ;;  %v536_v35 = vshll.u32 %v5825_v2, 16  ;;  %v541_v44 = vshrl.u32 %v5826_v17, 16 }
  0x60   : > { %1773 = vrot.lane.b32.xlu1 %v6580_v42, %s6246_s26  ;;  %1863 = vrot.lane.b32.xlu0 %v6537_v61, %s6250_s9  ;;  %v6630_v61 = vcombine.low %v6624_v22, %v6626_v23  ;;  %v526_v6 = vrot.slane %v524_v27, 7  ;;  %v535_v36 = vrot.slane %v533_v30, 7  ;;  %v544_v37 = vshll.u32 %v5826_v17, 16  ;;  %1007 = vst.msk [vmem:[#allocation3 + $0x28] sm:$0xff] %vm1001_vm14, %v6621_v20  ;;  %v6699_v2 = vld [vmem:[#allocation2 + $0x50] sm:$0x1] }
  0x61   : > { %v5581_v41 = vrot.slane %v6560_v24, 9  ;;  %v1576_v45 = vrot.slane %v1574_v21, 4  ;;  %v1577_v26 = vrot.slane %v6588_v40, 5  ;;  %v543_v48 = vrot.slane %v541_v44, 7 }
  0x62   : > { %v529_v43 = vor.u32 %v527_v39, %v526_v6  ;;  %1008 = vst.msk [vmem:[#allocation3 + $0x30] sm:$0xff] %vm1001_vm14, %v6630_v61  ;;  %v531_v53 = vrot.slane %v526_v6, 4  ;;  %v539_v24 = vrot.slane %v535_v36, 4  ;;  %v1154_v0 = vsel %vm6381_vm10, %v1149_v19, %v6590_v58  ;;  %v301_v39 = vld [vmem:[%s6357_s23 + $0x98] sm:$0xff] }
  0x63   : > { %v1164_v31 = vsel %vm6381_vm10, %v1159_v38, %v1163_v25  ;;  %v1166_v49 = vshrl.u32 %v6624_v22, 16  ;;  %v1169_v55 = vshll.u32 %v6624_v22, 16  ;;  %v546_v40 = vor.u32 %v544_v37, %v543_v48  ;;  %v300_v38 = vld [vmem:[%s6357_s23 + $0x90] sm:$0xff] }
  0x64   : > { %1865 = vrot.lane.b32.xlu1 %v6611_v14, %s6250_s9  ;;  %1939 = vrot.lane.b32.xlu0 %v6485_v4, %s6248_s28  ;;  %v538_v4 = vor.u32 %v536_v35, %v535_v36  ;;  %v530_v54 = vsel %vm6402_vm12, %v522_v33, %v529_v43  ;;  %v1175_v59 = vshll.u32 %v6626_v23, 16  ;;  %v1179_v62 = vshrl.u32 %v6626_v23, 16 }
  0x65   : > { %784 = vst.msk [vmem:[#allocation2 + $0x58] sm:$0xf] %vm9075_vm0, %v530_v54  ;;  %v548_v56 = vrot.slane %v543_v48, 4  ;;  %v6680_v5 = vcombine.low %v1154_v0, %v1164_v31  ;;  %v547_v7 = vsel %vm6402_vm12, %v539_v24, %v546_v40  ;;  %v5827_v63 = vpack.c.bf16 %v298_v32, %v298_v32  ;;  %v795_v31 = vld [vmem:[#allocation2 + $0x6c] sm:$0xf] }
  0x66   : > { %v789_v58 = vsel %vm6395_vm11, %v538_v4, %v788_v47  ;;  %v1575_v3 = vsel %vm6367_vm9, %v5581_v41, %v1574_v21  ;;  %791 = vst.msk [vmem:[#allocation2 + $0x64] sm:$0xf] %vm9075_vm0, %v547_v7  ;;  %v1578_v10 = vsel %vm6367_vm9, %v1576_v45, %v1577_v26  ;;  %v1168_v11 = vrot.slane %v1166_v49, 4  ;;  %v6705_v17 = vld [vmem:[#allocation2 + $0x54] sm:$0xf] }
  0x67   : > { %790 = vst [vmem:[#allocation2 + $0x60] sm:$0xf] %v789_v58  ;;  %v793_v9 = vsel %vm6408_vm13, %v548_v56, %v792_v50  ;;  %v1171_v12 = vrot.slane %v1169_v55, 5  ;;  %v5828_v13 = vpack.c.bf16 %v299_v57, %v299_v57  ;;  %v6695_v1 = vrot.slane %v1175_v59, 5  ;;  %v799_v50 = vld [vmem:[#allocation2 + $0x74] sm:$0x1] }
  0x68   : > { %1941 = vrot.lane.b32.xlu1 %v6617_v18, %s6248_s28  ;;  %2009 = vrot.lane.b32.xlu0 %v6580_v42, %s6247_s27  ;;  %v786_v42 = vsel %vm6408_vm13, %v531_v53, %v785_v52  ;;  %794 = vst [vmem:[#allocation2 + $0x68] sm:$0x1] %v793_v9  ;;  %v1181_v34 = vrot.slane %v1179_v62, 4  ;;  %v550_v15 = vshrl.u32 %v5827_v63, 16  ;;  %v6703_v16 = vcombine.low %v1575_v3, %v1578_v10 }
  0x69   : > { %787 = vst [vmem:[#allocation2 + $0x5c] sm:$0x1] %v786_v42  ;;  %v1172_v19 = vor.u32 %v1171_v12, %v1168_v11  ;;  %v558_v27 = vshrl.u32 %v5828_v13, 16  ;;  %v1185_v30 = vshll.u32 %v6699_v2, 16  ;;  %v553_v44 = vshll.u32 %v5827_v63, 16 }
  0x6a   : > { %v1182_v28 = vor.u32 %v1181_v34, %v6695_v1  ;;  %v552_v35 = vrot.slane %v550_v15, 7  ;;  %v5829_v36 = vpack.c.bf16 %v300_v38, %v300_v38  ;;  %v5830_v37 = vpack.c.bf16 %v301_v39, %v301_v39  ;;  %v302_v34 = vld [vmem:[%s6357_s23 + $0xa0] sm:$0xff] }
  0x6b   : > { %v1173_v41 = vrot.slane %v1172_v19, 4  ;;  %v560_v45 = vrot.slane %v558_v27, 7  ;;  %v561_v26 = vshll.u32 %v5828_v13, 16  ;;  %v1187_v47 = vrot.slane %v1185_v30, 5 }
  0x6c   : > { %2011 = vrot.lane.b32.xlu1 %v6621_v20, %s6247_s27  ;;  %2101 = vrot.lane.b32.xlu0 %v6611_v14, %s6251_s10  ;;  %v6707_v21 = vld [vmem:[#allocation2 + $0x58] sm:$0xf]  ;;  %v1183_v43 = vrot.slane %v1182_v28, 4  ;;  %v1190_v53 = vshrl.u32 %v6705_v17, 16  ;;  %v5582_v4 = vrot.slane %v6624_v22, 9  ;;  %v1193_v24 = vshll.u32 %v6705_v17, 16 }
  0x6d   : > { %v6711_v25 = vcombine.low %v6705_v17, %v6707_v21  ;;  %v6721_v6 = vld [vmem:[#allocation2 + $0x64] sm:$0xf]  ;;  %v555_v48 = vor.u32 %v553_v44, %v552_v35  ;;  %v1203_v0 = vshrl.u32 %v6707_v21, 16  ;;  %v567_v49 = vshrl.u32 %v5829_v36, 16 }
  0x6e   : > { %v6719_v33 = vld [vmem:[#allocation2 + $0x60] sm:$0xf]  ;;  %v575_v54 = vshrl.u32 %v5830_v37, 16  ;;  %v1178_v32 = vsel %vm6381_vm10, %v1173_v41, %v6695_v1  ;;  %v556_v42 = vrot.slane %v552_v35, 4  ;;  %v563_v22 = vor.u32 %v561_v26, %v560_v45  ;;  %v802_v1 = vld [vmem:[#allocation2 + $0x78] sm:$0xf] }
  0x6f   : > { %1009 = vst.msk [vmem:[#allocation3 + $0x38] sm:$0xff] %vm1001_vm14, %v6711_v25  ;;  %v6729_v52 = vcombine.low %v6719_v33, %v6721_v6  ;;  %v1188_v40 = vsel %vm6381_vm10, %v1183_v43, %v1187_v47  ;;  %v1584_v58 = vrot.slane %v6699_v2, 5  ;;  %v570_v59 = vshll.u32 %v5829_v36, 16  ;;  %v6077_v27 = vld [vmem:[%s9070_s1 + $0x10] ss:$0 sps:$4 sm:$0x33]  }
  0x70   : > { %2103 = vrot.lane.b32.xlu1 %v6680_v5, %s6251_s10  ;;  %2177 = vrot.lane.b32.xlu0 %v6617_v18, %s6249_s29  ;;  %v1195_v62 = vrot.slane %v1193_v24, 5  ;;  %v564_v56 = vsel %vm6402_vm12, %v556_v42, %v563_v22  ;;  %v796_v57 = vsel %vm6395_vm11, %v555_v48, %v795_v31  ;;  %v565_v7 = vrot.slane %v560_v45, 4  ;;  %v6757_v63 = vld [vmem:[#allocation2 + $0x5c] sm:$0x1]  ;;  %v806_v35 = vld [vmem:[#allocation2 + $0x80] sm:$0x1] }
  0x71   : > { %1010 = vst.msk [vmem:[#allocation3 + $0x40] sm:$0xff] %vm1001_vm14, %v6729_v52  ;;  %v1205_v9 = vrot.slane %v1203_v0, 4  ;;  %797 = vst [vmem:[#allocation2 + $0x6c] sm:$0xf] %v796_v57  ;;  %v569_v10 = vrot.slane %v567_v49, 7  ;;  %v577_v11 = vrot.slane %v575_v54, 7  ;;  %v6774_v38 = vcombine.low %v1178_v32, %v1188_v40  ;;  %6042 = vmatprep.subr.msk.bf16.mxu0 %vm2323_vm15, %v6077_v27 }
  0x72   : > { %798 = vst.msk [vmem:[#allocation2 + $0x70] sm:$0xf] %vm9075_vm0, %v564_v56  ;;  %v800_v12 = vsel %vm6408_vm13, %v565_v7, %v799_v50  ;;  %v578_v13 = vshll.u32 %v5830_v37, 16  ;;  %v1209_v28 = vshll.u32 %v6757_v63, 16  ;;  %v5831_v41 = vpack.c.bf16 %v302_v34, %v302_v34  ;;  %v306_v34 = vld [vmem:[%s6357_s23 + $0xc0] sm:$0xff] }
  0x73   : > { %801 = vst [vmem:[#allocation2 + $0x74] sm:$0x1] %v800_v12  ;;  %v572_v15 = vor.u32 %v570_v59, %v569_v10  ;;  %v573_v19 = vrot.slane %v569_v10, 4  ;;  %v582_v37 = vrot.slane %v577_v11, 4  ;;  %v5583_v31 = vrot.slane %v6705_v17, 9 }
  0x74   : > { %1461 = vrot.lane.b32.xlu1 %v6611_v14, %s6245_s25  ;;  %2179 = vrot.lane.b32.xlu0 %v6703_v16, %s6249_s29  ;;  %v1581_v14 = vrot.slane %v6626_v23, 5  ;;  %v1199_v23 = vshll.u32 %v6707_v21, 16  ;;  %v580_v30 = vor.u32 %v578_v13, %v577_v11  ;;  %v1211_v48 = vrot.slane %v1209_v28, 5  ;;  %v6841_v10 = vld [vmem:[#allocation2 + $0x68] sm:$0x1]  ;;  %v305_v13 = vld [vmem:[%s6357_s23 + $0xb8] sm:$0xff] }
  0x75   : > { %v803_v36 = vsel %vm6395_vm11, %v572_v15, %v802_v1  ;;  %v807_v26 = vsel %vm6408_vm13, %v582_v37, %v806_v35  ;;  %v584_v0 = vshrl.u32 %v5831_v41, 16  ;;  %v1591_v54 = vrot.slane %v6757_v63, 5  ;;  %v813_v35 = vld [vmem:[#allocation2 + $0x8c] sm:$0x1] }
  0x76   : > { %v1583_v55 = vrot.slane %v1581_v14, 4  ;;  %v6759_v3 = vrot.slane %v1199_v23, 5  ;;  %v1582_v2 = vsel %vm6367_vm9, %v5582_v4, %v1581_v14  ;;  %v1588_v14 = vrot.slane %v6707_v21, 5  ;;  %804 = vst [vmem:[#allocation2 + $0x78] sm:$0xf] %v803_v36 }
  0x77   : > { %v581_v45 = vsel %vm6402_vm12, %v573_v19, %v580_v30  ;;  %808 = vst [vmem:[#allocation2 + $0x80] sm:$0x1] %v807_v26  ;;  %v2325_v4 = vsel %vm2323_vm15, %v6077_v27, 0  ;;  %v586_v22 = vrot.slane %v584_v0, 7  ;;  %v587_v40 = vshll.u32 %v5831_v41, 16  ;;  %v307_v26 = vld [vmem:[%s6357_s23 + $0xc8] sm:$0xff] }
  0x78   : > { %1463 = vrot.lane.b32.xlu1 %v6680_v5, %s6245_s25  ;;  %1705 = vrot.lane.b32.xlu0 %v6617_v18, %s6244_s24  ;;  %v1192_v18 = vrot.slane %v1190_v53, 4  ;;  %v1206_v44 = vor.u32 %v1205_v9, %v6759_v3  ;;  %805 = vst.msk [vmem:[#allocation2 + $0x7c] sm:$0xf] %vm9075_vm0, %v581_v45  ;;  %v6794_v21 = vld [vmem:[#allocation2 + $0x6c] sm:$0xf]  ;;  %v1590_v49 = vrot.slane %v1588_v14, 4  ;;  %v5835_v36 = vpack.c.bf16 %v306_v34, %v306_v34 }
  0x79   : > { %v6796_v53 = vld [vmem:[#allocation2 + $0x70] sm:$0xf]  ;;  %5935 = vmatpush3.bf16.msra.mxu0 %v2325_v4  ;;  %v1227_v56 = vshrl.u32 %v6721_v6, 16  ;;  %v589_v11 = vor.u32 %v587_v40, %v586_v22  ;;  %v590_v27 = vrot.slane %v586_v22, 4  ;;  %v1233_v30 = vshll.u32 %v6841_v10, 16 }
  0x7a   : > { %v1196_v39 = vor.u32 %v1195_v62, %v1192_v18  ;;  %v1207_v24 = vrot.slane %v1206_v44, 4  ;;  %v6803_v23 = vcombine.low %v6794_v21, %v6796_v53  ;;  %v1592_v18 = vsel %vm6367_vm9, %v1590_v49, %v1591_v54  ;;  %v816_v54 = vld [vmem:[#allocation2 + $0x90] sm:$0xf] }
  0x7b   : > { %v1223_v62 = vshll.u32 %v6721_v6, 16  ;;  %v1229_v19 = vrot.slane %v1227_v56, 4  ;;  %v5834_v44 = vpack.c.bf16 %v305_v13, %v305_v13  ;;  %v1595_v0 = vrot.slane %v6721_v6, 5  ;;  %v823_v13 = vld [vmem:[#allocation2 + $0x9c] sm:$0xf] }
  0x7c   : > { %1707 = vrot.lane.b32.xlu1 %v6703_v16, %s6244_s24  ;;  %1775 = vrot.lane.b32.xlu0 %v6621_v20, %s6246_s26  ;;  %v1585_v20 = vsel %vm6367_vm9, %v1583_v55, %v1584_v58  ;;  %v1197_v47 = vrot.slane %v1196_v39, 4  ;;  %1011 = vst.msk [vmem:[#allocation3 + $0x48] sm:$0xff] %vm1001_vm14, %v6803_v23  ;;  %v1217_v55 = vshll.u32 %v6719_v33, 16  ;;  %v1212_v42 = vsel %vm6381_vm10, %v1207_v24, %v1211_v48 }
  0x7d   : > { %v6792_v43 = vcombine.low %v1582_v2, %v1585_v20  ;;  %v1589_v58 = vsel %vm6367_vm9, %v5583_v31, %v1588_v14  ;;  %v6824_v50 = vld [vmem:[#allocation2 + $0x78] sm:$0xf]  ;;  %v809_v20 = vld [vmem:[#allocation2 + $0x84] sm:$0xf]  ;;  %v6849_v15 = vrot.slane %v1223_v62, 5  ;;  %v609_v31 = vshrl.u32 %v5834_v44, 16 }
  0x7e   : > { %v1202_v17 = vsel %vm6381_vm10, %v1197_v47, %v6759_v3  ;;  %v1219_v9 = vrot.slane %v1217_v55, 5  ;;  %v6847_v2 = vcombine.low %v1589_v58, %v1592_v18  ;;  %v810_v41 = vsel %vm6395_vm11, %v589_v11, %v809_v20  ;;  %v820_v62 = vld [vmem:[#allocation2 + $0x98] sm:$0x1] }
  0x7f   : > { %v6826_v59 = vld [vmem:[#allocation2 + $0x7c] sm:$0xf]  ;;  %v6837_v63 = vcombine.low %v1202_v17, %v1212_v42  ;;  %811 = vst [vmem:[#allocation2 + $0x84] sm:$0xf] %v810_v41  ;;  %v1230_v47 = vor.u32 %v1229_v19, %v6849_v15  ;;  %v612_v49 = vshll.u32 %v5834_v44, 16  ;;  %v1235_v55 = vrot.slane %v1233_v30, 5 }
  0x80   : > { %1777 = vrot.lane.b32.xlu1 %v6630_v61, %s6246_s26  ;;  %1867 = vrot.lane.b32.xlu0 %v6680_v5, %s6250_s9  ;;  %v303_v5 = vld [vmem:[%s6357_s23 + $0xa8] sm:$0xff]  ;;  %v6833_v57 = vcombine.low %v6824_v50, %v6826_v59  ;;  %v618_v42 = vshrl.u32 %v5835_v36, 16  ;;  %v611_v40 = vrot.slane %v609_v31, 7  ;;  %v1247_v34 = vshll.u32 %v6796_v53, 16  ;;  %v6911_v31 = vld [vmem:[#allocation2 + $0x74] sm:$0x1] }
  0x81   : > { %v5832_v32 = vpack.c.bf16 %v303_v5, %v303_v5  ;;  %v1231_v18 = vrot.slane %v1230_v47, 4  ;;  %v1251_v20 = vshrl.u32 %v6796_v53, 16  ;;  %vm1745_vm2 = vcmask 97344  }
  0x82   : > { %1012 = vst.msk [vmem:[#allocation3 + $0x50] sm:$0xff] %vm1001_vm14, %v6833_v57  ;;  %v620_v56 = vrot.slane %v618_v42, 7  ;;  %v616_v11 = vrot.slane %v611_v40, 4  ;;  %vm1815_vm3 = vcmask 130144   ;;  %vm9079_vm4 = vcmask 162944  }
  0x83   : > { %v592_v7 = vshrl.u32 %v5832_v32, 16  ;;  %v595_v12 = vshll.u32 %v5832_v32, 16  ;;  %v5836_v32 = vpack.c.bf16 %v307_v26, %v307_v26  ;;  %vm9078_vm5 = vcmask 195744  }
  0x84   : > { %1869 = vrot.lane.b32.xlu1 %v6774_v38, %s6250_s9  ;;  %1943 = vrot.lane.b32.xlu0 %v6703_v16, %s6248_s28  ;;  %v1214_v16 = vshrl.u32 %v6719_v33, 16  ;;  %v624_v30 = vrot.slane %v620_v56, 4  ;;  %vm9076_vm6 = vcmask 228544   ;;  %vm9077_vm7 = vcmask 261344  }
  0x85   : > { %v594_v39 = vrot.slane %v592_v7, 7  ;;  %v626_v58 = vshrl.u32 %v5836_v32, 16  ;;  %v629_v7 = vshll.u32 %v5836_v32, 16  ;;  %vm2221_vm8 = vcmask 294144  }
  0x86   : > { %v1216_v3 = vrot.slane %v1214_v16, 4  ;;  %v6884_v44 = vld [vmem:[#allocation2 + $0x84] sm:$0xf] }
  0x87   : > { %v597_v37 = vor.u32 %v595_v12, %v594_v39  ;;  %v599_v14 = vrot.slane %v594_v39, 4  ;;  %v628_v12 = vrot.slane %v626_v58, 7  ;;  %v1598_v39 = vrot.slane %v6841_v10, 5 }
  0x88   : > { %1945 = vrot.lane.b32.xlu1 %v6792_v43, %s6248_s28  ;;  %2013 = vrot.lane.b32.xlu0 %v6630_v61, %s6247_s27  ;;  %v304_v61 = vld [vmem:[%s6357_s23 + $0xb0] sm:$0xff]  ;;  %v1220_v28 = vor.u32 %v1219_v9, %v1216_v3  ;;  %v1238_v3 = vshrl.u32 %v6794_v21, 16  ;;  %v614_v9 = vor.u32 %v612_v49, %v611_v40  ;;  %v1257_v40 = vshll.u32 %v6911_v31, 16 }
  0x89   : > { %v5833_v1 = vpack.c.bf16 %v304_v61, %v304_v61  ;;  %v598_v4 = vsel %vm6402_vm12, %v590_v27, %v597_v37  ;;  %v814_v24 = vsel %vm6408_vm13, %v599_v14, %v813_v35  ;;  %v5584_v27 = vrot.slane %v6719_v33, 9  ;;  %v827_v35 = vld [vmem:[#allocation2 + $0xa4] sm:$0x1] }
  0x8a   : > { %812 = vst.msk [vmem:[#allocation2 + $0x88] sm:$0xf] %vm9075_vm0, %v598_v4  ;;  %815 = vst [vmem:[#allocation2 + $0x8c] sm:$0x1] %v814_v24  ;;  %v1221_v16 = vrot.slane %v1220_v28, 4  ;;  %v631_v37 = vor.u32 %v629_v7, %v628_v12  ;;  %v633_v10 = vrot.slane %v628_v12, 4  ;;  %v1236_v14 = vsel %vm6381_vm10, %v1231_v18, %v1235_v55 }
  0x8b   : > { %v601_v45 = vshrl.u32 %v5833_v1, 16  ;;  %v604_v5 = vshll.u32 %v5833_v1, 16  ;;  %v1241_v1 = vshll.u32 %v6794_v21, 16  ;;  %v6908_v4 = vrot.slane %v1247_v34, 5  ;;  %v308_v24 = vld [vmem:[%s6357_s23 + $0xd0] sm:$0xff] }
  0x8c   : > { %2015 = vrot.lane.b32.xlu1 %v6711_v25, %s6247_s27  ;;  %2105 = vrot.lane.b32.xlu0 %v6774_v38, %s6251_s10  ;;  %v1226_v41 = vsel %vm6381_vm10, %v1221_v16, %v6849_v15  ;;  %v1253_v15 = vrot.slane %v1251_v20, 4  ;;  %v632_v49 = vsel %vm6402_vm12, %v624_v30, %v631_v37  ;;  %v1596_v16 = vsel %vm6367_vm9, %v5584_v27, %v1595_v0 }
  0x8d   : > { %v603_v48 = vrot.slane %v601_v45, 7  ;;  %v1597_v45 = vrot.slane %v1595_v0, 4  ;;  %v1243_v47 = vrot.slane %v1241_v1, 5  ;;  %826 = vst.msk [vmem:[#allocation2 + $0xa0] sm:$0xf] %vm9075_vm0, %v632_v49  ;;  %v6922_v32 = vcombine.low %v1226_v41, %v1236_v14  ;;  %v309_v0 = vld [vmem:[%s6357_s23 + $0xd8] sm:$0xff] }
  0x8e   : > { %v5837_v55 = vpack.c.bf16 %v308_v24, %v308_v24  ;;  %v1602_v58 = vrot.slane %v6796_v53, 5  ;;  %v1259_v7 = vrot.slane %v1257_v40, 5  ;;  %v5838_v53 = vpack.c.bf16 %v309_v0, %v309_v0  ;;  %v311_v14 = vld [vmem:[%s6357_s23 + $0xe8] sm:$0xff]  ;;  %v312_v40 = vld [vmem:[%s6357_s23 + $0xf0] sm:$0xff] }
  0x8f   : > { %v606_v17 = vor.u32 %v604_v5, %v603_v48  ;;  %v607_v22 = vrot.slane %v603_v48, 4  ;;  %v1240_v5 = vrot.slane %v1238_v3, 4  ;;  %v1262_v1 = vshrl.u32 %v6824_v50, 16 }
  0x90   : > { %2107 = vrot.lane.b32.xlu1 %v6837_v63, %s6251_s10  ;;  %2181 = vrot.lane.b32.xlu0 %v6792_v43, %s6249_s29  ;;  %v1604_v12 = vrot.slane %v1602_v58, 4  ;;  %v638_v20 = vshll.u32 %v5837_v55, 16  ;;  %v1271_v30 = vshll.u32 %v6826_v59, 16  ;;  %v646_v49 = vshll.u32 %v5838_v53, 16 }
  0x91   : > { %v817_v61 = vsel %vm6395_vm11, %v606_v17, %v816_v54  ;;  %v615_v28 = vsel %vm6402_vm12, %v607_v22, %v614_v9  ;;  %v828_v54 = vsel %vm6408_vm13, %v633_v10, %v827_v35  ;;  %v1599_v17 = vsel %vm6367_vm9, %v1597_v45, %v1598_v39 }
  0x92   : > { %818 = vst [vmem:[#allocation2 + $0x90] sm:$0xf] %v817_v61  ;;  %819 = vst.msk [vmem:[#allocation2 + $0x94] sm:$0xf] %vm9075_vm0, %v615_v28  ;;  %v1244_v42 = vor.u32 %v1243_v47, %v1240_v5  ;;  %v1254_v22 = vor.u32 %v1253_v15, %v6908_v4  ;;  %v6948_v18 = vcombine.low %v1596_v16, %v1599_v17  ;;  %v635_v61 = vshrl.u32 %v5837_v55, 16 }
  0x93   : > { %829 = vst [vmem:[#allocation2 + $0xa4] sm:$0x1] %v828_v54  ;;  %v1265_v39 = vshll.u32 %v6824_v50, 16  ;;  %v643_v28 = vshrl.u32 %v5838_v53, 16  ;;  %v6994_v47 = vld [vmem:[#allocation2 + $0x80] sm:$0x1] }
  0x94   : > { %1465 = vrot.lane.b32.xlu1 %v6774_v38, %s6245_s25  ;;  %2183 = vrot.lane.b32.xlu0 %v6847_v2, %s6249_s29  ;;  %v621_v38 = vshll.u32 %v5835_v36, 16  ;;  %v6886_v36 = vld [vmem:[#allocation2 + $0x88] sm:$0xf]  ;;  %v6956_v9 = vld [vmem:[#allocation2 + $0xa0] sm:$0xf]  ;;  %v637_v34 = vrot.slane %v635_v61, 7 }
  0x95   : > { %v6904_v26 = vcombine.low %v6884_v44, %v6886_v36  ;;  %v1267_v15 = vrot.slane %v1265_v39, 5  ;;  %v645_v24 = vrot.slane %v643_v28, 7  ;;  %v1609_v39 = vrot.slane %v6826_v59, 5 }
  0x96   : > { %v623_v19 = vor.u32 %v621_v38, %v620_v56  ;;  %v1255_v56 = vrot.slane %v1254_v22, 4  ;;  %v640_v41 = vor.u32 %v638_v20, %v637_v34  ;;  %v837_v20 = vld [vmem:[#allocation2 + $0xb4] sm:$0xf] }
  0x97   : > { %1013 = vst.msk [vmem:[#allocation3 + $0x58] sm:$0xff] %vm1001_vm14, %v6904_v26  ;;  %v650_v17 = vrot.slane %v645_v24, 4  ;;  %v648_v61 = vor.u32 %v646_v49, %v645_v24 }
  0x98   : > { %1467 = vrot.lane.b32.xlu1 %v6837_v63, %s6245_s25  ;;  %1709 = vrot.lane.b32.xlu0 %v6792_v43, %s6244_s24  ;;  %v821_v43 = vsel %vm6408_vm13, %v616_v11, %v820_v62  ;;  %v824_v33 = vsel %vm6395_vm11, %v623_v19, %v823_v13  ;;  %v1245_v62 = vrot.slane %v1244_v42, 4  ;;  %v5585_v11 = vrot.slane %v6794_v21, 9  ;;  %v310_v19 = vld [vmem:[%s6357_s23 + $0xe0] sm:$0xff] }
  0x99   : > { %822 = vst [vmem:[#allocation2 + $0x98] sm:$0x1] %v821_v43  ;;  %825 = vst [vmem:[#allocation2 + $0x9c] sm:$0xf] %v824_v33  ;;  %v6936_v6 = vld [vmem:[#allocation2 + $0x90] sm:$0xf]  ;;  %v1260_v27 = vsel %vm6381_vm10, %v1255_v56, %v1259_v7  ;;  %v5839_v37 = vpack.c.bf16 %v310_v19, %v310_v19  ;;  %v5840_v42 = vpack.c.bf16 %v311_v14, %v311_v14 }
  0x9a   : > { %v6938_v38 = vld [vmem:[#allocation2 + $0x94] sm:$0xf]  ;;  %v1250_v21 = vsel %vm6381_vm10, %v1245_v62, %v6908_v4  ;;  %v1275_v43 = vshrl.u32 %v6826_v59, 16  ;;  %v1603_v10 = vsel %vm6367_vm9, %v5585_v11, %v1602_v58  ;;  %v1264_v4 = vrot.slane %v1262_v1, 4  ;;  %v313_v62 = vld [vmem:[%s6357_s23 + $0xf8] sm:$0xff] }
  0x9b   : > { %v6983_v33 = vcombine.low %v1250_v21, %v1260_v27  ;;  %v652_v22 = vshrl.u32 %v5839_v37, 16  ;;  %v1281_v58 = vshll.u32 %v6994_v47, 16  ;;  %v655_v11 = vshll.u32 %v5839_v37, 16  ;;  %v841_v14 = vld [vmem:[#allocation2 + $0xbc] sm:$0x1] }
  0x9c   : > { %1711 = vrot.lane.b32.xlu1 %v6847_v2, %s6244_s24  ;;  %1779 = vrot.lane.b32.xlu0 %v6711_v25, %s6246_s26  ;;  %v1277_v55 = vrot.slane %v1275_v43, 4  ;;  %v1268_v56 = vor.u32 %v1267_v15, %v1264_v4  ;;  %v660_v1 = vshrl.u32 %v5840_v42, 16  ;;  %v5841_v19 = vpack.c.bf16 %v312_v40, %v312_v40 }
  0x9d   : > { %v654_v53 = vrot.slane %v652_v22, 7  ;;  %v844_v22 = vld [vmem:[#allocation2 + $0xc0] sm:$0xf] }
  0x9e   : > { %v662_v43 = vrot.slane %v660_v1, 7  ;;  %v672_v37 = vshll.u32 %v5841_v19, 16  ;;  %v1269_v24 = vrot.slane %v1268_v56, 4  ;;  %v1295_v56 = vshll.u32 %v6886_v36, 16 }
  0x9f   : > { %v1698_v48 = vpop.permute.xlu1 %1697  ;;  %v657_v28 = vor.u32 %v655_v11, %v654_v53 }
  0xa0   : > { %v1454_v25 = vpop.permute.xlu0 %1453  ;;  %1781 = vrot.lane.b32.xlu1 %v6729_v52, %s6246_s26  ;;  %1871 = vrot.lane.b32.xlu0 %v6837_v63, %s6250_s9  ;;  %v6944_v63 = vcombine.low %v6936_v6, %v6938_v38  ;;  %v6954_v3 = vld [vmem:[#allocation2 + $0x9c] sm:$0xf]  ;;  %v667_v49 = vrot.slane %v662_v43, 4 }
  0xa1   : > { %1502 = vst.msk [vmem:[#allocation3] sm:$0xff] %vm1501_vm1, %v1454_v25  ;;  %v6961_v13 = vcombine.low %v6954_v3, %v6956_v9  ;;  %v834_v25 = vld [vmem:[#allocation2 + $0xb0] sm:$0x1] }
  0xa2   : > { %1746 = vst.msk [vmem:[#allocation3] sm:$0xff] %vm1745_vm2, %v1698_v48  ;;  %v6996_v48 = vrot.slane %v1271_v30, 5  ;;  %v835_v7 = vsel %vm6408_vm13, %v650_v17, %v834_v25  ;;  %v5842_v30 = vpack.c.bf16 %v313_v62, %v313_v62  ;;  %v1289_v17 = vshll.u32 %v6884_v44, 16 }
  0xa3   : > { %1014 = vst.msk [vmem:[#allocation3 + $0x60] sm:$0xff] %vm1001_vm14, %v6944_v63  ;;  %1015 = vst.msk [vmem:[#allocation3 + $0x68] sm:$0xff] %vm1001_vm14, %v6961_v13 }
  0xa4   : > { %1873 = vrot.lane.b32.xlu1 %v6922_v32, %s6250_s9  ;;  %1947 = vrot.lane.b32.xlu0 %v6847_v2, %s6248_s28  ;;  %v1605_v2 = vrot.slane %v6911_v31, 5  ;;  %v641_v31 = vrot.slane %v637_v34, 4  ;;  %836 = vst [vmem:[#allocation2 + $0xb0] sm:$0x1] %v835_v7  ;;  %v663_v34 = vshll.u32 %v5840_v42, 16  ;;  %v1278_v27 = vor.u32 %v1277_v55, %v6996_v48 }
  0xa5   : > { %v680_v4 = vshll.u32 %v5842_v30, 16  ;;  %v1286_v55 = vshrl.u32 %v6884_v44, 16  ;;  %v1299_v7 = vshrl.u32 %v6886_v36, 16 }
  0xa6   : > { %v1606_v5 = vsel %vm6367_vm9, %v1604_v12, %v1605_v2  ;;  %v649_v2 = vsel %vm6402_vm12, %v641_v31, %v648_v61  ;;  %v665_v31 = vor.u32 %v663_v34, %v662_v43  ;;  %v1279_v25 = vrot.slane %v1278_v27, 4 }
  0xa7   : > { %v7005_v0 = vcombine.low %v1603_v10, %v1606_v5  ;;  %833 = vst.msk [vmem:[#allocation2 + $0xac] sm:$0xf] %vm9075_vm0, %v649_v2  ;;  %v1283_v10 = vrot.slane %v1281_v58, 5  ;;  %v677_v5 = vshrl.u32 %v5842_v30, 16  ;;  %v842_v58 = vsel %vm6408_vm13, %v667_v49, %v841_v14  ;;  %v848_v2 = vld [vmem:[#allocation2 + $0xc8] sm:$0x1] }
  0xa8   : > { %1949 = vrot.lane.b32.xlu1 %v6948_v18, %s6248_s28  ;;  %2017 = vrot.lane.b32.xlu0 %v6729_v52, %s6247_s27  ;;  %v830_v52 = vld [vmem:[#allocation2 + $0xa8] sm:$0xf]  ;;  %843 = vst [vmem:[#allocation2 + $0xbc] sm:$0x1] %v842_v58  ;;  %v1612_v30 = vrot.slane %v6994_v47, 5  ;;  %v1274_v43 = vsel %vm6381_vm10, %v1269_v24, %v6996_v48  ;;  %v7070_v14 = vrot.slane %v1295_v56, 5 }
  0xa9   : > { %v831_v54 = vsel %vm6395_vm11, %v640_v41, %v830_v52  ;;  %v669_v52 = vshrl.u32 %v5841_v19, 16  ;;  %v838_v41 = vsel %vm6395_vm11, %v657_v28, %v837_v20  ;;  %v679_v42 = vrot.slane %v677_v5, 7 }
  0xaa   : > { %v1768_v35 = vpop.permute.xlu0 %1767  ;;  %832 = vst [vmem:[#allocation2 + $0xa8] sm:$0xf] %v831_v54  ;;  %839 = vst [vmem:[#allocation2 + $0xb4] sm:$0xf] %v838_v41  ;;  %v1611_v28 = vrot.slane %v1609_v39, 4  ;;  %v1291_v41 = vrot.slane %v1289_v17, 5 }
  0xab   : > { %1816 = vst.msk [vmem:[#allocation3] sm:$0xff] %vm1815_vm3, %v1768_v35  ;;  %v658_v35 = vrot.slane %v654_v53, 4  ;;  %v682_v53 = vor.u32 %v680_v4, %v679_v42  ;;  %v684_v11 = vrot.slane %v679_v42, 4  ;;  %v1301_v5 = vrot.slane %v1299_v7, 4 }
  0xac   : > { %2019 = vrot.lane.b32.xlu1 %v6803_v23, %s6247_s27  ;;  %2109 = vrot.lane.b32.xlu0 %v6922_v32, %s6251_s10  ;;  %v1616_v58 = vrot.slane %v6886_v36, 5  ;;  %v1313_v7 = vshll.u32 %v6936_v6, 16 }
  0xad   : > { %v6988_v45 = vpop.permute.xlu1 %1769  ;;  %v666_v40 = vsel %vm6402_vm12, %v658_v35, %v665_v31  ;;  %v849_v47 = vsel %vm6408_vm13, %v684_v11, %v848_v2  ;;  %v1613_v31 = vsel %vm6367_vm9, %v1611_v28, %v1612_v30 }
  0xae   : > { %v7000_v16 = vpop.permute.xlu0 %2005  ;;  %840 = vst.msk [vmem:[#allocation2 + $0xb8] sm:$0xf] %vm9075_vm0, %v666_v40  ;;  %v7045_v20 = vld [vmem:[#allocation2 + $0xac] sm:$0xf]  ;;  %850 = vst [vmem:[#allocation2 + $0xc8] sm:$0x1] %v849_v47 }
  0xaf   : > { %v1315_v28 = vrot.slane %v1313_v7, 5 }
  0xb0   : > { %2111 = vrot.lane.b32.xlu1 %v6983_v33, %s6251_s10  ;;  %2185 = vrot.lane.b32.xlu0 %v6948_v18, %s6249_s29 }
  0xb1   : > { %v7043_v34 = vld [vmem:[#allocation2 + $0xa8] sm:$0xf]  ;;  %v7088_v49 = vld [vmem:[#allocation2 + $0xb4] sm:$0xf] }
  0xb2   : > { %v7013_v12 = vpop.permute.xlu1 %2007  ;;  %v7017_v21 = vpop.permute.xlu0 %1935  ;;  %v7055_v35 = vcombine.low %v7043_v34, %v7045_v20 }
  0xb4   : > { %1469 = vrot.lane.b32.xlu1 %v6922_v32, %s6245_s25  ;;  %2187 = vrot.lane.b32.xlu0 %v7005_v0, %s6249_s29  ;;  %v671_v32 = vrot.slane %v669_v52, 7  ;;  %1016 = vst.msk [vmem:[#allocation3 + $0x70] sm:$0xff] %vm1001_vm14, %v7055_v35 }
  0xb6   : > { %v1700_v15 = vpop.permute.xlu1 %1699  ;;  %v7028_v54 = vpop.permute.xlu0 %2173  ;;  %v674_v61 = vor.u32 %v672_v37, %v671_v32  ;;  %v675_v62 = vrot.slane %v671_v32, 4  ;;  %v1288_v37 = vrot.slane %v1286_v55, 4  ;;  %v7090_v32 = vld [vmem:[#allocation2 + $0xb8] sm:$0xf]  ;;  %v1302_v55 = vor.u32 %v1301_v5, %v7070_v14 }
  0xb8   : > { %1471 = vrot.lane.b32.xlu1 %v6983_v33, %s6245_s25  ;;  %1713 = vrot.lane.b32.xlu0 %v6948_v18, %s6244_s24  ;;  %v845_v19 = vsel %vm6395_vm11, %v674_v61, %v844_v22  ;;  %v5586_v18 = vrot.slane %v6824_v50, 9  ;;  %v1284_v50 = vsel %vm6381_vm10, %v1279_v25, %v1283_v10  ;;  %v683_v52 = vsel %vm6402_vm12, %v675_v62, %v682_v53  ;;  %v7075_v10 = vld [vmem:[#allocation2 + $0x8c] sm:$0x1] }
  0xb9   : > { %846 = vst [vmem:[#allocation2 + $0xc0] sm:$0xf] %v845_v19  ;;  %847 = vst.msk [vmem:[#allocation2 + $0xc4] sm:$0xf] %vm9075_vm0, %v683_v52  ;;  %v1292_v25 = vor.u32 %v1291_v41, %v1288_v37  ;;  %v1305_v59 = vshll.u32 %v7075_v10, 16  ;;  %v1303_v42 = vrot.slane %v1302_v55, 4 }
  0xba   : > { %v1938_v1 = vpop.permute.xlu1 %1937  ;;  %v2176_v27 = vpop.permute.xlu0 %2175  ;;  %v1610_v24 = vsel %vm6367_vm9, %v5586_v18, %v1609_v39  ;;  %v7099_v39 = vcombine.low %v7088_v49, %v7090_v32  ;;  %v1618_v61 = vrot.slane %v1616_v58, 4  ;;  %v1619_v62 = vrot.slane %v7075_v10, 5 }
  0xbb   : > { %v1307_v22 = vrot.slane %v1305_v59, 5  ;;  %v1323_v53 = vshrl.u32 %v6938_v38, 16  ;;  %vm2274_vm0 = vcmask 293888   ;;  %v1337_v59 = vshll.u32 %v6954_v3, 16 }
  0xbc   : > { %1715 = vrot.lane.b32.xlu1 %v7005_v0, %s6244_s24  ;;  %1783 = vrot.lane.b32.xlu0 %v6803_v23, %s6246_s26  ;;  %v7080_v23 = vcombine.low %v1274_v43, %v1284_v50  ;;  %1017 = vst.msk [vmem:[#allocation3 + $0x78] sm:$0xff] %vm1001_vm14, %v7099_v39  ;;  %v889_v50 = vld [vmem:[#allocation2 + $0x98] sm:$0x1] }
  0xbd   : > { %v1325_v47 = vrot.slane %v1323_v53, 4  ;;  %v1329_v5 = vshll.u32 %v889_v50, 16 }
  0xbe   : > { %v1862_v48 = vpop.permute.xlu1 %1861  ;;  %v1456_v4 = vpop.permute.xlu0 %1455 }
  0xbf   : > { %1503 = vst.msk [vmem:[#allocation3 + $0x8] sm:$0xff] %vm1501_vm1, %v1456_v4 }
  0xc0   : > { %1785 = vrot.lane.b32.xlu1 %v6833_v57, %s6246_s26  ;;  %1747 = vst.msk [vmem:[#allocation3 + $0x8] sm:$0xff] %vm1745_vm2, %v1700_v15  ;;  %1875 = vrot.lane.b32.xlu0 %v6983_v33, %s6250_s9  ;;  %v7110_v33 = vcombine.low %v1610_v24, %v1613_v31  ;;  %v1331_v31 = vrot.slane %v1329_v5, 5  ;;  %v1361_v5 = vshll.u32 %v7043_v34, 16 }
  0xc1   : > { %1817 = vst.msk [vmem:[#allocation3 + $0x8] sm:$0xff] %vm1815_vm3, %v6988_v45  ;;  %v1293_v45 = vrot.slane %v1292_v25, 4  ;;  %v1334_v25 = vshrl.u32 %v6954_v3, 16 }
  0xc2   : > { %v2100_v17 = vpop.permute.xlu1 %2099  ;;  %1909 = vst.msk [vmem:[#allocation3 + $0x8] sm:$0xff] %vm9079_vm4, %v1862_v48  ;;  %v1860_v15 = vpop.permute.xlu0 %1859 }
  0xc3   : > { %1985 = vst.msk [vmem:[#allocation3 + $0x8] sm:$0xff] %vm9078_vm5, %v1938_v1  ;;  %v1298_v36 = vsel %vm6381_vm10, %v1293_v45, %v7070_v14  ;;  %v1620_v1 = vsel %vm6367_vm9, %v1618_v61, %v1619_v62 }
  0xc4   : > { %1877 = vrot.lane.b32.xlu1 %v7080_v23, %s6250_s9  ;;  %1908 = vst.msk [vmem:[#allocation3] sm:$0xff] %vm9079_vm4, %v1860_v15  ;;  %1951 = vrot.lane.b32.xlu0 %v7005_v0, %s6248_s28  ;;  %v1347_v15 = vshrl.u32 %v6956_v9, 16 }
  0xc5   : > { %2055 = vst.msk [vmem:[#allocation3 + $0x8] sm:$0xff] %vm9076_vm6, %v7013_v12 }
  0xc6   : > { %1984 = vst.msk [vmem:[#allocation3] sm:$0xff] %vm9078_vm5, %v7017_v21  ;;  %v1458_v40 = vpop.permute.xlu1 %1457  ;;  %v2098_v12 = vpop.permute.xlu0 %2097  ;;  %v5587_v21 = vrot.slane %v6884_v44, 9  ;;  %v1319_v44 = vshll.u32 %v6938_v38, 16 }
  0xc7   : > { %2147 = vst.msk [vmem:[#allocation3 + $0x8] sm:$0xff] %vm9077_vm7, %v2100_v17  ;;  %v1343_v17 = vshll.u32 %v6956_v9, 16 }
  0xc8   : > { %2054 = vst.msk [vmem:[#allocation3] sm:$0xff] %vm9076_vm6, %v7000_v16  ;;  %1953 = vrot.lane.b32.xlu1 %v7110_v33, %s6248_s28  ;;  %2021 = vrot.lane.b32.xlu0 %v6833_v57, %s6247_s27  ;;  %v1308_v16 = vsel %vm6381_vm10, %v1303_v42, %v1307_v22  ;;  %v1617_v2 = vsel %vm6367_vm9, %v5587_v21, %v1616_v58  ;;  %v1321_v52 = vrot.slane %v1319_v44, 5  ;;  %v5588_v22 = vrot.slane %v6936_v6, 9  ;;  %v892_v21 = vld [vmem:[#allocation2 + $0xa4] sm:$0x1] }
  0xc9   : > { %2223 = vst.msk [vmem:[#allocation3 + $0x8] sm:$0xff] %vm2221_vm8, %v2176_v27  ;;  %v7142_v57 = vcombine.low %v1298_v36, %v1308_v16  ;;  %v5603_v43 = vcombine.low %v1617_v2, %v1620_v1  ;;  %v1336_v58 = vrot.slane %v1334_v25, 4  ;;  %v1339_v36 = vrot.slane %v1337_v59, 5 }
  0xca   : > { %1504 = vst.msk [vmem:[#allocation3 + $0x10] sm:$0xff] %vm1501_vm1, %v1458_v40  ;;  %v1460_v0 = vpop.permute.xlu1 %1459  ;;  %v1702_v56 = vpop.permute.xlu0 %1701  ;;  %v1326_v48 = vor.u32 %v1325_v47, %v1321_v52  ;;  %v1626_v40 = vrot.slane %v889_v50, 5  ;;  %v1345_v16 = vrot.slane %v1343_v17, 5  ;;  %v1353_v44 = vshll.u32 %v892_v21, 16  ;;  %v895_v17 = vld [vmem:[#allocation2 + $0xb0] sm:$0x1] }
  0xcb   : > { %2146 = vst.msk [vmem:[#allocation3] sm:$0xff] %vm9077_vm7, %v2098_v12  ;;  %v1633_v47 = vrot.slane %v892_v21, 5 }
  0xcc   : > { %2222 = vst.msk [vmem:[#allocation3] sm:$0xff] %vm2221_vm8, %v7028_v54  ;;  %2023 = vrot.lane.b32.xlu1 %v6904_v26, %s6247_s27  ;;  %v1310_v54 = vshrl.u32 %v6936_v6, 16  ;;  %2113 = vrot.lane.b32.xlu0 %v7080_v23, %s6251_s10  ;;  %v1327_v55 = vrot.slane %v1326_v48, 4  ;;  %v1371_v48 = vshrl.u32 %v7045_v20, 16 }
  0xcd   : > { %1505 = vst.msk [vmem:[#allocation3 + $0x18] sm:$0xff] %vm1501_vm1, %v1460_v0  ;;  %v1349_v0 = vrot.slane %v1347_v15, 4 }
  0xce   : > { %1748 = vst.msk [vmem:[#allocation3 + $0x10] sm:$0xff] %vm1745_vm2, %v1702_v56  ;;  %v1704_v11 = vpop.permute.xlu1 %1703  ;;  %v1772_v19 = vpop.permute.xlu0 %1771  ;;  %v1312_v18 = vrot.slane %v1310_v54, 4  ;;  %v1332_v12 = vsel %vm6381_vm10, %v1327_v55, %v1331_v31  ;;  %v1340_v54 = vor.u32 %v1339_v36, %v1336_v58  ;;  %v1363_v55 = vrot.slane %v1361_v5, 5 }
  0xcf   : > { %1749 = vst.msk [vmem:[#allocation3 + $0x18] sm:$0xff] %vm1745_vm2, %v1704_v11  ;;  %v1350_v7 = vor.u32 %v1349_v0, %v1345_v16  ;;  %v1637_v0 = vrot.slane %v7045_v20, 5 }
  0xd0   : > { %2115 = vrot.lane.b32.xlu1 %v7142_v57, %s6251_s10  ;;  %1818 = vst.msk [vmem:[#allocation3 + $0x10] sm:$0xff] %vm1815_vm3, %v1772_v19  ;;  %2189 = vrot.lane.b32.xlu0 %v7110_v33, %s6249_s29  ;;  %v2239_v30 = vld [vmem:[#allocation3 + $0x8] sm:$0xff]  ;;  %v1316_v14 = vor.u32 %v1315_v28, %v1312_v18  ;;  %v1341_v1 = vrot.slane %v1340_v54, 4  ;;  %v1355_v19 = vrot.slane %v1353_v44, 5  ;;  %v1630_v18 = vrot.slane %v6956_v9, 5 }
  0xd1   : > { %v5589_v9 = vrot.slane %v6954_v3, 9  ;;  %v1367_v3 = vshll.u32 %v7045_v20, 16  ;;  %v1639_v44 = vrot.slane %v1637_v0, 4 }
  0xd2   : > { %v1774_v37 = vpop.permute.xlu1 %1773  ;;  %v1864_v41 = vpop.permute.xlu0 %1863  ;;  %v1317_v24 = vrot.slane %v1316_v14, 4  ;;  %v1358_v14 = vshrl.u32 %v7043_v34, 16 }
  0xd3   : > { %v2238_v27 = vld [vmem:[#allocation3] sm:$0xff]  ;;  %1819 = vst.msk [vmem:[#allocation3 + $0x18] sm:$0xff] %vm1815_vm3, %v1774_v37  ;;  %v1369_v15 = vrot.slane %v1367_v3, 5  ;;  %v1644_v3 = vrot.slane %v7090_v32, 5 }
  0xd4   : > { %5936 = vmatprep.mubr.msk.bf16.mxu0 %vm2274_vm0, %v2238_v27  ;;  %1473 = vrot.lane.b32.xlu1 %v7080_v23, %s6245_s25  ;;  %1910 = vst.msk [vmem:[#allocation3 + $0x10] sm:$0xff] %vm9079_vm4, %v1864_v41  ;;  %v1623_v23 = vrot.slane %v6938_v38, 5  ;;  %v1322_v38 = vsel %vm6381_vm10, %v1317_v24, %v1321_v52  ;;  %v1632_v52 = vrot.slane %v1630_v18, 4  ;;  %v1360_v25 = vrot.slane %v1358_v14, 4 }
  0xd5   : > { %5937 = vmatmul.mubr.msk.bf16.vlgmr.msra.gmra.mrb[0].mxu0 %vm2274_vm0, %v2239_v30  ;;  %2191 = vrot.lane.b32.xlu0 %v5603_v43, %s6249_s29  ;;  %v5572_v62 = vcombine.low %v1322_v38, %v1332_v12  ;;  %v1346_v30 = vsel %vm6381_vm10, %v1341_v1, %v1345_v16 }
  0xd6   : > { %v1866_v10 = vpop.permute.xlu1 %1865  ;;  %v1940_v4 = vpop.permute.xlu0 %1939  ;;  %v1634_v24 = vsel %vm6367_vm9, %v1632_v52, %v1633_v47  ;;  %v1364_v38 = vor.u32 %v1363_v55, %v1360_v25  ;;  %v7294_v55 = vld [vmem:[#allocation2 + $0xc4] sm:$0xf] }
  0xd7   : > { %1911 = vst.msk [vmem:[#allocation3 + $0x18] sm:$0xff] %vm9079_vm4, %v1866_v10 }
  0xd8   : > { %1475 = vrot.lane.b32.xlu1 %v7142_v57, %s6245_s25  ;;  %1986 = vst.msk [vmem:[#allocation3 + $0x10] sm:$0xff] %vm9078_vm5, %v1940_v4  ;;  %v1631_v4 = vsel %vm6367_vm9, %v5589_v9, %v1630_v18  ;;  %v1365_v36 = vrot.slane %v1364_v38, 4 }
  0xd9   : > { %1717 = vrot.lane.b32.xlu0 %v7110_v33, %s6244_s24  ;;  %v1625_v33 = vrot.slane %v1623_v23, 4  ;;  %v5605_v59 = vcombine.low %v1631_v4, %v1634_v24  ;;  %v7291_v24 = vld [vmem:[#allocation2 + $0xc0] sm:$0xf] }
  0xda   : > { %v1942_v45 = vpop.permute.xlu1 %1941  ;;  %v2010_v42 = vpop.permute.xlu0 %2009  ;;  %v1370_v20 = vsel %vm6381_vm10, %v1365_v36, %v1369_v15 }
  0xdb   : > { %1987 = vst.msk [vmem:[#allocation3 + $0x18] sm:$0xff] %vm9078_vm5, %v1942_v45  ;;  %v1627_v56 = vsel %vm6367_vm9, %v1625_v33, %v1626_v40  ;;  %v1373_v45 = vrot.slane %v1371_v48, 4  ;;  %v1377_v33 = vshll.u32 %v895_v17, 16 }
  0xdc   : > { %1719 = vrot.lane.b32.xlu1 %v5603_v43, %s6244_s24  ;;  %2056 = vst.msk [vmem:[#allocation3 + $0x10] sm:$0xff] %vm9076_vm6, %v2010_v42 }
  0xdd   : > { %1787 = vrot.lane.b32.xlu0 %v6904_v26, %s6246_s26  ;;  %v1624_v26 = vsel %vm6367_vm9, %v5588_v22, %v1623_v23  ;;  %v1374_v40 = vor.u32 %v1373_v45, %v1369_v15  ;;  %v1379_v16 = vrot.slane %v1377_v33, 5  ;;  %v1833_v15 = vshrl.u32 %v7291_v24, 16 }
  0xde   : > { %v2012_v6 = vpop.permute.xlu1 %2011  ;;  %v2102_v61 = vpop.permute.xlu0 %2101  ;;  %v7201_v2 = vcombine.low %v1624_v26, %v1627_v56  ;;  %v1395_v26 = vshrl.u32 %v7090_v32, 16  ;;  %v1842_v45 = vshll.u32 %v7294_v55, 16 }
  0xdf   : > { %2057 = vst.msk [vmem:[#allocation3 + $0x18] sm:$0xff] %vm9076_vm6, %v2012_v6  ;;  %v1382_v6 = vshrl.u32 %v7088_v49, 16  ;;  %v1375_v21 = vrot.slane %v1374_v40, 4 }
  0xe0   : > { %1789 = vrot.lane.b32.xlu1 %v6944_v63, %s6246_s26  ;;  %2148 = vst.msk [vmem:[#allocation3 + $0x10] sm:$0xff] %vm9077_vm7, %v2102_v61  ;;  %v1385_v61 = vshll.u32 %v7088_v49, 16 }
  0xe1   : > { %1879 = vrot.lane.b32.xlu0 %v7142_v57, %s6250_s9  ;;  %v1351_v57 = vrot.slane %v1350_v7, 4  ;;  %v5590_v7 = vrot.slane %v7043_v34, 9 }
  0xe2   : > { %v2104_v53 = vpop.permute.xlu1 %2103  ;;  %v2178_v11 = vpop.permute.xlu0 %2177  ;;  %v1387_v1 = vrot.slane %v1385_v61, 5  ;;  %v901_v61 = vld [vmem:[#allocation2 + $0xc8] sm:$0x1] }
  0xe3   : > { %2149 = vst.msk [vmem:[#allocation3 + $0x18] sm:$0xff] %vm9077_vm7, %v2104_v53  ;;  %v1640_v53 = vrot.slane %v895_v17, 5 }
  0xe4   : > { %1881 = vrot.lane.b32.xlu1 %v5572_v62, %s6250_s9  ;;  %2224 = vst.msk [vmem:[#allocation3 + $0x10] sm:$0xff] %vm2221_vm8, %v2178_v11  ;;  %v1384_v11 = vrot.slane %v1382_v6, 4 }
  0xe5   : > { %1955 = vrot.lane.b32.xlu0 %v5603_v43, %s6248_s28  ;;  %v1356_v43 = vsel %vm6381_vm10, %v1351_v57, %v1355_v19  ;;  %v1397_v19 = vrot.slane %v1395_v26, 4  ;;  %v7324_v26 = vld [vmem:[#allocation2 + $0xcc] sm:$0xf] }
  0xe6   : > { %v1462_v27 = vpop.permute.xlu1 %1461  ;;  %v2180_v28 = vpop.permute.xlu0 %2179 }
  0xe7   : > { %1506 = vst.msk [vmem:[#allocation3 + $0x20] sm:$0xff] %vm1501_vm1, %v1462_v27  ;;  %v898_v27 = vld [vmem:[#allocation2 + $0xbc] sm:$0x1] }
  0xe8   : > { %1957 = vrot.lane.b32.xlu1 %v7201_v2, %s6248_s28  ;;  %2225 = vst.msk [vmem:[#allocation3 + $0x18] sm:$0xff] %vm2221_vm8, %v2180_v28  ;;  %v1401_v9 = vshll.u32 %v898_v27, 16  ;;  %v1647_v25 = vrot.slane %v898_v27, 5 }
  0xe9   : > { %2025 = vrot.lane.b32.xlu0 %v6944_v63, %s6247_s27  ;;  %v7221_v63 = vcombine.low %v1346_v30, %v1356_v43  ;;  %v1641_v30 = vsel %vm6367_vm9, %v1639_v44, %v1640_v53  ;;  %v1388_v43 = vor.u32 %v1387_v1, %v1384_v11  ;;  %v2071_v11 = vshrl.u32 %v7324_v26, 16 }
  0xea   : > { %v1464_v50 = vpop.permute.xlu1 %1463  ;;  %v1706_v37 = vpop.permute.xlu0 %1705  ;;  %v1403_v14 = vrot.slane %v1401_v9, 5  ;;  %v1927_v1 = vrot.slane %v7294_v55, 5  ;;  %v5610_v9 = vrot.slane %v7291_v24, 9 }
  0xeb   : > { %1507 = vst.msk [vmem:[#allocation3 + $0x28] sm:$0xff] %vm1501_vm1, %v1464_v50  ;;  %v2240_v41 = vld [vmem:[#allocation3 + $0x10] sm:$0xff] }
  0xec   : > { %2027 = vrot.lane.b32.xlu1 %v6961_v13, %s6247_s27  ;;  %1750 = vst.msk [vmem:[#allocation3 + $0x20] sm:$0xff] %vm1745_vm2, %v1706_v37  ;;  %5940 = vmatprep.mubr.msk.bf16.mxu0 %vm2274_vm0, %v2240_v41  ;;  %v1389_v41 = vrot.slane %v1388_v43, 4 }
  0xed   : > { %2117 = vrot.lane.b32.xlu0 %v5572_v62, %s6251_s10 }
  0xee   : > { %v1708_v10 = vpop.permute.xlu1 %1707  ;;  %v1776_v31 = vpop.permute.xlu0 %1775 }
  0xef   : > { %1751 = vst.msk [vmem:[#allocation3 + $0x28] sm:$0xff] %vm1745_vm2, %v1708_v10  ;;  %v2241_v23 = vld [vmem:[#allocation3 + $0x18] sm:$0xff] }
  0xf0   : > { %2119 = vrot.lane.b32.xlu1 %v7221_v63, %s6251_s10  ;;  %1820 = vst.msk [vmem:[#allocation3 + $0x20] sm:$0xff] %vm1815_vm3, %v1776_v31  ;;  %5941 = vmatmul.mubr.msk.bf16.gmra.mrb[4].mxu0 %vm2274_vm0, %v2241_v23  ;;  %v5591_v31 = vrot.slane %v7088_v49, 9  ;;  %v1646_v23 = vrot.slane %v1644_v3, 4  ;;  %v1836_v49 = vshll.u32 %v7291_v24, 16 }
  0xf1   : > { %2193 = vrot.lane.b32.xlu0 %v7201_v2, %s6249_s29 }
  0xf2   : > { %v1778_v42 = vpop.permute.xlu1 %1777  ;;  %v1868_v22 = vpop.permute.xlu0 %1867  ;;  %v1645_v38 = vsel %vm6367_vm9, %v5591_v31, %v1644_v3  ;;  %v1648_v33 = vsel %vm6367_vm9, %v1646_v23, %v1647_v25  ;;  %v904_v3 = vld [vmem:[#allocation2 + $0xd4] sm:$0x1] }
  0xf3   : > { %1821 = vst.msk [vmem:[#allocation3 + $0x28] sm:$0xff] %vm1815_vm3, %v1778_v42  ;;  %v1846_v42 = vshrl.u32 %v7294_v55, 16  ;;  %v7319_v36 = vcombine.low %v1645_v38, %v1648_v33  ;;  %v2090_v31 = vshll.u32 %v904_v3, 16 }
  0xf4   : > { %1477 = vrot.lane.b32.xlu1 %v5572_v62, %s6245_s25  ;;  %1912 = vst.msk [vmem:[#allocation3 + $0x20] sm:$0xff] %vm9079_vm4, %v1868_v22  ;;  %v1391_v62 = vshll.u32 %v7090_v32, 16 }
  0xf5   : > { %2195 = vrot.lane.b32.xlu0 %v5605_v59, %s6249_s29  ;;  %v1848_v6 = vrot.slane %v1846_v42, 4 }
  0xf6   : > { %v1870_v58 = vpop.permute.xlu1 %1869  ;;  %v1944_v12 = vpop.permute.xlu0 %1943  ;;  %v1393_v57 = vrot.slane %v1391_v62, 5 }
  0xf7   : > { %1913 = vst.msk [vmem:[#allocation3 + $0x28] sm:$0xff] %vm9079_vm4, %v1870_v58 }
  0xf8   : > { %1479 = vrot.lane.b32.xlu1 %v7221_v63, %s6245_s25  ;;  %1988 = vst.msk [vmem:[#allocation3 + $0x20] sm:$0xff] %vm9078_vm5, %v1944_v12  ;;  %v1398_v50 = vor.u32 %v1397_v19, %v1393_v57  ;;  %v1394_v10 = vsel %vm6381_vm10, %v1389_v41, %v1393_v57  ;;  %v1835_v12 = vrot.slane %v1833_v15, 4 }
  0xf9   : > { %1721 = vrot.lane.b32.xlu0 %v7201_v2, %s6244_s24  ;;  %v1380_v2 = vsel %vm6381_vm10, %v1375_v21, %v1379_v16  ;;  %v1838_v16 = vrot.slane %v1836_v49, 5 }
  0xfa   : > { %v1946_v56 = vpop.permute.xlu1 %1945  ;;  %v2014_v54 = vpop.permute.xlu0 %2013  ;;  %v5574_v28 = vcombine.low %v1370_v20, %v1380_v2  ;;  %v7328_v20 = vld [vmem:[#allocation2 + $0xd0] sm:$0xf]  ;;  %v2074_v2 = vshll.u32 %v7324_v26, 16 }
  0xfb   : > { %1989 = vst.msk [vmem:[#allocation3 + $0x28] sm:$0xff] %vm9078_vm5, %v1946_v56  ;;  %v1839_v56 = vor.u32 %v1838_v16, %v1835_v12  ;;  %v2084_v57 = vshrl.u32 %v7328_v20, 16  ;;  %v2165_v15 = vrot.slane %v7328_v20, 5  ;;  %v5612_v42 = vcombine.low %v7324_v26, %v7328_v20 }
  0xfc   : > { %1723 = vrot.lane.b32.xlu1 %v5605_v59, %s6244_s24  ;;  %2058 = vst.msk [vmem:[#allocation3 + $0x20] sm:$0xff] %vm9076_vm6, %v2014_v54  ;;  %v2076_v43 = vrot.slane %v2074_v2, 5 }
  0xfd   : > { %1791 = vrot.lane.b32.xlu0 %v6961_v13, %s6246_s26  ;;  %v1638_v13 = vsel %vm6367_vm9, %v5590_v7, %v1637_v0  ;;  %v1844_v0 = vrot.slane %v1842_v45, 5  ;;  %v1852_v7 = vshll.u32 %v901_v61, 16  ;;  %v1840_v19 = vrot.slane %v1839_v56, 4 }
  0xfe   : > { %v2016_v34 = vpop.permute.xlu1 %2015  ;;  %v2106_v18 = vpop.permute.xlu0 %2105  ;;  %v7277_v37 = vcombine.low %v1638_v13, %v1641_v30  ;;  %v2073_v30 = vrot.slane %v2071_v11, 4 }
  0xff   : > { %2059 = vst.msk [vmem:[#allocation3 + $0x28] sm:$0xff] %vm9076_vm6, %v2016_v34  ;;  %v1849_v54 = vor.u32 %v1848_v6, %v1844_v0  ;;  %v1854_v27 = vrot.slane %v1852_v7, 5 }
 0x100   : > { %1793 = vrot.lane.b32.xlu1 %v7055_v35, %s6246_s26  ;;  %2150 = vst.msk [vmem:[#allocation3 + $0x20] sm:$0xff] %vm9077_vm7, %v2106_v18  ;;  %v2080_v18 = vshll.u32 %v7328_v20, 16 }
 0x101   : > { %1883 = vrot.lane.b32.xlu0 %v7221_v63, %s6250_s9  ;;  %v1399_v63 = vrot.slane %v1398_v50, 4  ;;  %v1850_v34 = vrot.slane %v1849_v54, 4  ;;  %v5608_v50 = vcombine.low %v7291_v24, %v7294_v55  ;;  %v2600_v54 = vld [vmem:[%s9071_s2] sm:$0x3] }
 0x102   : > { %v2108_v52 = vpop.permute.xlu1 %2107  ;;  %v2182_v47 = vpop.permute.xlu0 %2181  ;;  %6043 = vmatprep.subr.msk.bf16.mxu0 %vm2323_vm15, %v2600_v54  ;;  %v2657_v7 = vsel %vm2323_vm15, %v2600_v54, 0  ;;  %6044 = vmatprep.subr.msk.bf16.mxu1 %vm2323_vm15, %v2600_v54 }
 0x103   : > { %2151 = vst.msk [vmem:[#allocation3 + $0x28] sm:$0xff] %vm9077_vm7, %v2108_v52  ;;  %v1404_v4 = vsel %vm6381_vm10, %v1399_v63, %v1403_v14  ;;  %v1929_v52 = vrot.slane %v1927_v1, 4  ;;  %v1855_v41 = vsel %vm6381_vm10, %v1850_v34, %v1854_v27  ;;  %v2082_v63 = vrot.slane %v2080_v18, 5  ;;  %5969 = vmatpush3.bf16.msra.mxu0 %v2657_v7  ;;  %6041 = vmatpush3.bf16.msra.mxu1 %v2657_v7 }
 0x104   : > { %1885 = vrot.lane.b32.xlu1 %v5574_v28, %s6250_s9  ;;  %2226 = vst.msk [vmem:[#allocation3 + $0x20] sm:$0xff] %vm2221_vm8, %v2182_v47  ;;  %v1930_v47 = vrot.slane %v901_v61, 5  ;;  %v2086_v14 = vrot.slane %v2084_v57, 4 }
 0x105   : > { %1959 = vrot.lane.b32.xlu0 %v5605_v59, %s6248_s28 }
 0x106   : > { %v1466_v5 = vpop.permute.xlu1 %1465  ;;  %v2184_v48 = vpop.permute.xlu0 %2183  ;;  %v1931_v24 = vsel %vm6367_vm9, %v1929_v52, %v1930_v47 }
 0x107   : > { %1508 = vst.msk [vmem:[#allocation3 + $0x30] sm:$0xff] %vm1501_vm1, %v1466_v5 }
 0x108   : > { %1961 = vrot.lane.b32.xlu1 %v7277_v37, %s6248_s28  ;;  %2227 = vst.msk [vmem:[#allocation3 + $0x28] sm:$0xff] %vm2221_vm8, %v2184_v48 }
 0x109   : > { %2029 = vrot.lane.b32.xlu0 %v7055_v35, %s6247_s27  ;;  %v7301_v35 = vcombine.low %v1394_v10, %v1404_v4  ;;  %v2077_v4 = vor.u32 %v2076_v43, %v2073_v30 }
 0x10a   : > { %v1468_v32 = vpop.permute.xlu1 %1467  ;;  %v1710_v59 = vpop.permute.xlu0 %1709 }
 0x10b   : > { %1509 = vst.msk [vmem:[#allocation3 + $0x38] sm:$0xff] %vm1501_vm1, %v1468_v32  ;;  %v2242_v17 = vld [vmem:[#allocation3 + $0x20] sm:$0xff]  ;;  %v2087_v32 = vor.u32 %v2086_v14, %v2082_v63 }
 0x10c   : > { %2031 = vrot.lane.b32.xlu1 %v7099_v39, %s6247_s27  ;;  %1752 = vst.msk [vmem:[#allocation3 + $0x30] sm:$0xff] %vm1745_vm2, %v1710_v59  ;;  %5944 = vmatprep.mubr.msk.bf16.mxu0 %vm2274_vm0, %v2242_v17  ;;  %v2078_v59 = vrot.slane %v2077_v4, 4 }
 0x10d   : > { %2121 = vrot.lane.b32.xlu0 %v5574_v28, %s6251_s10  ;;  %v2088_v17 = vrot.slane %v2087_v32, 4 }
 0x10e   : > { %v1712_v22 = vpop.permute.xlu1 %1711  ;;  %v1780_v40 = vpop.permute.xlu0 %1779  ;;  %v2083_v38 = vsel %vm6381_vm10, %v2078_v59, %v2082_v63 }
 0x10f   : > { %1753 = vst.msk [vmem:[#allocation3 + $0x38] sm:$0xff] %vm1745_vm2, %v1712_v22  ;;  %v2243_v58 = vld [vmem:[#allocation3 + $0x28] sm:$0xff]  ;;  %v5614_v22 = vrot.slane %v7324_v26, 9 }
 0x110   : > { %2123 = vrot.lane.b32.xlu1 %v7301_v35, %s6251_s10  ;;  %1822 = vst.msk [vmem:[#allocation3 + $0x30] sm:$0xff] %vm1815_vm3, %v1780_v40  ;;  %5945 = vmatmul.mubr.msk.bf16.gmra.mrb[8].mxu0 %vm2274_vm0, %v2243_v58  ;;  %v2167_v40 = vrot.slane %v2165_v15, 4  ;;  %v2168_v58 = vrot.slane %v904_v3, 5 }
 0x111   : > { %2197 = vrot.lane.b32.xlu0 %v7277_v37, %s6249_s29  ;;  %v2166_v6 = vsel %vm6367_vm9, %v5614_v22, %v2165_v15 }
 0x112   : > { %v1782_v21 = vpop.permute.xlu1 %1781  ;;  %v1872_v62 = vpop.permute.xlu0 %1871 }
 0x113   : > { %1823 = vst.msk [vmem:[#allocation3 + $0x38] sm:$0xff] %vm1815_vm3, %v1782_v21  ;;  %v2169_v21 = vsel %vm6367_vm9, %v2167_v40, %v2168_v58 }
 0x114   : > { %1481 = vrot.lane.b32.xlu1 %v5574_v28, %s6245_s25  ;;  %1914 = vst.msk [vmem:[#allocation3 + $0x30] sm:$0xff] %vm9079_vm4, %v1872_v62  ;;  %v5615_v56 = vcombine.low %v2166_v6, %v2169_v21 }
 0x115   : > { %2199 = vrot.lane.b32.xlu0 %v7319_v36, %s6249_s29 }
 0x116   : > { %v1874_v44 = vpop.permute.xlu1 %1873  ;;  %v1948_v53 = vpop.permute.xlu0 %1947 }
 0x117   : > { %1915 = vst.msk [vmem:[#allocation3 + $0x38] sm:$0xff] %vm9079_vm4, %v1874_v44 }
 0x118   : > { %1483 = vrot.lane.b32.xlu1 %v7301_v35, %s6245_s25  ;;  %1990 = vst.msk [vmem:[#allocation3 + $0x30] sm:$0xff] %vm9078_vm5, %v1948_v53 }
 0x119   : > { %1725 = vrot.lane.b32.xlu0 %v7277_v37, %s6244_s24  ;;  %v1845_v37 = vsel %vm6381_vm10, %v1840_v19, %v1844_v0 }
 0x11a   : > { %v1950_v28 = vpop.permute.xlu1 %1949  ;;  %v2018_v13 = vpop.permute.xlu0 %2017  ;;  %v5609_v10 = vcombine.low %v1845_v37, %v1855_v41 }
 0x11b   : > { %1991 = vst.msk [vmem:[#allocation3 + $0x38] sm:$0xff] %vm9078_vm5, %v1950_v28 }
 0x11c   : > { %1727 = vrot.lane.b32.xlu1 %v7319_v36, %s6244_s24  ;;  %2060 = vst.msk [vmem:[#allocation3 + $0x30] sm:$0xff] %vm9076_vm6, %v2018_v13 }
 0x11d   : > { %1795 = vrot.lane.b32.xlu0 %v7099_v39, %s6246_s26  ;;  %v1928_v39 = vsel %vm6367_vm9, %v5610_v9, %v1927_v1 }
 0x11e   : > { %v2020_v5 = vpop.permute.xlu1 %2019  ;;  %v2110_v48 = vpop.permute.xlu0 %2109  ;;  %v5611_v55 = vcombine.low %v1928_v39, %v1931_v24 }
 0x11f   : > { %2061 = vst.msk [vmem:[#allocation3 + $0x38] sm:$0xff] %vm9076_vm6, %v2020_v5 }
 0x120   : > { %1797 = vrot.lane.b32.xlu1 %v5608_v50, %s6246_s26  ;;  %2152 = vst.msk [vmem:[#allocation3 + $0x30] sm:$0xff] %vm9077_vm7, %v2110_v48 }
 0x121   : > { %1887 = vrot.lane.b32.xlu0 %v7301_v35, %s6250_s9  ;;  %v2092_v35 = vrot.slane %v2090_v31, 5 }
 0x122   : > { %v2112_v23 = vpop.permute.xlu1 %2111  ;;  %v2186_v25 = vpop.permute.xlu0 %2185 }
 0x123   : > { %2153 = vst.msk [vmem:[#allocation3 + $0x38] sm:$0xff] %vm9077_vm7, %v2112_v23  ;;  %v2093_v33 = vsel %vm6381_vm10, %v2088_v17, %v2092_v35 }
 0x124   : > { %1889 = vrot.lane.b32.xlu1 %v5609_v10, %s6250_s9  ;;  %2228 = vst.msk [vmem:[#allocation3 + $0x30] sm:$0xff] %vm2221_vm8, %v2186_v25  ;;  %v5613_v0 = vcombine.low %v2083_v38, %v2093_v33 }
 0x125   : > { %1963 = vrot.lane.b32.xlu0 %v7319_v36, %s6248_s28 }
 0x126   : > { %v1470_v49 = vpop.permute.xlu1 %1469  ;;  %v2188_v45 = vpop.permute.xlu0 %2187 }
 0x127   : > { %1510 = vst.msk [vmem:[#allocation3 + $0x40] sm:$0xff] %vm1501_vm1, %v1470_v49 }
 0x128   : > { %1965 = vrot.lane.b32.xlu1 %v5611_v55, %s6248_s28  ;;  %2229 = vst.msk [vmem:[#allocation3 + $0x38] sm:$0xff] %vm2221_vm8, %v2188_v45 }
 0x129   : > { %2033 = vrot.lane.b32.xlu0 %v5608_v50, %s6247_s27 }
 0x12a   : > { %v1472_v12 = vpop.permute.xlu1 %1471  ;;  %v1714_v36 = vpop.permute.xlu0 %1713 }
 0x12b   : > { %1511 = vst.msk [vmem:[#allocation3 + $0x48] sm:$0xff] %vm1501_vm1, %v1472_v12  ;;  %v2244_v16 = vld [vmem:[#allocation3 + $0x30] sm:$0xff] }
 0x12c   : > { %2035 = vrot.lane.b32.xlu1 %v5612_v42, %s6247_s27  ;;  %1754 = vst.msk [vmem:[#allocation3 + $0x40] sm:$0xff] %vm1745_vm2, %v1714_v36  ;;  %5948 = vmatprep.mubr.msk.bf16.mxu0 %vm2274_vm0, %v2244_v16 }
 0x12d   : > { %2125 = vrot.lane.b32.xlu0 %v5609_v10, %s6251_s10 }
 0x12e   : > { %v1716_v61 = vpop.permute.xlu1 %1715  ;;  %v1784_v62 = vpop.permute.xlu0 %1783 }
 0x12f   : > { %1755 = vst.msk [vmem:[#allocation3 + $0x48] sm:$0xff] %vm1745_vm2, %v1716_v61  ;;  %v2245_v26 = vld [vmem:[#allocation3 + $0x38] sm:$0xff] }
 0x130   : > { %2127 = vrot.lane.b32.xlu1 %v5613_v0, %s6251_s10  ;;  %1824 = vst.msk [vmem:[#allocation3 + $0x40] sm:$0xff] %vm1815_vm3, %v1784_v62  ;;  %5949 = vmatmul.mubr.msk.bf16.gmra.mrb[12].mxu0 %vm2274_vm0, %v2245_v26 }
 0x131   : > { %2201 = vrot.lane.b32.xlu0 %v5611_v55, %s6249_s29 }
 0x132   : > { %v1786_v20 = vpop.permute.xlu1 %1785  ;;  %v1876_v44 = vpop.permute.xlu0 %1875 }
 0x133   : > { %1825 = vst.msk [vmem:[#allocation3 + $0x48] sm:$0xff] %vm1815_vm3, %v1786_v20 }
 0x134   : > { %2203 = vrot.lane.b32.xlu1 %v5615_v56, %s6249_s29  ;;  %1916 = vst.msk [vmem:[#allocation3 + $0x40] sm:$0xff] %vm9079_vm4, %v1876_v44 }
 0x136   : > { %v1878_v53 = vpop.permute.xlu1 %1877  ;;  %v1952_v11 = vpop.permute.xlu0 %1951 }
 0x137   : > { %1917 = vst.msk [vmem:[#allocation3 + $0x48] sm:$0xff] %vm9079_vm4, %v1878_v53 }
 0x138   : > { %1992 = vst.msk [vmem:[#allocation3 + $0x40] sm:$0xff] %vm9078_vm5, %v1952_v11 }
 0x13a   : > { %v1954_v2 = vpop.permute.xlu1 %1953  ;;  %v2022_v1 = vpop.permute.xlu0 %2021 }
 0x13b   : > { %1993 = vst.msk [vmem:[#allocation3 + $0x48] sm:$0xff] %vm9078_vm5, %v1954_v2 }
 0x13c   : > { %2062 = vst.msk [vmem:[#allocation3 + $0x40] sm:$0xff] %vm9076_vm6, %v2022_v1 }
 0x13e   : > { %v2024_v57 = vpop.permute.xlu1 %2023  ;;  %v2114_v19 = vpop.permute.xlu0 %2113 }
 0x13f   : > { %2063 = vst.msk [vmem:[#allocation3 + $0x48] sm:$0xff] %vm9076_vm6, %v2024_v57 }
 0x140   : > { %2154 = vst.msk [vmem:[#allocation3 + $0x40] sm:$0xff] %vm9077_vm7, %v2114_v19 }
 0x142   : > { %v2116_v34 = vpop.permute.xlu1 %2115  ;;  %v2190_v27 = vpop.permute.xlu0 %2189 }
 0x143   : > { %2155 = vst.msk [vmem:[#allocation3 + $0x48] sm:$0xff] %vm9077_vm7, %v2116_v34 }
 0x144   : > { %2230 = vst.msk [vmem:[#allocation3 + $0x40] sm:$0xff] %vm2221_vm8, %v2190_v27 }
 0x146   : > { %v1474_v18 = vpop.permute.xlu1 %1473 }
 0x147   : > { %1512 = vst.msk [vmem:[#allocation3 + $0x50] sm:$0xff] %vm1501_vm1, %v1474_v18  ;;  %v2192_v28 = vpop.permute.xlu0 %2191 }
 0x148   : > { %2231 = vst.msk [vmem:[#allocation3 + $0x48] sm:$0xff] %vm2221_vm8, %v2192_v28 }
 0x14a   : > { %v1476_v13 = vpop.permute.xlu1 %1475 }
 0x14b   : > { %1513 = vst.msk [vmem:[#allocation3 + $0x58] sm:$0xff] %vm1501_vm1, %v1476_v13  ;;  %v1718_v30 = vpop.permute.xlu0 %1717  ;;  %v2246_v43 = vld [vmem:[#allocation3 + $0x40] sm:$0xff] }
 0x14c   : > { %1756 = vst.msk [vmem:[#allocation3 + $0x50] sm:$0xff] %vm1745_vm2, %v1718_v30  ;;  %5952 = vmatprep.mubr.msk.bf16.mxu0 %vm2274_vm0, %v2246_v43 }
 0x14e   : > { %v1720_v50 = vpop.permute.xlu1 %1719 }
 0x14f   : > { %1757 = vst.msk [vmem:[#allocation3 + $0x58] sm:$0xff] %vm1745_vm2, %v1720_v50  ;;  %v1788_v9 = vpop.permute.xlu0 %1787  ;;  %v2247_v52 = vld [vmem:[#allocation3 + $0x48] sm:$0xff] }
 0x150   : > { %1826 = vst.msk [vmem:[#allocation3 + $0x50] sm:$0xff] %vm1815_vm3, %v1788_v9  ;;  %5953 = vmatmul.mubr.msk.bf16.gmra.mrb[16].mxu0 %vm2274_vm0, %v2247_v52 }
 0x152   : > { %v1790_v47 = vpop.permute.xlu1 %1789 }
 0x153   : > { %1827 = vst.msk [vmem:[#allocation3 + $0x58] sm:$0xff] %vm1815_vm3, %v1790_v47  ;;  %v1880_v37 = vpop.permute.xlu0 %1879 }
 0x154   : > { %1918 = vst.msk [vmem:[#allocation3 + $0x50] sm:$0xff] %vm9079_vm4, %v1880_v37 }
 0x156   : > { %v1882_v41 = vpop.permute.xlu1 %1881 }
 0x157   : > { %1919 = vst.msk [vmem:[#allocation3 + $0x58] sm:$0xff] %vm9079_vm4, %v1882_v41  ;;  %v1956_v63 = vpop.permute.xlu0 %1955 }
 0x158   : > { %1994 = vst.msk [vmem:[#allocation3 + $0x50] sm:$0xff] %vm9078_vm5, %v1956_v63 }
 0x15a   : > { %v1958_v14 = vpop.permute.xlu1 %1957 }
 0x15b   : > { %1995 = vst.msk [vmem:[#allocation3 + $0x58] sm:$0xff] %vm9078_vm5, %v1958_v14  ;;  %v2026_v5 = vpop.permute.xlu0 %2025 }
 0x15c   : > { %2064 = vst.msk [vmem:[#allocation3 + $0x50] sm:$0xff] %vm9076_vm6, %v2026_v5 }
 0x15e   : > { %v2028_v3 = vpop.permute.xlu1 %2027 }
 0x15f   : > { %2065 = vst.msk [vmem:[#allocation3 + $0x58] sm:$0xff] %vm9076_vm6, %v2028_v3  ;;  %v2118_v48 = vpop.permute.xlu0 %2117 }
 0x160   : > { %2156 = vst.msk [vmem:[#allocation3 + $0x50] sm:$0xff] %vm9077_vm7, %v2118_v48 }
 0x162   : > { %v2120_v10 = vpop.permute.xlu1 %2119 }
 0x163   : > { %2157 = vst.msk [vmem:[#allocation3 + $0x58] sm:$0xff] %vm9077_vm7, %v2120_v10  ;;  %v2194_v4 = vpop.permute.xlu0 %2193 }
 0x164   : > { %2232 = vst.msk [vmem:[#allocation3 + $0x50] sm:$0xff] %vm2221_vm8, %v2194_v4 }
 0x166   : > { %v1478_v39 = vpop.permute.xlu1 %1477 }
 0x167   : > { %1514 = vst.msk [vmem:[#allocation3 + $0x60] sm:$0xff] %vm1501_vm1, %v1478_v39  ;;  %v2196_v24 = vpop.permute.xlu0 %2195 }
 0x168   : > { %2233 = vst.msk [vmem:[#allocation3 + $0x58] sm:$0xff] %vm2221_vm8, %v2196_v24 }
 0x16a   : > { %v1480_v32 = vpop.permute.xlu1 %1479 }
 0x16b   : > { %1515 = vst.msk [vmem:[#allocation3 + $0x68] sm:$0xff] %vm1501_vm1, %v1480_v32  ;;  %v1722_v31 = vpop.permute.xlu0 %1721  ;;  %v2248_v23 = vld [vmem:[#allocation3 + $0x50] sm:$0xff] }
 0x16c   : > { %1758 = vst.msk [vmem:[#allocation3 + $0x60] sm:$0xff] %vm1745_vm2, %v1722_v31  ;;  %5956 = vmatprep.mubr.msk.bf16.mxu0 %vm2274_vm0, %v2248_v23 }
 0x16e   : > { %v1724_v25 = vpop.permute.xlu1 %1723 }
 0x16f   : > { %1759 = vst.msk [vmem:[#allocation3 + $0x68] sm:$0xff] %vm1745_vm2, %v1724_v25  ;;  %v1792_v55 = vpop.permute.xlu0 %1791  ;;  %v2249_v59 = vld [vmem:[#allocation3 + $0x58] sm:$0xff] }
 0x170   : > { %1828 = vst.msk [vmem:[#allocation3 + $0x60] sm:$0xff] %vm1815_vm3, %v1792_v55  ;;  %5957 = vmatmul.mubr.msk.bf16.gmra.mrb[20].mxu0 %vm2274_vm0, %v2249_v59 }
 0x172   : > { %v1794_v17 = vpop.permute.xlu1 %1793 }
 0x173   : > { %1829 = vst.msk [vmem:[#allocation3 + $0x68] sm:$0xff] %vm1815_vm3, %v1794_v17  ;;  %v1884_v35 = vpop.permute.xlu0 %1883 }
 0x174   : > { %1920 = vst.msk [vmem:[#allocation3 + $0x60] sm:$0xff] %vm9079_vm4, %v1884_v35 }
 0x176   : > { %v1886_v15 = vpop.permute.xlu1 %1885 }
 0x177   : > { %1921 = vst.msk [vmem:[#allocation3 + $0x68] sm:$0xff] %vm9079_vm4, %v1886_v15  ;;  %v1960_v49 = vpop.permute.xlu0 %1959 }
 0x178   : > { %1996 = vst.msk [vmem:[#allocation3 + $0x60] sm:$0xff] %vm9078_vm5, %v1960_v49 }
 0x17a   : > { %v1962_v45 = vpop.permute.xlu1 %1961 }
 0x17b   : > { %1997 = vst.msk [vmem:[#allocation3 + $0x68] sm:$0xff] %vm9078_vm5, %v1962_v45  ;;  %v2030_v42 = vpop.permute.xlu0 %2029 }
 0x17c   : > { %2066 = vst.msk [vmem:[#allocation3 + $0x60] sm:$0xff] %vm9076_vm6, %v2030_v42 }
 0x17e   : > { %v2032_v22 = vpop.permute.xlu1 %2031 }
 0x17f   : > { %2067 = vst.msk [vmem:[#allocation3 + $0x68] sm:$0xff] %vm9076_vm6, %v2032_v22  ;;  %v2122_v38 = vpop.permute.xlu0 %2121 }
 0x180   : > { %2158 = vst.msk [vmem:[#allocation3 + $0x60] sm:$0xff] %vm9077_vm7, %v2122_v38 }
 0x182   : > { %v2124_v33 = vpop.permute.xlu1 %2123 }
 0x183   : > { %2159 = vst.msk [vmem:[#allocation3 + $0x68] sm:$0xff] %vm9077_vm7, %v2124_v33  ;;  %v2198_v40 = vpop.permute.xlu0 %2197 }
 0x184   : > { %2234 = vst.msk [vmem:[#allocation3 + $0x60] sm:$0xff] %vm2221_vm8, %v2198_v40 }
 0x186   : > { %v1482_v58 = vpop.permute.xlu1 %1481 }
 0x187   : > { %1516 = vst.msk [vmem:[#allocation3 + $0x70] sm:$0xff] %vm1501_vm1, %v1482_v58  ;;  %v2200_v12 = vpop.permute.xlu0 %2199 }
 0x188   : > { %2235 = vst.msk [vmem:[#allocation3 + $0x68] sm:$0xff] %vm2221_vm8, %v2200_v12 }
 0x18a   : > { %v1484_v36 = vpop.permute.xlu1 %1483 }
 0x18b   : > { %1517 = vst.msk [vmem:[#allocation3 + $0x78] sm:$0xff] %vm1501_vm1, %v1484_v36  ;;  %v1726_v16 = vpop.permute.xlu0 %1725  ;;  %v2250_v0 = vld [vmem:[#allocation3 + $0x60] sm:$0xff] }
 0x18c   : > { %1760 = vst.msk [vmem:[#allocation3 + $0x70] sm:$0xff] %vm1745_vm2, %v1726_v16  ;;  %5960 = vmatprep.mubr.msk.bf16.mxu0 %vm2274_vm0, %v2250_v0 }
 0x18e   : > { %v1728_v6 = vpop.permute.xlu1 %1727 }
 0x18f   : > { %1761 = vst.msk [vmem:[#allocation3 + $0x78] sm:$0xff] %vm1745_vm2, %v1728_v6  ;;  %v1796_v21 = vpop.permute.xlu0 %1795  ;;  %v2251_v61 = vld [vmem:[#allocation3 + $0x68] sm:$0xff] }
 0x190   : > { %1830 = vst.msk [vmem:[#allocation3 + $0x70] sm:$0xff] %vm1815_vm3, %v1796_v21  ;;  %5961 = vmatmul.mubr.msk.bf16.gmra.mrb[24].mxu0 %vm2274_vm0, %v2251_v61 }
 0x192   : > { %v1798_v62 = vpop.permute.xlu1 %1797 }
 0x193   : > { %1831 = vst.msk [vmem:[#allocation3 + $0x78] sm:$0xff] %vm1815_vm3, %v1798_v62  ;;  %v1888_v26 = vpop.permute.xlu0 %1887 }
 0x194   : > { %1922 = vst.msk [vmem:[#allocation3 + $0x70] sm:$0xff] %vm9079_vm4, %v1888_v26 }
 0x196   : > { %v1890_v56 = vpop.permute.xlu1 %1889 }
 0x197   : > { %1923 = vst.msk [vmem:[#allocation3 + $0x78] sm:$0xff] %vm9079_vm4, %v1890_v56  ;;  %v1964_v54 = vpop.permute.xlu0 %1963 }
 0x198   : > { %1998 = vst.msk [vmem:[#allocation3 + $0x70] sm:$0xff] %vm9078_vm5, %v1964_v54 }
 0x19a   : > { %v1966_v7 = vpop.permute.xlu1 %1965 }
 0x19b   : > { %1999 = vst.msk [vmem:[#allocation3 + $0x78] sm:$0xff] %vm9078_vm5, %v1966_v7  ;;  %v2034_v20 = vpop.permute.xlu0 %2033 }
 0x19c   : > { %2068 = vst.msk [vmem:[#allocation3 + $0x70] sm:$0xff] %vm9076_vm6, %v2034_v20 }
 0x19e   : > { %v2036_v44 = vpop.permute.xlu1 %2035 }
 0x19f   : > { %2069 = vst.msk [vmem:[#allocation3 + $0x78] sm:$0xff] %vm9076_vm6, %v2036_v44  ;;  %v2126_v53 = vpop.permute.xlu0 %2125 }
 0x1a0   : > { %2160 = vst.msk [vmem:[#allocation3 + $0x70] sm:$0xff] %vm9077_vm7, %v2126_v53 }
 0x1a2   : > { %v2128_v11 = vpop.permute.xlu1 %2127 }
 0x1a3   : > { %2161 = vst.msk [vmem:[#allocation3 + $0x78] sm:$0xff] %vm9077_vm7, %v2128_v11  ;;  %v2202_v2 = vpop.permute.xlu0 %2201 }
 0x1a4   : > { %2236 = vst.msk [vmem:[#allocation3 + $0x70] sm:$0xff] %vm2221_vm8, %v2202_v2 }
 0x1a6   : > { %v2204_v57 = vpop.permute.xlu1 %2203 }
 0x1a7   : > { %2237 = vst.msk [vmem:[#allocation3 + $0x78] sm:$0xff] %vm2221_vm8, %v2204_v57  ;;  %v7556_v57 = vld [vmem:[#allocation2] sm:$0xf] }
 0x1a8   : > { %v7465_v1 = vpop.f32.mrb[0].mxu0 }
 0x1a9   : > { %v2522_v19 = vmul.f32 0.2, %v7465_v1  ;;  %v7468_v34 = vpop.f32.mrb[1].mxu0  ;;  %vm2490_vm6 = vcmp.ge.f32.partialorder %v7465_v1, 0.0 }
 0x1aa   : > { %v2520_v27 = vmul.f32 0.2, %v7468_v34  ;;  %v7473_v18 = vpop.f32.mrb[2].mxu0  ;;  %vm2488_vm7 = vcmp.ge.f32.partialorder %v7468_v34, 0.0 }
 0x1ab   : > { %vm2491_vm5 = vcmp.ge.f32.partialorder %v7473_v18, 0.0  ;;  %v2523_v28 = vmul.f32 0.2, %v7473_v18  ;;  %v7478_v13 = vpop.f32.mrb[3].mxu0  ;;  %v2554_v43 = vsel %vm2490_vm6, %v7465_v1, %v2522_v19  ;;  %v2252_v37 = vld [vmem:[#allocation3 + $0x70] sm:$0xff] }
 0x1ac   : > { %vm2489_vm4 = vcmp.ge.f32.partialorder %v7478_v13, 0.0  ;;  %v2521_v30 = vmul.f32 0.2, %v7478_v13  ;;  %v2552_v9 = vsel %vm2488_vm7, %v7468_v34, %v2520_v27  ;;  %5964 = vmatprep.mubr.msk.bf16.mxu0 %vm2274_vm0, %v2252_v37  ;;  %v7558_v19 = vld [vmem:[#allocation2 + $0x4] sm:$0xf]  ;;  %v3963_v27 = vshrl.u32 %v7556_v57, 16 }
 0x1ad   : > { %v2555_v50 = vsel %vm2491_vm5, %v7473_v18, %v2523_v28  ;;  %v3966_v28 = vshll.u32 %v7556_v57, 16  ;;  %v3798_v37 = vld [vmem:[#allocation2 + $0x8] sm:$0x1] }
 0x1ae   : > { %v2585_v52 = vpack.c.bf16 %v2555_v50, %v2554_v43  ;;  %v2553_v47 = vsel %vm2489_vm4, %v7478_v13, %v2521_v30  ;;  %v2253_v63 = vld [vmem:[#allocation3 + $0x78] sm:$0xff]  ;;  %v3972_v30 = vshll.u32 %v7558_v19, 16  ;;  %v3976_v43 = vshrl.u32 %v7558_v19, 16 }
 0x1af   : > { %v2584_v41 = vpack.c.bf16 %v2553_v47, %v2552_v9  ;;  %5965 = vmatmul.mubr.msk.bf16.gmra.mrb[28].mxu0 %vm2274_vm0, %v2253_v63  ;;  %v3965_v50 = vrot.slane %v3963_v27, 4  ;;  %v3968_v9 = vrot.slane %v3966_v28, 5 }
 0x1b0   : > { %v3978_v47 = vrot.slane %v3976_v43, 4 }
 0x1b1   : > { %5970 = vmatprep.mubr.msk.bf16.mxu0 %vm1001_vm14, %v2584_v41  ;;  %v3969_v41 = vor.u32 %v3968_v9, %v3965_v50 }
 0x1b7   : > { %5971 = vmatmul.mubr.msk.bf16.vlgmr.msra.gmra.mrb[32].mxu0 %vm1001_vm14, %v2585_v52  ;;  %v3974_v52 = vrot.slane %v3972_v30, 5 }
 0x1b9   : > { %v3979_v63 = vor.u32 %v3978_v47, %v3974_v52 }
 0x1c3   : > { %v7490_v14 = vpop.f32.mrb[4].mxu0 }
 0x1c4   : > { %v2526_v5 = vmul.f32 0.2, %v7490_v14  ;;  %v7493_v3 = vpop.f32.mrb[5].mxu0  ;;  %vm2494_vm5 = vcmp.ge.f32.partialorder %v7490_v14, 0.0 }
 0x1c5   : > { %v2524_v48 = vmul.f32 0.2, %v7493_v3  ;;  %v7497_v10 = vpop.f32.mrb[6].mxu0  ;;  %vm2492_vm4 = vcmp.ge.f32.partialorder %v7493_v3, 0.0 }
 0x1c6   : > { %vm2495_vm6 = vcmp.ge.f32.partialorder %v7497_v10, 0.0  ;;  %v2527_v4 = vmul.f32 0.2, %v7497_v10  ;;  %v7502_v39 = vpop.f32.mrb[7].mxu0  ;;  %v2558_v32 = vsel %vm2494_vm5, %v7490_v14, %v2526_v5  ;;  %v3982_v5 = vshll.u32 %v3798_v37, 16 }
 0x1c7   : > { %vm2493_vm7 = vcmp.ge.f32.partialorder %v7502_v39, 0.0  ;;  %v2525_v24 = vmul.f32 0.2, %v7502_v39  ;;  %v2556_v23 = vsel %vm2492_vm4, %v7493_v3, %v2524_v48  ;;  %v3970_v48 = vrot.slane %v3969_v41, 4 }
 0x1c8   : > { %v2559_v31 = vsel %vm2495_vm6, %v7497_v10, %v2527_v4  ;;  %v3980_v4 = vrot.slane %v3979_v63, 4 }
 0x1c9   : > { %v2587_v25 = vpack.c.bf16 %v2559_v31, %v2558_v32  ;;  %v2557_v55 = vsel %vm2493_vm7, %v7502_v39, %v2525_v24  ;;  %v3984_v24 = vrot.slane %v3982_v5, 5  ;;  %v3975_v32 = vsel %vm6381_vm10, %v3970_v48, %v3974_v52 }
 0x1ca   : > { %v2586_v59 = vpack.c.bf16 %v2557_v55, %v2556_v23  ;;  %v4476_v23 = vrot.slane %v7558_v19, 5  ;;  %v5748_v55 = vrot.slane %v7556_v57, 9 }
 0x1cb   : > { %v3985_v31 = vsel %vm6381_vm10, %v3980_v4, %v3984_v24 }
 0x1cc   : > { %5974 = vmatprep.mubr.msk.bf16.mxu0 %vm1001_vm14, %v2586_v59  ;;  %v4478_v59 = vrot.slane %v4476_v23, 4 }
 0x1cd   : > { %5975 = vmatmul.mubr.msk.bf16.gmra.mrb[36].mxu0 %vm1001_vm14, %v2587_v25  ;;  %v5732_v25 = vcombine.low %v3975_v32, %v3985_v31 }
 0x1cf   : > { %4394 = vrot.lane.b32.xlu0 %v5732_v25, %s6245_s25 }
 0x1e3   : > { %v7512_v17 = vpop.f32.mrb[8].mxu0 }
 0x1e4   : > { %v2530_v35 = vmul.f32 0.2, %v7512_v17  ;;  %v7515_v15 = vpop.f32.mrb[9].mxu0  ;;  %vm2498_vm5 = vcmp.ge.f32.partialorder %v7512_v17, 0.0 }
 0x1e5   : > { %v2528_v49 = vmul.f32 0.2, %v7515_v15  ;;  %v7519_v45 = vpop.f32.mrb[10].mxu0  ;;  %vm2496_vm4 = vcmp.ge.f32.partialorder %v7515_v15, 0.0 }
 0x1e6   : > { %vm2499_vm6 = vcmp.ge.f32.partialorder %v7519_v45, 0.0  ;;  %v2531_v42 = vmul.f32 0.2, %v7519_v45  ;;  %v7524_v22 = vpop.f32.mrb[11].mxu0  ;;  %v2562_v33 = vsel %vm2498_vm5, %v7512_v17, %v2530_v35  ;;  %v4479_v35 = vrot.slane %v3798_v37, 5 }
 0x1e7   : > { %vm2497_vm7 = vcmp.ge.f32.partialorder %v7524_v22, 0.0  ;;  %v2529_v38 = vmul.f32 0.2, %v7524_v22  ;;  %v2560_v58 = vsel %vm2496_vm4, %v7515_v15, %v2528_v49  ;;  %v4477_v49 = vsel %vm6367_vm9, %v5748_v55, %v4476_v23 }
 0x1e8   : > { %v2563_v40 = vsel %vm2499_vm6, %v7519_v45, %v2531_v42  ;;  %v4480_v42 = vsel %vm6367_vm9, %v4478_v59, %v4479_v35 }
 0x1e9   : > { %v2589_v12 = vpack.c.bf16 %v2563_v40, %v2562_v33  ;;  %v2561_v36 = vsel %vm2497_vm7, %v7524_v22, %v2529_v38  ;;  %v5764_v38 = vcombine.low %v4477_v49, %v4480_v42  ;;  %v3847_v33 = vld [vmem:[#allocation2 + $0xcc] sm:$0xf]  ;;  %v3848_v40 = vld [vmem:[#allocation2 + $0xd0] sm:$0xf] }
 0x1ea   : > { %v2588_v16 = vpack.c.bf16 %v2561_v36, %v2560_v58 }
 0x1eb   : > { %4634 = vrot.lane.b32.xlu0 %v5764_v38, %s6244_s24 }
 0x1ec   : > { %5978 = vmatprep.mubr.msk.bf16.mxu0 %vm1001_vm14, %v2588_v16 }
 0x1ed   : > { %5979 = vmatmul.mubr.msk.bf16.gmra.mrb[40].mxu0 %vm1001_vm14, %v2589_v12  ;;  %v5784_v12 = vcombine.low %v3847_v33, %v3848_v40 }
 0x1ef   : > { %4968 = vrot.lane.b32.xlu1 %v5784_v12, %s6247_s27 }
 0x203   : > { %v7534_v0 = vpop.f32.mrb[12].mxu0 }
 0x204   : > { %v2534_v6 = vmul.f32 0.2, %v7534_v0  ;;  %v7537_v21 = vpop.f32.mrb[13].mxu0  ;;  %vm2502_vm5 = vcmp.ge.f32.partialorder %v7534_v0, 0.0 }
 0x205   : > { %v2532_v61 = vmul.f32 0.2, %v7537_v21  ;;  %v7541_v62 = vpop.f32.mrb[14].mxu0  ;;  %vm2500_vm6 = vcmp.ge.f32.partialorder %v7537_v21, 0.0 }
 0x206   : > { %vm2503_vm4 = vcmp.ge.f32.partialorder %v7541_v62, 0.0  ;;  %v2535_v26 = vmul.f32 0.2, %v7541_v62  ;;  %v7545_v56 = vpop.f32.mrb[15].mxu0  ;;  %v2566_v7 = vsel %vm2502_vm5, %v7534_v0, %v2534_v6 }
 0x207   : > { %v2533_v54 = vmul.f32 0.2, %v7545_v56  ;;  %vm2501_vm7 = vcmp.ge.f32.partialorder %v7545_v56, 0.0  ;;  %v2564_v53 = vsel %vm2500_vm6, %v7537_v21, %v2532_v61 }
 0x208   : > { %v2567_v20 = vsel %vm2503_vm4, %v7541_v62, %v2535_v26 }
 0x209   : > { %v2591_v44 = vpack.c.bf16 %v2567_v20, %v2566_v7  ;;  %v2565_v11 = vsel %vm2501_vm7, %v7545_v56, %v2533_v54 }
 0x20a   : > { %v2590_v2 = vpack.c.bf16 %v2565_v11, %v2564_v53 }
 0x20c   : > { %5982 = vmatprep.mubr.msk.bf16.mxu1 %vm1001_vm14, %v2590_v2 }
 0x20d   : > { %5983 = vmatmul.mubr.msk.bf16.vlgmr.msra.gmra.mrb[0].mxu1 %vm1001_vm14, %v2591_v44 }
 0x223   : > { %v7575_v58 = vpop.f32.mrb[16].mxu0 }
 0x224   : > { %v2538_v36 = vmul.f32 0.2, %v7575_v58  ;;  %v7579_v16 = vpop.f32.mrb[17].mxu0  ;;  %vm2506_vm5 = vcmp.ge.f32.partialorder %v7575_v58, 0.0 }
 0x225   : > { %v2536_v6 = vmul.f32 0.2, %v7579_v16  ;;  %v7583_v61 = vpop.f32.mrb[18].mxu0  ;;  %vm2504_vm4 = vcmp.ge.f32.partialorder %v7579_v16, 0.0 }
 0x226   : > { %vm2507_vm6 = vcmp.ge.f32.partialorder %v7583_v61, 0.0  ;;  %v2539_v26 = vmul.f32 0.2, %v7583_v61  ;;  %v7589_v54 = vpop.f32.mrb[19].mxu0  ;;  %v2570_v20 = vsel %vm2506_vm5, %v7575_v58, %v2538_v36 }
 0x227   : > { %vm2505_vm7 = vcmp.ge.f32.partialorder %v7589_v54, 0.0  ;;  %v2537_v7 = vmul.f32 0.2, %v7589_v54  ;;  %v2568_v53 = vsel %vm2504_vm4, %v7579_v16, %v2536_v6 }
 0x228   : > { %v2571_v44 = vsel %vm2507_vm6, %v7583_v61, %v2539_v26 }
 0x229   : > { %v2593_v11 = vpack.c.bf16 %v2571_v44, %v2570_v20  ;;  %v2569_v2 = vsel %vm2505_vm7, %v7589_v54, %v2537_v7 }
 0x22a   : > { %v2592_v27 = vpack.c.bf16 %v2569_v2, %v2568_v53 }
 0x22c   : > { %5986 = vmatprep.mubr.msk.bf16.mxu1 %vm1001_vm14, %v2592_v27 }
 0x22d   : > { %5987 = vmatmul.mubr.msk.bf16.gmra.mrb[4].mxu1 %vm1001_vm14, %v2593_v11 }
 0x243   : > { %v7599_v28 = vpop.f32.mrb[20].mxu0 }
 0x244   : > { %v2542_v30 = vmul.f32 0.2, %v7599_v28  ;;  %v7602_v43 = vpop.f32.mrb[21].mxu0  ;;  %vm2510_vm5 = vcmp.ge.f32.partialorder %v7599_v28, 0.0 }
 0x245   : > { %v2540_v50 = vmul.f32 0.2, %v7602_v43  ;;  %v7606_v9 = vpop.f32.mrb[22].mxu0  ;;  %vm2508_vm4 = vcmp.ge.f32.partialorder %v7602_v43, 0.0 }
 0x246   : > { %vm2511_vm6 = vcmp.ge.f32.partialorder %v7606_v9, 0.0  ;;  %v2543_v52 = vmul.f32 0.2, %v7606_v9  ;;  %v7611_v47 = vpop.f32.mrb[23].mxu0  ;;  %v2574_v41 = vsel %vm2510_vm5, %v7599_v28, %v2542_v30 }
 0x247   : > { %vm2509_vm7 = vcmp.ge.f32.partialorder %v7611_v47, 0.0  ;;  %v2541_v37 = vmul.f32 0.2, %v7611_v47  ;;  %v2572_v5 = vsel %vm2508_vm4, %v7602_v43, %v2540_v50 }
 0x248   : > { %v2575_v63 = vsel %vm2511_vm6, %v7606_v9, %v2543_v52 }
 0x249   : > { %v2595_v48 = vpack.c.bf16 %v2575_v63, %v2574_v41  ;;  %v2573_v4 = vsel %vm2509_vm7, %v7611_v47, %v2541_v37  ;;  %v7666_v41 = vld [vmem:[%s9072_s3] ss:$0 sm:$0xff] }
 0x24a   : > { %v2594_v24 = vpack.c.bf16 %v2573_v4, %v2572_v5 }
 0x24c   : > { %5990 = vmatprep.mubr.msk.bf16.mxu1 %vm1001_vm14, %v2594_v24 }
 0x24d   : > { %5991 = vmatmul.mubr.msk.bf16.gmra.mrb[8].mxu1 %vm1001_vm14, %v2595_v48 }
 0x263   : > { %v7621_v32 = vpop.f32.mrb[24].mxu0 }
 0x264   : > { %v2546_v31 = vmul.f32 0.2, %v7621_v32  ;;  %v7624_v23 = vpop.f32.mrb[25].mxu0  ;;  %vm2514_vm5 = vcmp.ge.f32.partialorder %v7621_v32, 0.0 }
 0x265   : > { %v2544_v25 = vmul.f32 0.2, %v7624_v23  ;;  %v7628_v55 = vpop.f32.mrb[26].mxu0  ;;  %vm2512_vm4 = vcmp.ge.f32.partialorder %v7624_v23, 0.0 }
 0x266   : > { %vm2515_vm6 = vcmp.ge.f32.partialorder %v7628_v55, 0.0  ;;  %v2547_v59 = vmul.f32 0.2, %v7628_v55  ;;  %v7633_v35 = vpop.f32.mrb[27].mxu0  ;;  %v2578_v42 = vsel %vm2514_vm5, %v7621_v32, %v2546_v31 }
 0x267   : > { %vm2513_vm7 = vcmp.ge.f32.partialorder %v7633_v35, 0.0  ;;  %v2545_v49 = vmul.f32 0.2, %v7633_v35  ;;  %v2576_v33 = vsel %vm2512_vm4, %v7624_v23, %v2544_v25 }
 0x268   : > { %v2579_v38 = vsel %vm2515_vm6, %v7628_v55, %v2547_v59 }
 0x269   : > { %v2597_v40 = vpack.c.bf16 %v2579_v38, %v2578_v42  ;;  %v2577_v12 = vsel %vm2513_vm7, %v7633_v35, %v2545_v49 }
 0x26a   : > { %v2596_v36 = vpack.c.bf16 %v2577_v12, %v2576_v33  ;;  %v4395_v12 = vpop.permute.xlu0 %4394 }
 0x26c   : > { %5994 = vmatprep.mubr.msk.bf16.mxu1 %vm1001_vm14, %v2596_v36  ;;  %v5716_v36 = vcombine.low %v7556_v57, %v7558_v19 }
 0x26d   : > { %5995 = vmatmul.mubr.msk.bf16.gmra.mrb[12].mxu1 %vm1001_vm14, %v2597_v40 }
 0x26e   : > { %3946 = vst.msk [vmem:[#allocation3] sm:$0xff] %vm1001_vm14, %v5716_v36 }
 0x26f   : > { %4442 = vst.msk [vmem:[#allocation3] sm:$0xff] %vm1501_vm1, %v4395_v12 }
 0x282   : > { %v7643_v6 = vpop.f32.mrb[28].mxu0 }
 0x283   : > { %v2550_v26 = vmul.f32 0.2, %v7643_v6  ;;  %v7646_v7 = vpop.f32.mrb[29].mxu0  ;;  %vm2518_vm5 = vcmp.ge.f32.partialorder %v7643_v6, 0.0 }
 0x284   : > { %v2548_v20 = vmul.f32 0.2, %v7646_v7  ;;  %v7650_v44 = vpop.f32.mrb[30].mxu0  ;;  %vm2516_vm4 = vcmp.ge.f32.partialorder %v7646_v7, 0.0 }
 0x285   : > { %vm2519_vm6 = vcmp.ge.f32.partialorder %v7650_v44, 0.0  ;;  %v2551_v53 = vmul.f32 0.2, %v7650_v44  ;;  %v7655_v11 = vpop.f32.mrb[31].mxu0  ;;  %v2582_v27 = vsel %vm2518_vm5, %v7643_v6, %v2550_v26  ;;  %v4635_v26 = vpop.permute.xlu0 %4634  ;;  %vm9101_vm5 = vcmask 27648  }
 0x286   : > { %vm2517_vm7 = vcmp.ge.f32.partialorder %v7655_v11, 0.0  ;;  %v2549_v2 = vmul.f32 0.2, %v7655_v11  ;;  %v2580_v50 = vsel %vm2516_vm4, %v7646_v7, %v2548_v20  ;;  %4682 = vst.msk [vmem:[#allocation3] sm:$0xff] %vm1745_vm2, %v4635_v26  ;;  %vm9102_vm4 = vmmov %vm9101_vm5 }
 0x287   : > { %v2583_v30 = vsel %vm2519_vm6, %v7650_v44, %v2551_v53  ;;  %vm9104_vm6 = vmmov %vm9102_vm4 }
 0x288   : > { %v2599_v52 = vpack.c.bf16 %v2583_v30, %v2582_v27  ;;  %v2581_v37 = vsel %vm2517_vm7, %v7655_v11, %v2549_v2  ;;  %vm9106_vm7 = vmmov %vm9102_vm4 }
 0x289   : > { %v2598_v63 = vpack.c.bf16 %v2581_v37, %v2580_v50 }
 0x28a   : > { %v5972_v5 = vpop.f32.mrb[32].mxu0 }
 0x28b   : > { %v2702_v48 = vadd.f32 %v5972_v5, %v7666_v41  ;;  %v2693_v4 = vpop.f32.mrb[33].mxu0  ;;  %5998 = vmatprep.mubr.msk.bf16.mxu1 %vm1001_vm14, %v2598_v63 }
 0x28c   : > { %v2694_v24 = vadd.f32 %v7666_v41, %v2693_v4  ;;  %v5973_v31 = vpop.f32.mrb[34].mxu0  ;;  %5999 = vmatmul.mubr.msk.bf16.gmra.mrb[16].mxu1 %vm1001_vm14, %v2599_v52 }
 0x28d   : > { %v5654_v25 = vmul.f32 -1.442695, %v2702_v48  ;;  %v2705_v59 = vadd.f32 %v5973_v31, %v7666_v41  ;;  %v2696_v49 = vpop.f32.mrb[35].mxu0 }
 0x28e   : > { %v5652_v42 = vmul.f32 -1.442695, %v2694_v24  ;;  %v2697_v38 = vadd.f32 %v7666_v41, %v2696_v49 }
 0x28f   : > { %6105 = vpow2.f32 %v5654_v25  ;;  %v5655_v33 = vmul.f32 -1.442695, %v2705_v59 }
 0x290   : > { %6107 = vpow2.f32 %v5652_v42  ;;  %v5653_v40 = vmul.f32 -1.442695, %v2697_v38 }
 0x291   : > { %6109 = vpow2.f32 %v5655_v33 }
 0x292   : > { %6111 = vpow2.f32 %v5653_v40 }
 0x299   : > { %v6106_v20 = vpop.eup %6105 }
 0x29a   : > { %v6108_v53 = vpop.eup %6107  ;;  %v2918_v2 = vadd.f32 1.0, %v6106_v20 }
 0x29b   : > { %v6110_v27 = vpop.eup %6109  ;;  %v2916_v50 = vadd.f32 1.0, %v6108_v53 }
 0x29c   : > { %v6112_v30 = vpop.eup %6111  ;;  %6113 = vrcp.f32 %v2918_v2  ;;  %v2919_v52 = vadd.f32 1.0, %v6110_v27 }
 0x29d   : > { %v2917_v37 = vadd.f32 1.0, %v6112_v30 }
 0x29e   : > { %6115 = vrcp.f32 %v2919_v52 }
 0x29f   : > { %6117 = vrcp.f32 %v2916_v50 }
 0x2a0   : > { %v5976_v63 = vpop.f32.mrb[36].mxu0  ;;  %6119 = vrcp.f32 %v2917_v37 }
 0x2a1   : > { %v2718_v57 = vadd.f32 %v5976_v63, %v7666_v41  ;;  %v2709_v19 = vpop.f32.mrb[37].mxu0 }
 0x2a2   : > { %v2710_v5 = vadd.f32 %v7666_v41, %v2709_v19  ;;  %v5977_v48 = vpop.f32.mrb[38].mxu0 }
 0x2a3   : > { %v5658_v4 = vmul.f32 -1.442695, %v2718_v57  ;;  %v2721_v24 = vadd.f32 %v5977_v48, %v7666_v41  ;;  %v2712_v31 = vpop.f32.mrb[39].mxu0 }
 0x2a4   : > { %v5656_v25 = vmul.f32 -1.442695, %v2710_v5  ;;  %v2713_v59 = vadd.f32 %v7666_v41, %v2712_v31 }
 0x2a5   : > { %6121 = vpow2.f32 %v5658_v4  ;;  %v5659_v49 = vmul.f32 -1.442695, %v2721_v24 }
 0x2a6   : > { %v6114_v42 = vpop.eup %6113  ;;  %6123 = vpow2.f32 %v5656_v25  ;;  %v5657_v38 = vmul.f32 -1.442695, %v2713_v59 }
 0x2a7   : > { %6125 = vpow2.f32 %v5659_v49  ;;  %3048 = vrot.lane.b32.xlu0 %v6114_v42, %s6245_s25 }
 0x2a8   : > { %v6116_v33 = vpop.eup %6115  ;;  %6127 = vpow2.f32 %v5657_v38 }
 0x2a9   : > { %3050 = vrot.lane.b32.xlu1 %v6116_v33, %s6245_s25  ;;  %v6118_v40 = vpop.eup %6117 }
 0x2aa   : > { %v6120_v12 = vpop.eup %6119 }
 0x2ab   : > { %3044 = vrot.lane.b32.xlu0 %v6118_v40, %s6245_s25 }
 0x2ad   : > { %3046 = vrot.lane.b32.xlu1 %v6120_v12, %s6245_s25 }
 0x2af   : > { %v6122_v36 = vpop.eup %6121 }
 0x2b0   : > { %v6124_v26 = vpop.eup %6123  ;;  %v2922_v20 = vadd.f32 1.0, %v6122_v36 }
 0x2b1   : > { %v6126_v53 = vpop.eup %6125  ;;  %v2920_v27 = vadd.f32 1.0, %v6124_v26 }
 0x2b2   : > { %v6128_v2 = vpop.eup %6127  ;;  %6129 = vrcp.f32 %v2922_v20  ;;  %v2923_v30 = vadd.f32 1.0, %v6126_v53 }
 0x2b3   : > { %v2921_v50 = vadd.f32 1.0, %v6128_v2 }
 0x2b4   : > { %6131 = vrcp.f32 %v2923_v30 }
 0x2b5   : > { %6133 = vrcp.f32 %v2920_v27 }
 0x2b6   : > { %6135 = vrcp.f32 %v2921_v50 }
 0x2bc   : > { %v6130_v52 = vpop.eup %6129 }
 0x2bd   : > { %3056 = vrot.lane.b32.xlu0 %v6130_v52, %s6245_s25 }
 0x2be   : > { %v6132_v37 = vpop.eup %6131 }
 0x2bf   : > { %3058 = vrot.lane.b32.xlu1 %v6132_v37, %s6245_s25  ;;  %v6134_v63 = vpop.eup %6133 }
 0x2c0   : > { %v5980_v57 = vpop.f32.mrb[40].mxu0  ;;  %v6136_v48 = vpop.eup %6135 }
 0x2c1   : > { %v2734_v19 = vadd.f32 %v5980_v57, %v7666_v41  ;;  %v2725_v5 = vpop.f32.mrb[41].mxu0  ;;  %3052 = vrot.lane.b32.xlu0 %v6134_v63, %s6245_s25 }
 0x2c2   : > { %v2726_v4 = vadd.f32 %v7666_v41, %v2725_v5  ;;  %v5981_v24 = vpop.f32.mrb[42].mxu0 }
 0x2c3   : > { %v5662_v31 = vmul.f32 -1.442695, %v2734_v19  ;;  %v2737_v25 = vadd.f32 %v5981_v24, %v7666_v41  ;;  %v2728_v59 = vpop.f32.mrb[43].mxu0  ;;  %3054 = vrot.lane.b32.xlu1 %v6136_v48, %s6245_s25 }
 0x2c4   : > { %v5660_v49 = vmul.f32 -1.442695, %v2726_v4  ;;  %v2729_v42 = vadd.f32 %v7666_v41, %v2728_v59 }
 0x2c5   : > { %6137 = vpow2.f32 %v5662_v31  ;;  %v5663_v38 = vmul.f32 -1.442695, %v2737_v25 }
 0x2c6   : > { %6139 = vpow2.f32 %v5660_v49  ;;  %v5661_v33 = vmul.f32 -1.442695, %v2729_v42 }
 0x2c7   : > { %6141 = vpow2.f32 %v5663_v38 }
 0x2c8   : > { %6143 = vpow2.f32 %v5661_v33 }
 0x2cf   : > { %v6138_v40 = vpop.eup %6137 }
 0x2d0   : > { %v6140_v12 = vpop.eup %6139  ;;  %v2926_v36 = vadd.f32 1.0, %v6138_v40 }
 0x2d1   : > { %v6142_v26 = vpop.eup %6141  ;;  %v2924_v53 = vadd.f32 1.0, %v6140_v12 }
 0x2d2   : > { %v6144_v20 = vpop.eup %6143  ;;  %6145 = vrcp.f32 %v2926_v36  ;;  %v2927_v2 = vadd.f32 1.0, %v6142_v26 }
 0x2d3   : > { %v2925_v27 = vadd.f32 1.0, %v6144_v20 }
 0x2d4   : > { %6147 = vrcp.f32 %v2927_v2 }
 0x2d5   : > { %6149 = vrcp.f32 %v2924_v53 }
 0x2d6   : > { %6151 = vrcp.f32 %v2925_v27 }
 0x2dc   : > { %v6146_v30 = vpop.eup %6145 }
 0x2dd   : > { %3064 = vrot.lane.b32.xlu0 %v6146_v30, %s6245_s25 }
 0x2de   : > { %v6148_v50 = vpop.eup %6147 }
 0x2df   : > { %3066 = vrot.lane.b32.xlu1 %v6148_v50, %s6245_s25  ;;  %v6150_v52 = vpop.eup %6149 }
 0x2e0   : > { %v5984_v37 = vpop.f32.mrb[0].mxu1  ;;  %v6152_v19 = vpop.eup %6151 }
 0x2e1   : > { %v2750_v63 = vadd.f32 %v5984_v37, %v7666_v41  ;;  %v2741_v57 = vpop.f32.mrb[1].mxu1  ;;  %3060 = vrot.lane.b32.xlu0 %v6150_v52, %s6245_s25 }
 0x2e2   : > { %v2742_v5 = vadd.f32 %v7666_v41, %v2741_v57  ;;  %v5985_v48 = vpop.f32.mrb[2].mxu1 }
 0x2e3   : > { %v5666_v4 = vmul.f32 -1.442695, %v2750_v63  ;;  %v2753_v24 = vadd.f32 %v5985_v48, %v7666_v41  ;;  %v2744_v31 = vpop.f32.mrb[3].mxu1  ;;  %3062 = vrot.lane.b32.xlu1 %v6152_v19, %s6245_s25 }
 0x2e4   : > { %v5664_v25 = vmul.f32 -1.442695, %v2742_v5  ;;  %v2745_v59 = vadd.f32 %v7666_v41, %v2744_v31 }
 0x2e5   : > { %6153 = vpow2.f32 %v5666_v4  ;;  %v5667_v49 = vmul.f32 -1.442695, %v2753_v24 }
 0x2e6   : > { %6155 = vpow2.f32 %v5664_v25  ;;  %v5665_v42 = vmul.f32 -1.442695, %v2745_v59 }
 0x2e7   : > { %6157 = vpow2.f32 %v5667_v49 }
 0x2e8   : > { %6159 = vpow2.f32 %v5665_v42 }
 0x2ef   : > { %v6154_v38 = vpop.eup %6153 }
 0x2f0   : > { %v6156_v33 = vpop.eup %6155  ;;  %v2930_v40 = vadd.f32 1.0, %v6154_v38 }
 0x2f1   : > { %v6158_v12 = vpop.eup %6157  ;;  %v2928_v26 = vadd.f32 1.0, %v6156_v33 }
 0x2f2   : > { %v6160_v36 = vpop.eup %6159  ;;  %6161 = vrcp.f32 %v2930_v40  ;;  %v2931_v20 = vadd.f32 1.0, %v6158_v12 }
 0x2f3   : > { %v2929_v53 = vadd.f32 1.0, %v6160_v36 }
 0x2f4   : > { %6163 = vrcp.f32 %v2931_v20  ;;  %v7711_v20 = vpop.permute.xlu1 %4968 }
 0x2f5   : > { %6165 = vrcp.f32 %v2928_v26  ;;  %9099 = vst [vmem:[#allocation7_spill] sm:$0xff] %v7711_v20 }
 0x2f6   : > { %6167 = vrcp.f32 %v2929_v53 }
 0x2fc   : > { %v6162_v2 = vpop.eup %6161 }
 0x2fd   : > { %3072 = vrot.lane.b32.xlu0 %v6162_v2, %s6245_s25 }
 0x2fe   : > { %v6164_v27 = vpop.eup %6163 }
 0x2ff   : > { %3074 = vrot.lane.b32.xlu1 %v6164_v27, %s6245_s25  ;;  %v6166_v30 = vpop.eup %6165 }
 0x300   : > { %v5988_v50 = vpop.f32.mrb[4].mxu1  ;;  %v6168_v63 = vpop.eup %6167 }
 0x301   : > { %v2766_v52 = vadd.f32 %v5988_v50, %v7666_v41  ;;  %v2757_v37 = vpop.f32.mrb[5].mxu1  ;;  %3068 = vrot.lane.b32.xlu0 %v6166_v30, %s6245_s25 }
 0x302   : > { %v2758_v57 = vadd.f32 %v7666_v41, %v2757_v37  ;;  %v5989_v19 = vpop.f32.mrb[6].mxu1 }
 0x303   : > { %v5670_v5 = vmul.f32 -1.442695, %v2766_v52  ;;  %v2769_v48 = vadd.f32 %v5989_v19, %v7666_v41  ;;  %v2760_v4 = vpop.f32.mrb[7].mxu1  ;;  %3070 = vrot.lane.b32.xlu1 %v6168_v63, %s6245_s25 }
 0x304   : > { %v5668_v24 = vmul.f32 -1.442695, %v2758_v57  ;;  %v2761_v31 = vadd.f32 %v7666_v41, %v2760_v4 }
 0x305   : > { %6169 = vpow2.f32 %v5670_v5  ;;  %v5671_v25 = vmul.f32 -1.442695, %v2769_v48 }
 0x306   : > { %6171 = vpow2.f32 %v5668_v24  ;;  %v5669_v59 = vmul.f32 -1.442695, %v2761_v31 }
 0x307   : > { %6173 = vpow2.f32 %v5671_v25 }
 0x308   : > { %6175 = vpow2.f32 %v5669_v59 }
 0x30f   : > { %v6170_v49 = vpop.eup %6169 }
 0x310   : > { %v6172_v42 = vpop.eup %6171  ;;  %v2934_v38 = vadd.f32 1.0, %v6170_v49 }
 0x311   : > { %v6174_v33 = vpop.eup %6173  ;;  %v2932_v12 = vadd.f32 1.0, %v6172_v42 }
 0x312   : > { %v6176_v40 = vpop.eup %6175  ;;  %6177 = vrcp.f32 %v2934_v38  ;;  %v2935_v36 = vadd.f32 1.0, %v6174_v33 }
 0x313   : > { %v2933_v26 = vadd.f32 1.0, %v6176_v40 }
 0x314   : > { %6179 = vrcp.f32 %v2935_v36 }
 0x315   : > { %6181 = vrcp.f32 %v2932_v12 }
 0x316   : > { %6183 = vrcp.f32 %v2933_v26 }
 0x319   : > { %v3049_v53 = vpop.permute.xlu0 %3048 }
 0x31a   : > { %v3142_v2 = vmul.f32 %v7465_v1, %v3049_v53 }
 0x31b   : > { %v3051_v27 = vpop.permute.xlu1 %3050 }
 0x31c   : > { %v6178_v30 = vpop.eup %6177  ;;  %v7714_v50 = vpack.c.bf16 %v3142_v2, %v3142_v2  ;;  %v3143_v52 = vmul.f32 %v7473_v18, %v3051_v27 }
 0x31d   : > { %v3045_v37 = vpop.permute.xlu0 %3044  ;;  %3080 = vrot.lane.b32.xlu0 %v6178_v30, %s6245_s25 }
 0x31e   : > { %v6180_v63 = vpop.eup %6179  ;;  %v3286_v57 = vshrl.u32 %v7714_v50, 16  ;;  %v5846_v19 = vpack.c.bf16 %v3143_v52, %v3143_v52  ;;  %v3140_v5 = vmul.f32 %v3045_v37, %v7468_v34 }
 0x31f   : > { %v3047_v48 = vpop.permute.xlu1 %3046  ;;  %3082 = vrot.lane.b32.xlu1 %v6180_v63, %s6245_s25  ;;  %v6182_v4 = vpop.eup %6181 }
 0x320   : > { %v7721_v1 = vrot.slane %v3286_v57, 7  ;;  %v3294_v24 = vshrl.u32 %v5846_v19, 16  ;;  %v7723_v31 = vpack.c.bf16 %v3140_v5, %v3140_v5  ;;  %v5992_v25 = vpop.f32.mrb[8].mxu1  ;;  %v3141_v18 = vmul.f32 %v3047_v48, %v7478_v13  ;;  %v6184_v42 = vpop.eup %6183 }
 0x321   : > { %v2782_v59 = vadd.f32 %v5992_v25, %v7666_v41  ;;  %v2773_v49 = vpop.f32.mrb[9].mxu1  ;;  %3076 = vrot.lane.b32.xlu0 %v6182_v4, %s6245_s25  ;;  %v3297_v34 = vshll.u32 %v5846_v19, 16 }
 0x322   : > { %v7728_v38 = vrot.slane %v3294_v24, 7  ;;  %v3269_v33 = vshrl.u32 %v7723_v31, 16  ;;  %v5993_v40 = vpop.f32.mrb[10].mxu1  ;;  %v5844_v12 = vpack.c.bf16 %v3141_v18, %v3141_v18  ;;  %v2774_v26 = vadd.f32 %v7666_v41, %v2773_v49 }
 0x323   : > { %v5674_v36 = vmul.f32 -1.442695, %v2782_v59  ;;  %v2776_v53 = vpop.f32.mrb[11].mxu1  ;;  %3078 = vrot.lane.b32.xlu1 %v6184_v42, %s6245_s25  ;;  %v3292_v13 = vrot.slane %v7721_v1, 4  ;;  %v2785_v27 = vadd.f32 %v5993_v40, %v7666_v41 }
 0x324   : > { %v3299_v2 = vor.u32 %v3297_v34, %v7728_v38  ;;  %v7736_v30 = vrot.slane %v3269_v33, 7  ;;  %v3277_v52 = vshrl.u32 %v5844_v12, 16  ;;  %v5672_v37 = vmul.f32 -1.442695, %v2774_v26 }
 0x325   : > { %6185 = vpow2.f32 %v5674_v36  ;;  %v5675_v63 = vmul.f32 -1.442695, %v2785_v27  ;;  %v2777_v57 = vadd.f32 %v7666_v41, %v2776_v53  ;;  %v3280_v5 = vshll.u32 %v5844_v12, 16 }
 0x326   : > { %v7739_v19 = vrot.slane %v3277_v52, 7  ;;  %6187 = vpow2.f32 %v5672_v37  ;;  %v7743_v48 = vsel %vm6402_vm12, %v3292_v13, %v3299_v2  ;;  %v3275_v24 = vrot.slane %v7736_v30, 4 }
 0x327   : > { %6189 = vpow2.f32 %v5675_v63  ;;  %v5673_v4 = vmul.f32 -1.442695, %v2777_v57 }
 0x328   : > { %v3282_v25 = vor.u32 %v3280_v5, %v7739_v19 }
 0x329   : > { %6191 = vpow2.f32 %v5673_v4 }
 0x32a   : > { %v7749_v18 = vsel %vm6402_vm12, %v3275_v24, %v3282_v25 }
 0x32f   : > { %v6186_v59 = vpop.eup %6185  ;;  %v3057_v49 = vpop.permute.xlu0 %3056 }
 0x330   : > { %v2938_v42 = vadd.f32 1.0, %v6186_v59  ;;  %v3146_v34 = vmul.f32 %v7490_v14, %v3057_v49  ;;  %v6188_v33 = vpop.eup %6187 }
 0x331   : > { %v3059_v40 = vpop.permute.xlu1 %3058  ;;  %v6190_v12 = vpop.eup %6189  ;;  %v2936_v36 = vadd.f32 1.0, %v6188_v33 }
 0x332   : > { %6193 = vrcp.f32 %v2938_v42  ;;  %v7752_v26 = vpack.c.bf16 %v3146_v34, %v3146_v34  ;;  %v3147_v53 = vmul.f32 %v7497_v10, %v3059_v40  ;;  %v2939_v13 = vadd.f32 1.0, %v6190_v12 }
 0x333   : > { %v3053_v2 = vpop.permute.xlu0 %3052  ;;  %v6192_v27 = vpop.eup %6191 }
 0x334   : > { %v3320_v52 = vshrl.u32 %v7752_v26, 16  ;;  %v5850_v37 = vpack.c.bf16 %v3147_v53, %v3147_v53  ;;  %6195 = vrcp.f32 %v2939_v13  ;;  %v2937_v63 = vadd.f32 1.0, %v6192_v27 }
 0x335   : > { %v3144_v57 = vmul.f32 %v3053_v2, %v7493_v3  ;;  %v3055_v14 = vpop.permute.xlu1 %3054  ;;  %6197 = vrcp.f32 %v2936_v36 }
 0x336   : > { %v7757_v5 = vrot.slane %v3320_v52, 7  ;;  %v3328_v4 = vshrl.u32 %v5850_v37, 16  ;;  %v3145_v24 = vmul.f32 %v3055_v14, %v7502_v39  ;;  %v3331_v59 = vshll.u32 %v5850_v37, 16 }
 0x337   : > { %v7760_v25 = vpack.c.bf16 %v3144_v57, %v3144_v57  ;;  %6199 = vrcp.f32 %v2937_v63 }
 0x338   : > { %v7762_v10 = vrot.slane %v3328_v4, 7  ;;  %v5848_v49 = vpack.c.bf16 %v3145_v24, %v3145_v24  ;;  %v3326_v34 = vrot.slane %v7757_v5, 4 }
 0x339   : > { %v3303_v42 = vshrl.u32 %v7760_v25, 16 }
 0x33a   : > { %v3333_v3 = vor.u32 %v3331_v59, %v7762_v10  ;;  %v3311_v33 = vshrl.u32 %v5848_v49, 16  ;;  %v3314_v39 = vshll.u32 %v5848_v49, 16 }
 0x33b   : > { %v7767_v40 = vrot.slane %v3303_v42, 7 }
 0x33c   : > { %v6194_v12 = vpop.eup %6193  ;;  %v7769_v36 = vrot.slane %v3311_v33, 7  ;;  %v7773_v53 = vsel %vm6402_vm12, %v3326_v34, %v3333_v3 }
 0x33d   : > { %3088 = vrot.lane.b32.xlu0 %v6194_v12, %s6245_s25  ;;  %v3309_v13 = vrot.slane %v7767_v40, 4 }
 0x33e   : > { %v3316_v2 = vor.u32 %v3314_v39, %v7769_v36  ;;  %v6196_v27 = vpop.eup %6195 }
 0x33f   : > { %v6198_v52 = vpop.eup %6197  ;;  %3090 = vrot.lane.b32.xlu1 %v6196_v27, %s6245_s25 }
 0x340   : > { %v5996_v37 = vpop.f32.mrb[12].mxu1  ;;  %v7781_v63 = vsel %vm6402_vm12, %v3309_v13, %v3316_v2 }
 0x341   : > { %v2798_v57 = vadd.f32 %v5996_v37, %v7666_v41  ;;  %v2789_v14 = vpop.f32.mrb[13].mxu1  ;;  %3084 = vrot.lane.b32.xlu0 %v6198_v52, %s6245_s25  ;;  %v6200_v59 = vpop.eup %6199 }
 0x342   : > { %v2790_v4 = vadd.f32 %v7666_v41, %v2789_v14  ;;  %v5997_v24 = vpop.f32.mrb[14].mxu1 }
 0x343   : > { %v5678_v49 = vmul.f32 -1.442695, %v2798_v57  ;;  %v2801_v42 = vadd.f32 %v5997_v24, %v7666_v41  ;;  %v2792_v34 = vpop.f32.mrb[15].mxu1  ;;  %3086 = vrot.lane.b32.xlu1 %v6200_v59, %s6245_s25 }
 0x344   : > { %v5676_v3 = vmul.f32 -1.442695, %v2790_v4  ;;  %v2793_v33 = vadd.f32 %v7666_v41, %v2792_v34 }
 0x345   : > { %6201 = vpow2.f32 %v5678_v49  ;;  %v5679_v12 = vmul.f32 -1.442695, %v2801_v42 }
 0x346   : > { %6203 = vpow2.f32 %v5676_v3  ;;  %v5677_v39 = vmul.f32 -1.442695, %v2793_v33 }
 0x347   : > { %6205 = vpow2.f32 %v5679_v12 }
 0x348   : > { %6207 = vpow2.f32 %v5677_v39 }
 0x34f   : > { %v6202_v13 = vpop.eup %6201  ;;  %v3065_v2 = vpop.permute.xlu0 %3064 }
 0x350   : > { %v6204_v27 = vpop.eup %6203  ;;  %v2942_v52 = vadd.f32 1.0, %v6202_v13  ;;  %v3150_v37 = vmul.f32 %v7512_v17, %v3065_v2 }
 0x351   : > { %v6206_v57 = vpop.eup %6205  ;;  %v2940_v14 = vadd.f32 1.0, %v6204_v27  ;;  %v3067_v24 = vpop.permute.xlu1 %3066 }
 0x352   : > { %v6208_v4 = vpop.eup %6207  ;;  %6209 = vrcp.f32 %v2942_v52  ;;  %v2943_v34 = vadd.f32 1.0, %v6206_v57  ;;  %v7790_v20 = vpack.c.bf16 %v3150_v37, %v3150_v37  ;;  %v3151_v59 = vmul.f32 %v7519_v45, %v3067_v24 }
 0x353   : > { %v3061_v49 = vpop.permute.xlu0 %3060  ;;  %v2941_v42 = vadd.f32 1.0, %v6208_v4 }
 0x354   : > { %6211 = vrcp.f32 %v2943_v34  ;;  %v3354_v3 = vshrl.u32 %v7790_v20, 16  ;;  %v5854_v33 = vpack.c.bf16 %v3151_v59, %v3151_v59  ;;  %v3148_v12 = vmul.f32 %v3061_v49, %v7515_v15 }
 0x355   : > { %v3063_v39 = vpop.permute.xlu1 %3062  ;;  %6213 = vrcp.f32 %v2940_v14 }
 0x356   : > { %v7795_v17 = vrot.slane %v3354_v3, 7  ;;  %v3362_v13 = vshrl.u32 %v5854_v33, 16  ;;  %v3149_v2 = vmul.f32 %v3063_v39, %v7524_v22  ;;  %v7798_v27 = vpack.c.bf16 %v3148_v12, %v3148_v12 }
 0x357   : > { %6215 = vrcp.f32 %v2941_v42  ;;  %v3365_v45 = vshll.u32 %v5854_v33, 16 }
 0x358   : > { %v7800_v52 = vrot.slane %v3362_v13, 7  ;;  %v5852_v37 = vpack.c.bf16 %v3149_v2, %v3149_v2  ;;  %v3337_v57 = vshrl.u32 %v7798_v27, 16  ;;  %v3360_v24 = vrot.slane %v7795_v17, 4 }
 0x35a   : > { %v3367_v15 = vor.u32 %v3365_v45, %v7800_v52  ;;  %v3345_v4 = vshrl.u32 %v5852_v37, 16  ;;  %v7805_v14 = vrot.slane %v3337_v57, 7  ;;  %v3348_v22 = vshll.u32 %v5852_v37, 16 }
 0x35c   : > { %v6210_v34 = vpop.eup %6209  ;;  %v7807_v59 = vrot.slane %v3345_v4, 7  ;;  %v7811_v49 = vsel %vm6402_vm12, %v3360_v24, %v3367_v15  ;;  %v3343_v3 = vrot.slane %v7805_v14, 4 }
 0x35d   : > { %3096 = vrot.lane.b32.xlu0 %v6210_v34, %s6245_s25 }
 0x35e   : > { %v6212_v42 = vpop.eup %6211  ;;  %v3350_v33 = vor.u32 %v3348_v22, %v7807_v59 }
 0x35f   : > { %v6000_v12 = vpop.f32.mrb[16].mxu1  ;;  %3098 = vrot.lane.b32.xlu1 %v6212_v42, %s6245_s25  ;;  %v6214_v39 = vpop.eup %6213 }
 0x360   : > { %v2814_v13 = vadd.f32 %v6000_v12, %v7666_v41  ;;  %v2805_v2 = vpop.f32.mrb[17].mxu1  ;;  %v7820_v45 = vsel %vm6402_vm12, %v3343_v3, %v3350_v33 }
 0x361   : > { %v2806_v37 = vadd.f32 %v7666_v41, %v2805_v2  ;;  %v6001_v57 = vpop.f32.mrb[18].mxu1  ;;  %3092 = vrot.lane.b32.xlu0 %v6214_v39, %s6245_s25  ;;  %v6216_v24 = vpop.eup %6215 }
 0x362   : > { %v5682_v15 = vmul.f32 -1.442695, %v2814_v13  ;;  %v2817_v4 = vadd.f32 %v6001_v57, %v7666_v41  ;;  %v2808_v34 = vpop.f32.mrb[19].mxu1 }
 0x363   : > { %v5680_v22 = vmul.f32 -1.442695, %v2806_v37  ;;  %v2809_v42 = vadd.f32 %v7666_v41, %v2808_v34  ;;  %3094 = vrot.lane.b32.xlu1 %v6216_v24, %s6245_s25 }
 0x364   : > { %6217 = vpow2.f32 %v5682_v15  ;;  %v5683_v12 = vmul.f32 -1.442695, %v2817_v4 }
 0x365   : > { %6219 = vpow2.f32 %v5680_v22  ;;  %v5681_v3 = vmul.f32 -1.442695, %v2809_v42 }
 0x366   : > { %6221 = vpow2.f32 %v5683_v12 }
 0x367   : > { %6223 = vpow2.f32 %v5681_v3 }
 0x36e   : > { %v6218_v33 = vpop.eup %6217 }
 0x36f   : > { %v6220_v2 = vpop.eup %6219  ;;  %v2946_v29 = vadd.f32 1.0, %v6218_v33  ;;  %v3073_v39 = vpop.permute.xlu0 %3072 }
 0x370   : > { %v6222_v8 = vpop.eup %6221  ;;  %v3154_v13 = vmul.f32 %v7534_v0, %v3073_v39  ;;  %v2944_v37 = vadd.f32 1.0, %v6220_v2 }
 0x371   : > { %v6224_v57 = vpop.eup %6223  ;;  %6225 = vrcp.f32 %v2946_v29  ;;  %v2947_v60 = vadd.f32 1.0, %v6222_v8  ;;  %v3075_v41 = vpop.permute.xlu1 %3074 }
 0x372   : > { %v7828_v34 = vpack.c.bf16 %v3154_v13, %v3154_v13  ;;  %v3155_v24 = vmul.f32 %v7541_v62, %v3075_v41  ;;  %v2945_v15 = vadd.f32 1.0, %v6224_v57 }
 0x373   : > { %6227 = vrcp.f32 %v2947_v60  ;;  %v3069_v4 = vpop.permute.xlu0 %3068 }
 0x374   : > { %v3388_v22 = vshrl.u32 %v7828_v34, 16  ;;  %v5858_v42 = vpack.c.bf16 %v3155_v24, %v3155_v24  ;;  %6229 = vrcp.f32 %v2944_v37  ;;  %v3152_v12 = vmul.f32 %v3069_v4, %v7537_v21 }
 0x375   : > { %v3071_v3 = vpop.permute.xlu1 %3070  ;;  %6231 = vrcp.f32 %v2945_v15 }
 0x376   : > { %v7833_v0 = vrot.slane %v3388_v22, 7  ;;  %v3396_v29 = vshrl.u32 %v5858_v42, 16  ;;  %v3153_v8 = vmul.f32 %v3071_v3, %v7545_v56  ;;  %v7836_v33 = vpack.c.bf16 %v3152_v12, %v3152_v12 }
 0x377   : > { %v3399_v60 = vshll.u32 %v5858_v42, 16  ;;  %v3289_v3 = vshll.u32 %v7714_v50, 16 }
 0x378   : > { %v7838_v2 = vrot.slane %v3396_v29, 7  ;;  %v5856_v62 = vpack.c.bf16 %v3153_v8, %v3153_v8  ;;  %v3371_v39 = vshrl.u32 %v7836_v33, 16  ;;  %v3394_v13 = vrot.slane %v7833_v0, 4 }
 0x37a   : > { %v3401_v57 = vor.u32 %v3399_v60, %v7838_v2  ;;  %v3379_v21 = vshrl.u32 %v5856_v62, 16  ;;  %v7843_v41 = vrot.slane %v3371_v39, 7  ;;  %v3382_v56 = vshll.u32 %v5856_v62, 16 }
 0x37b   : > { %v6226_v37 = vpop.eup %6225  ;;  %v3291_v60 = vor.u32 %v3289_v3, %v7721_v1  ;;  %v3272_v62 = vshll.u32 %v7723_v31, 16  ;;  %v3284_v39 = vrot.slane %v7739_v19, 4  ;;  %v3306_v31 = vshll.u32 %v7760_v25, 16 }
 0x37c   : > { %v7845_v24 = vrot.slane %v3379_v21, 7  ;;  %3104 = vrot.lane.b32.xlu0 %v6226_v37, %s6245_s25  ;;  %v7850_v15 = vsel %vm6402_vm12, %v3394_v13, %v3401_v57  ;;  %v3377_v22 = vrot.slane %v7843_v41, 4  ;;  %v3301_v13 = vrot.slane %v7728_v38, 4 }
 0x37d   : > { %v6228_v4 = vpop.eup %6227  ;;  %v3274_v50 = vor.u32 %v3272_v62, %v7736_v30  ;;  %v3323_v57 = vshll.u32 %v7752_v26, 16  ;;  %v3308_v19 = vor.u32 %v3306_v31, %v7767_v40  ;;  %v3335_v21 = vrot.slane %v7762_v10, 4 }
 0x37e   : > { %v3384_v42 = vor.u32 %v3382_v56, %v7845_v24  ;;  %3106 = vrot.lane.b32.xlu1 %v6228_v4, %s6245_s25  ;;  %v6230_v12 = vpop.eup %6229  ;;  %v3318_v4 = vrot.slane %v7769_v36, 4  ;;  %v3340_v36 = vshll.u32 %v7798_v27, 16  ;;  %v3352_v31 = vrot.slane %v7807_v59, 4 }
 0x37f   : > { %v6232_v8 = vpop.eup %6231  ;;  %v3325_v1 = vor.u32 %v3323_v57, %v7757_v5  ;;  %v3369_v57 = vrot.slane %v7800_v52, 4  ;;  %v3374_v52 = vshll.u32 %v7836_v33, 16  ;;  %v3403_v59 = vrot.slane %v7838_v2, 4 }
 0x380   : > { %3100 = vrot.lane.b32.xlu0 %v6230_v12, %s6245_s25  ;;  %v7859_v29 = vsel %vm6402_vm12, %v3377_v22, %v3384_v42 }
 0x382   : > { %3102 = vrot.lane.b32.xlu1 %v6232_v8, %s6245_s25 }
 0x384   : > { %3546 = vrot.lane.b32.xlu0 %v3291_v60, %s6252_s17 }
 0x386   : > { %3544 = vrot.lane.b32.xlu1 %v3284_v39, %s6252_s17 }
 0x388   : > { %3540 = vrot.lane.b32.xlu0 %v3274_v50, %s6252_s17 }
 0x38a   : > { %3542 = vrot.lane.b32.xlu1 %v7749_v18, %s6252_s17 }
 0x38c   : > { %3550 = vrot.lane.b32.xlu0 %v3301_v13, %s6252_s17 }
 0x38e   : > { %3558 = vrot.lane.b32.xlu1 %v3325_v1, %s6252_s17 }
 0x38f   : > { %v3081_v30 = vpop.permute.xlu0 %3080 }
 0x390   : > { %3548 = vrot.lane.b32.xlu0 %v7743_v48, %s6252_s17  ;;  %v3158_v38 = vmul.f32 %v7575_v58, %v3081_v30  ;;  %v3357_v58 = vshll.u32 %v7790_v20, 16 }
 0x391   : > { %v3083_v26 = vpop.permute.xlu1 %3082 }
 0x392   : > { %v5861_v18 = vpack.c.bf16 %v3158_v38, %v3158_v38  ;;  %3552 = vrot.lane.b32.xlu1 %v3308_v19, %s6252_s17  ;;  %v3159_v5 = vmul.f32 %v7583_v61, %v3083_v26  ;;  %v3359_v12 = vor.u32 %v3357_v58, %v7795_v17  ;;  %v3376_v19 = vor.u32 %v3374_v52, %v7843_v41 }
 0x393   : > { %v3077_v37 = vpop.permute.xlu0 %3076 }
 0x394   : > { %v3422_v25 = vshrl.u32 %v5861_v18, 16  ;;  %v5862_v56 = vpack.c.bf16 %v3159_v5, %v3159_v5  ;;  %3562 = vrot.lane.b32.xlu0 %v3335_v21, %s6252_s17  ;;  %v3156_v40 = vmul.f32 %v3077_v37, %v7579_v16 }
 0x395   : > { %v3079_v48 = vpop.permute.xlu1 %3078 }
 0x396   : > { %v3424_v22 = vrot.slane %v3422_v25, 7  ;;  %v3430_v42 = vshrl.u32 %v5862_v56, 16  ;;  %v5859_v10 = vpack.c.bf16 %v3156_v40, %v3156_v40  ;;  %3554 = vrot.lane.b32.xlu1 %v7781_v63, %s6252_s17  ;;  %v3157_v61 = vmul.f32 %v3079_v48, %v7589_v54 }
 0x397   : > { %v3433_v8 = vshll.u32 %v5862_v56, 16  ;;  %v3342_v63 = vor.u32 %v3340_v36, %v7805_v14 }
 0x398   : > { %v3432_v3 = vrot.slane %v3430_v42, 7  ;;  %v3405_v60 = vshrl.u32 %v5859_v10, 16  ;;  %3556 = vrot.lane.b32.xlu0 %v3318_v4, %s6252_s17  ;;  %v5860_v16 = vpack.c.bf16 %v3157_v61, %v3157_v61  ;;  %v3428_v62 = vrot.slane %v3424_v22, 4 }
 0x399   : > { %v3408_v38 = vshll.u32 %v5859_v10, 16 }
 0x39a   : > { %v3435_v20 = vor.u32 %v3433_v8, %v3432_v3  ;;  %3570 = vrot.lane.b32.xlu1 %v3359_v12, %s6252_s17  ;;  %v3407_v39 = vrot.slane %v3405_v60, 7  ;;  %v3413_v50 = vshrl.u32 %v5860_v16, 16  ;;  %v3416_v13 = vshll.u32 %v5860_v16, 16 }
 0x39b   : > { %v3437_v37 = vrot.slane %v3432_v3, 4 }
 0x39c   : > { %3560 = vrot.lane.b32.xlu0 %v7773_v53, %s6252_s17  ;;  %v7900_v54 = vsel %vm6402_vm12, %v3428_v62, %v3435_v20  ;;  %v3415_v17 = vrot.slane %v3413_v50, 7  ;;  %v3411_v27 = vrot.slane %v3407_v39, 4  ;;  %v3391_v53 = vshll.u32 %v7828_v34, 16 }
 0x39d   : > { %v3425_v34 = vshll.u32 %v5861_v18, 16  ;;  %v3410_v5 = vor.u32 %v3408_v38, %v3407_v39 }
 0x39e   : > { %3564 = vrot.lane.b32.xlu1 %v3342_v63, %s6252_s17  ;;  %v3418_v1 = vor.u32 %v3416_v13, %v3415_v17  ;;  %v3393_v30 = vor.u32 %v3391_v53, %v7833_v0  ;;  %v3420_v42 = vrot.slane %v3415_v17, 4 }
 0x39f   : > { %v3427_v33 = vor.u32 %v3425_v34, %v3424_v22 }
 0x3a0   : > { %3574 = vrot.lane.b32.xlu0 %v3369_v57, %s6252_s17  ;;  %v3419_v14 = vsel %vm6402_vm12, %v3411_v27, %v3418_v1 }
 0x3a2   : > { %3566 = vrot.lane.b32.xlu1 %v7820_v45, %s6252_s17  ;;  %v3386_v45 = vrot.slane %v7845_v24, 4 }
 0x3a4   : > { %3568 = vrot.lane.b32.xlu0 %v3352_v31, %s6252_s17 }
 0x3a6   : > { %3582 = vrot.lane.b32.xlu1 %v3393_v30, %s6252_s17 }
 0x3a8   : > { %3572 = vrot.lane.b32.xlu0 %v7811_v49, %s6252_s17 }
 0x3aa   : > { %3576 = vrot.lane.b32.xlu1 %v3376_v19, %s6252_s17 }
 0x3ac   : > { %3586 = vrot.lane.b32.xlu0 %v3403_v59, %s6252_s17 }
 0x3ae   : > { %3578 = vrot.lane.b32.xlu1 %v7859_v29, %s6252_s17 }
 0x3af   : > { %v3089_v0 = vpop.permute.xlu0 %3088 }
 0x3b0   : > { %3580 = vrot.lane.b32.xlu0 %v3386_v45, %s6252_s17  ;;  %v3162_v41 = vmul.f32 %v7599_v28, %v3089_v0 }
 0x3b1   : > { %v3091_v2 = vpop.permute.xlu1 %3090 }
 0x3b2   : > { %v5865_v49 = vpack.c.bf16 %v3162_v41, %v3162_v41  ;;  %3594 = vrot.lane.b32.xlu1 %v3427_v33, %s6252_s17  ;;  %v3163_v26 = vmul.f32 %v7606_v9, %v3091_v2 }
 0x3b3   : > { %v3085_v21 = vpop.permute.xlu0 %3084 }
 0x3b4   : > { %v3456_v24 = vshrl.u32 %v5865_v49, 16  ;;  %3584 = vrot.lane.b32.xlu0 %v7850_v15, %s6252_s17  ;;  %v3160_v29 = vmul.f32 %v3085_v21, %v7602_v43  ;;  %v5866_v18 = vpack.c.bf16 %v3163_v26, %v3163_v26  ;;  %v3459_v15 = vshll.u32 %v5865_v49, 16 }
 0x3b5   : > { %v3087_v28 = vpop.permute.xlu1 %3086 }
 0x3b6   : > { %v5863_v25 = vpack.c.bf16 %v3160_v29, %v3160_v29  ;;  %3588 = vrot.lane.b32.xlu1 %v3410_v5, %s6252_s17  ;;  %v3458_v56 = vrot.slane %v3456_v24, 7  ;;  %v3464_v40 = vshrl.u32 %v5866_v18, 16  ;;  %v3161_v4 = vmul.f32 %v3087_v28, %v7611_v47 }
 0x3b7   : > { %v3467_v58 = vshll.u32 %v5866_v18, 16 }
 0x3b8   : > { %v3439_v48 = vshrl.u32 %v5863_v25, 16  ;;  %3598 = vrot.lane.b32.xlu0 %v3437_v37, %s6252_s17  ;;  %v3466_v9 = vrot.slane %v3464_v40, 7  ;;  %v5864_v22 = vpack.c.bf16 %v3161_v4, %v3161_v4  ;;  %v3462_v43 = vrot.slane %v3458_v56, 4 }
 0x3b9   : > { %v3461_v3 = vor.u32 %v3459_v15, %v3458_v56  ;;  %v3442_v16 = vshll.u32 %v5863_v25, 16 }
 0x3ba   : > { %3590 = vrot.lane.b32.xlu1 %v3419_v14, %s6252_s17  ;;  %v3469_v10 = vor.u32 %v3467_v58, %v3466_v9  ;;  %v3441_v61 = vrot.slane %v3439_v48, 7  ;;  %v3447_v12 = vshrl.u32 %v5864_v22, 16  ;;  %v3450_v60 = vshll.u32 %v5864_v22, 16 }
 0x3bb   : > { %v3471_v50 = vrot.slane %v3466_v9, 4 }
 0x3bc   : > { %3592 = vrot.lane.b32.xlu0 %v3420_v42, %s6252_s17  ;;  %v3449_v8 = vrot.slane %v3447_v12, 7  ;;  %v3470_v47 = vsel %vm6402_vm12, %v3462_v43, %v3469_v10  ;;  %v3445_v36 = vrot.slane %v3441_v61, 4  ;;  %v3444_v20 = vor.u32 %v3442_v16, %v3441_v61  ;;  %v3688_v16 = vld [vmem:[#allocation2 + $0x14] sm:$0x1] }
 0x3be   : > { %3606 = vrot.lane.b32.xlu1 %v3461_v3, %s6252_s17  ;;  %v3452_v62 = vor.u32 %v3450_v60, %v3449_v8  ;;  %v3454_v63 = vrot.slane %v3449_v8, 4  ;;  %v3691_v8 = vld [vmem:[#allocation2 + $0x18] sm:$0xf] }
 0x3c0   : > { %3596 = vrot.lane.b32.xlu0 %v7900_v54, %s6252_s17  ;;  %v3453_v39 = vsel %vm6402_vm12, %v3445_v36, %v3452_v62 }
 0x3c2   : > { %3600 = vrot.lane.b32.xlu1 %v3444_v20, %s6252_s17 }
 0x3c4   : > { %3610 = vrot.lane.b32.xlu0 %v3471_v50, %s6252_s17 }
 0x3c6   : > { %3602 = vrot.lane.b32.xlu1 %v3453_v39, %s6252_s17 }
 0x3c8   : > { %3604 = vrot.lane.b32.xlu0 %v3454_v63, %s6252_s17  ;;  %v3684_v63 = vld [vmem:[#allocation2 + $0xc] sm:$0xf] }
 0x3cc   : > { %3608 = vrot.lane.b32.xlu0 %v3470_v47, %s6252_s17 }
 0x3cf   : > { %v3097_v17 = vpop.permute.xlu0 %3096 }
 0x3d0   : > { %v3166_v13 = vmul.f32 %v7621_v32, %v3097_v17 }
 0x3d1   : > { %v3099_v57 = vpop.permute.xlu1 %3098 }
 0x3d2   : > { %v5869_v54 = vpack.c.bf16 %v3166_v13, %v3166_v13  ;;  %v3167_v27 = vmul.f32 %v7628_v55, %v3099_v57 }
 0x3d3   : > { %v3093_v1 = vpop.permute.xlu0 %3092 }
 0x3d4   : > { %v3490_v14 = vshrl.u32 %v5869_v54, 16  ;;  %v5870_v31 = vpack.c.bf16 %v3167_v27, %v3167_v27  ;;  %v3164_v53 = vmul.f32 %v3093_v1, %v7624_v23  ;;  %v3493_v19 = vshll.u32 %v5869_v54, 16 }
 0x3d5   : > { %v3095_v30 = vpop.permute.xlu1 %3094 }
 0x3d6   : > { %v3492_v52 = vrot.slane %v3490_v14, 7  ;;  %v3498_v59 = vshrl.u32 %v5870_v31, 16  ;;  %v5867_v45 = vpack.c.bf16 %v3164_v53, %v3164_v53  ;;  %v3165_v34 = vmul.f32 %v3095_v30, %v7633_v35 }
 0x3d7   : > { %v3501_v41 = vshll.u32 %v5870_v31, 16 }
 0x3d8   : > { %v3495_v0 = vor.u32 %v3493_v19, %v3492_v52  ;;  %v3500_v33 = vrot.slane %v3498_v59, 7  ;;  %v3473_v32 = vshrl.u32 %v5867_v45, 16  ;;  %v3496_v38 = vrot.slane %v3492_v52, 4  ;;  %v3695_v59 = vld [vmem:[#allocation2 + $0x20] sm:$0x1] }
 0x3d9   : > { %v5868_v49 = vpack.c.bf16 %v3165_v34, %v3165_v34  ;;  %v3476_v21 = vshll.u32 %v5867_v45, 16 }
 0x3da   : > { %v3503_v2 = vor.u32 %v3501_v41, %v3500_v33  ;;  %v3505_v55 = vrot.slane %v3500_v33, 4  ;;  %v3475_v26 = vrot.slane %v3473_v32, 7  ;;  %3618 = vrot.lane.b32.xlu1 %v3495_v0, %s6252_s17  ;;  %v3705_v41 = vld [vmem:[#allocation2 + $0x30] sm:$0xf] }
 0x3db   : > { %v3481_v23 = vshrl.u32 %v5868_v49, 16  ;;  %v3484_v29 = vshll.u32 %v5868_v49, 16 }
 0x3dc   : > { %v3478_v5 = vor.u32 %v3476_v21, %v3475_v26  ;;  %3622 = vrot.lane.b32.xlu0 %v3505_v55, %s6252_s17  ;;  %v3504_v24 = vsel %vm6402_vm12, %v3496_v38, %v3503_v2  ;;  %v3479_v18 = vrot.slane %v3475_v26, 4 }
 0x3dd   : > { %v3483_v35 = vrot.slane %v3481_v23, 7  ;;  %v3698_v23 = vld [vmem:[#allocation2 + $0x24] sm:$0xf] }
 0x3de   : > { %3612 = vrot.lane.b32.xlu1 %v3478_v5, %s6252_s17 }
 0x3df   : > { %v3486_v37 = vor.u32 %v3484_v29, %v3483_v35  ;;  %v3488_v25 = vrot.slane %v3483_v35, 4  ;;  %v3709_v35 = vld [vmem:[#allocation2 + $0x38] sm:$0x1] }
 0x3e1   : > { %3616 = vrot.lane.b32.xlu0 %v3488_v25, %s6252_s17  ;;  %v3487_v28 = vsel %vm6402_vm12, %v3479_v18, %v3486_v37 }
 0x3e2   : > { %3614 = vrot.lane.b32.xlu1 %v3487_v28, %s6252_s17 }
 0x3e5   : > { %3620 = vrot.lane.b32.xlu0 %v3504_v24, %s6252_s17 }
 0x3ee   : > { %v3105_v56 = vpop.permute.xlu0 %3104 }
 0x3ef   : > { %v3170_v40 = vmul.f32 %v7643_v6, %v3105_v56 }
 0x3f0   : > { %v3107_v4 = vpop.permute.xlu1 %3106 }
 0x3f1   : > { %v5873_v48 = vpack.c.bf16 %v3170_v40, %v3170_v40  ;;  %v3171_v9 = vmul.f32 %v7650_v44, %v3107_v4 }
 0x3f2   : > { %v3101_v58 = vpop.permute.xlu0 %3100 }
 0x3f3   : > { %v3524_v22 = vshrl.u32 %v5873_v48, 16  ;;  %v5874_v42 = vpack.c.bf16 %v3171_v9, %v3171_v9  ;;  %v3168_v15 = vmul.f32 %v3101_v58, %v7646_v7  ;;  %v3527_v61 = vshll.u32 %v5873_v48, 16  ;;  %v3702_v9 = vld [vmem:[#allocation2 + $0x2c] sm:$0x1]  ;;  %v3719_v58 = vld [vmem:[#allocation2 + $0x48] sm:$0xf] }
 0x3f4   : > { %v3103_v43 = vpop.permute.xlu1 %3102 }
 0x3f5   : > { %v3526_v10 = vrot.slane %v3524_v22, 7  ;;  %v3532_v12 = vshrl.u32 %v5874_v42, 16  ;;  %v5871_v3 = vpack.c.bf16 %v3168_v15, %v3168_v15  ;;  %v3169_v60 = vmul.f32 %v3103_v43, %v7655_v11 }
 0x3f6   : > { %v3547_v47 = vpop.permute.xlu0 %3546  ;;  %v3535_v62 = vshll.u32 %v5874_v42, 16 }
 0x3f7   : > { %v3529_v6 = vor.u32 %v3527_v61, %v3526_v10  ;;  %v3534_v36 = vrot.slane %v3532_v12, 7  ;;  %v3507_v20 = vshrl.u32 %v5871_v3, 16  ;;  %v3530_v44 = vrot.slane %v3526_v10, 4 }
 0x3f8   : > { %v5872_v39 = vpack.c.bf16 %v3169_v60, %v3169_v60  ;;  %v3692_v50 = vsel %vm6395_vm11, %v3547_v47, %v3691_v8  ;;  %v3545_v7 = vpop.permute.xlu1 %3544  ;;  %v3510_v57 = vshll.u32 %v5871_v3, 16 }
 0x3f9   : > { %v3537_v17 = vor.u32 %v3535_v62, %v3534_v36  ;;  %v3509_v13 = vrot.slane %v3507_v20, 7  ;;  %3693 = vst [vmem:[#allocation2 + $0x18] sm:$0xf] %v3692_v50  ;;  %v3689_v11 = vsel %vm6408_vm13, %v3545_v7, %v3688_v16  ;;  %3630 = vrot.lane.b32.xlu1 %v3529_v6, %s6252_s17  ;;  %v3539_v32 = vrot.slane %v3534_v36, 4 }
 0x3fa   : > { %v3515_v27 = vshrl.u32 %v5872_v39, 16  ;;  %3690 = vst [vmem:[#allocation2 + $0x14] sm:$0x1] %v3689_v11  ;;  %v3541_v1 = vpop.permute.xlu0 %3540  ;;  %v3518_v52 = vshll.u32 %v5872_v39, 16 }
 0x3fb   : > { %v3512_v14 = vor.u32 %v3510_v57, %v3509_v13  ;;  %v3685_v31 = vsel %vm6395_vm11, %v3541_v1, %v3684_v63  ;;  %v3538_v53 = vsel %vm6402_vm12, %v3530_v44, %v3537_v17  ;;  %v3513_v45 = vrot.slane %v3509_v13, 4  ;;  %v3712_v1 = vld [vmem:[#allocation2 + $0x3c] sm:$0xf] }
 0x3fc   : > { %v3517_v30 = vrot.slane %v3515_v27, 7  ;;  %3686 = vst [vmem:[#allocation2 + $0xc] sm:$0xf] %v3685_v31  ;;  %v3543_v19 = vpop.permute.xlu1 %3542 }
 0x3fd   : > { %3687 = vst.msk [vmem:[#allocation2 + $0x10] sm:$0xf] %vm9101_vm5, %v3543_v19  ;;  %3624 = vrot.lane.b32.xlu1 %v3512_v14, %s6252_s17  ;;  %vm9108_vm5 = vmmov %vm9102_vm4 }
 0x3fe   : > { %v3520_v34 = vor.u32 %v3518_v52, %v3517_v30  ;;  %v3522_v0 = vrot.slane %v3517_v30, 4  ;;  %v3551_v33 = vpop.permute.xlu0 %3550 }
 0x3ff   : > { %v3696_v38 = vsel %vm6408_vm13, %v3551_v33, %v3695_v59 }
 0x400   : > { %3697 = vst [vmem:[#allocation2 + $0x20] sm:$0x1] %v3696_v38  ;;  %3628 = vrot.lane.b32.xlu0 %v3522_v0, %s6252_s17  ;;  %v3559_v49 = vpop.permute.xlu1 %3558  ;;  %v3521_v2 = vsel %vm6402_vm12, %v3513_v45, %v3520_v34  ;;  %v7985_v26 = vld [vmem:[#allocation2 + $0x18] sm:$0xf]  ;;  %vm9103_vm12 = vmmov %vm9102_vm4  ;;  %v3723_v45 = vld [vmem:[#allocation2 + $0x50] sm:$0x1] }
 0x401   : > { %v3706_v55 = vsel %vm6395_vm11, %v3559_v49, %v3705_v41  ;;  %3634 = vrot.lane.b32.xlu1 %v3539_v32, %s6252_s17  ;;  %v4011_v51 = vshrl.u32 %v7985_v26, 16  ;;  %v4014_v37 = vshll.u32 %v7985_v26, 16  ;;  %v5750_v22 = vrot.slane %v7985_v26, 9  ;;  %v3801_v43 = vld [vmem:[#allocation2 + $0x14] sm:$0x1] }
 0x402   : > { %3707 = vst [vmem:[#allocation2 + $0x30] sm:$0xf] %v3706_v55  ;;  %v3549_v21 = vpop.permute.xlu0 %3548  ;;  %v4486_v50 = vrot.slane %v3801_v43, 5  ;;  %v4006_v63 = vshll.u32 %v3801_v43, 16 }
 0x403   : > { %3694 = vst.msk [vmem:[#allocation2 + $0x1c] sm:$0xf] %vm9102_vm4, %v3549_v21  ;;  %v7988_v5 = vld [vmem:[#allocation2 + $0xc] sm:$0xf]  ;;  %v4013_v10 = vrot.slane %v4011_v51, 4  ;;  %v4016_v61 = vrot.slane %v4014_v37, 5 }
 0x404   : > { %3632 = vrot.lane.b32.xlu0 %v3538_v53, %s6252_s17  ;;  %v3553_v24 = vpop.permute.xlu1 %3552  ;;  %v7992_v29 = vld [vmem:[#allocation2 + $0x10] sm:$0xf]  ;;  %v3987_v28 = vshrl.u32 %v7988_v5, 16  ;;  %v3990_v40 = vshll.u32 %v7988_v5, 16  ;;  %v5749_v34 = vrot.slane %v7988_v5, 9  ;;  %v8058_v37 = vrot.slane %v4006_v63, 5 }
 0x405   : > { %v3699_v18 = vsel %vm6395_vm11, %v3553_v24, %v3698_v23  ;;  %3626 = vrot.lane.b32.xlu1 %v3521_v2, %s6252_s17  ;;  %v5717_v25 = vcombine.low %v7988_v5, %v7992_v29  ;;  %v4483_v42 = vrot.slane %v7992_v29, 5  ;;  %v4000_v15 = vshrl.u32 %v7992_v29, 16 }
 0x406   : > { %3700 = vst [vmem:[#allocation2 + $0x24] sm:$0xf] %v3699_v18  ;;  %v3563_v56 = vpop.permute.xlu0 %3562  ;;  %v3989_v12 = vrot.slane %v3987_v28, 4  ;;  %v3992_v47 = vrot.slane %v3990_v40, 5  ;;  %v3996_v16 = vshll.u32 %v7992_v29, 16  ;;  %v4017_v0 = vor.u32 %v4016_v61, %v4013_v10 }
 0x407   : > { %v3710_v4 = vsel %vm6408_vm13, %v3563_v56, %v3709_v35  ;;  %3947 = vst.msk [vmem:[#allocation3 + $0x8] sm:$0xff] %vm1001_vm14, %v5717_v25  ;;  %v8009_v60 = vld [vmem:[#allocation2 + $0x20] sm:$0x1]  ;;  %v4485_v39 = vrot.slane %v4483_v42, 4  ;;  %v4002_v30 = vrot.slane %v4000_v15, 4  ;;  %v4484_v29 = vsel %vm6367_vm9, %v5749_v34, %v4483_v42 }
 0x408   : > { %3711 = vst [vmem:[#allocation2 + $0x38] sm:$0x1] %v3710_v4  ;;  %v3555_v48 = vpop.permute.xlu1 %3554  ;;  %v4493_v57 = vrot.slane %v8009_v60, 5  ;;  %v3993_v31 = vor.u32 %v3992_v47, %v3989_v12  ;;  %v8023_v53 = vrot.slane %v3996_v16, 5  ;;  %v4030_v32 = vshll.u32 %v8009_v60, 16 }
 0x409   : > { %3701 = vst.msk [vmem:[#allocation2 + $0x28] sm:$0xf] %vm9103_vm12, %v3555_v48  ;;  %v4487_v55 = vsel %vm6367_vm9, %v4485_v39, %v4486_v50  ;;  %v4018_v18 = vrot.slane %v4017_v0, 4  ;;  %v3716_v56 = vld [vmem:[#allocation2 + $0x44] sm:$0x1]  ;;  %vm9109_vm12 = vmmov %vm9102_vm4 }
 0x40a   : > { %v3557_v3 = vpop.permute.xlu0 %3556  ;;  %v3803_v8 = vld [vmem:[#allocation2 + $0x1c] sm:$0xf]  ;;  %v8049_v24 = vrot.slane %v3993_v31, 4  ;;  %v4003_v35 = vor.u32 %v4002_v30, %v8023_v53  ;;  %v5765_v28 = vcombine.low %v4484_v29, %v4487_v55 }
 0x40b   : > { %v3703_v6 = vsel %vm6408_vm13, %v3557_v3, %v3702_v9  ;;  %v5718_v36 = vcombine.low %v7985_v26, %v3803_v8  ;;  %v4024_v62 = vshrl.u32 %v3803_v8, 16  ;;  %v4490_v20 = vrot.slane %v3803_v8, 5  ;;  %v8041_v26 = vld [vmem:[#allocation2 + $0x30] sm:$0xf]  ;;  %v3733_v9 = vld [vmem:[#allocation2 + $0x60] sm:$0xf] }
 0x40c   : > { %3704 = vst [vmem:[#allocation2 + $0x2c] sm:$0x1] %v3703_v6  ;;  %v3571_v44 = vpop.permute.xlu1 %3570  ;;  %v4020_v7 = vshll.u32 %v3803_v8, 16  ;;  %v4059_v40 = vshrl.u32 %v8041_v26, 16  ;;  %v4062_v4 = vshll.u32 %v8041_v26, 16  ;;  %v5752_v15 = vrot.slane %v8041_v26, 9 }
 0x40d   : > { %v3720_v17 = vsel %vm6395_vm11, %v3571_v44, %v3719_v58  ;;  %4938 = vrot.lane.b32.xlu0 %v5718_v36, %s6247_s27  ;;  %3948 = vst.msk [vmem:[#allocation3 + $0x10] sm:$0xff] %vm1001_vm14, %v5718_v36  ;;  %4705 = vrot.lane.b32.xlu1 %v5718_v36, %s6246_s26  ;;  %v4492_v13 = vrot.slane %v4490_v20, 4  ;;  %v4026_v11 = vrot.slane %v4024_v62, 4  ;;  %v4491_v19 = vsel %vm6367_vm9, %v5750_v22, %v4490_v20  ;;  %v8032_v38 = vld [vmem:[#allocation2 + $0x24] sm:$0xf] }
 0x40e   : > { %3721 = vst [vmem:[#allocation2 + $0x48] sm:$0xf] %v3720_v17  ;;  %v3561_v27 = vpop.permute.xlu0 %3560  ;;  %v8021_v14 = vrot.slane %v4020_v7, 5  ;;  %v4035_v48 = vshrl.u32 %v8032_v38, 16  ;;  %v4032_v22 = vrot.slane %v4030_v32, 5  ;;  %v4038_v42 = vshll.u32 %v8032_v38, 16 }
 0x40f   : > { %3708 = vst.msk [vmem:[#allocation2 + $0x34] sm:$0xf] %vm9104_vm6, %v3561_v27  ;;  %v4494_v59 = vsel %vm6367_vm9, %v4492_v13, %v4493_v57  ;;  %v3999_v3 = vsel %vm6381_vm10, %v8049_v24, %v8023_v53  ;;  %v4004_v8 = vrot.slane %v4003_v35, 4  ;;  %v4061_v44 = vrot.slane %v4059_v40, 4  ;;  %v3810_v13 = vld [vmem:[#allocation2 + $0x38] sm:$0x1]  ;;  %vm9110_vm6 = vmmov %vm9102_vm4 }
 0x410   : > { %v3565_v33 = vpop.permute.xlu1 %3564  ;;  %v5766_v41 = vcombine.low %v4491_v19, %v4494_v59  ;;  %v8034_v49 = vld [vmem:[#allocation2 + $0x28] sm:$0xf]  ;;  %v4027_v21 = vor.u32 %v4026_v11, %v8021_v14  ;;  %v4064_v39 = vrot.slane %v4062_v4, 5  ;;  %v8087_v7 = vrot.slane %v4035_v48, 4 }
 0x411   : > { %v3713_v2 = vsel %vm6395_vm11, %v3565_v33, %v3712_v1  ;;  %4703 = vrot.lane.b32.xlu0 %v5717_v25, %s6246_s26  ;;  %v8046_v23 = vcombine.low %v8032_v38, %v8034_v49  ;;  %v4048_v61 = vshrl.u32 %v8034_v49, 16  ;;  %v4497_v60 = vrot.slane %v8034_v49, 5  ;;  %v3726_v1 = vld [vmem:[#allocation2 + $0x54] sm:$0xf] }
 0x412   : > { %3714 = vst [vmem:[#allocation2 + $0x3c] sm:$0xf] %v3713_v2  ;;  %4871 = vrot.lane.b32.xlu1 %v5766_v41, %s6248_s28  ;;  %v3575_v5 = vpop.permute.xlu0 %3574  ;;  %v4028_v58 = vrot.slane %v4027_v21, 4  ;;  %v4044_v62 = vshll.u32 %v8034_v49, 16  ;;  %v4040_v19 = vrot.slane %v4038_v42, 5  ;;  %v4023_v59 = vsel %vm6381_vm10, %v4018_v18, %v8021_v14 }
 0x413   : > { %v3724_v51 = vsel %vm6408_vm13, %v3575_v5, %v3723_v45  ;;  %3949 = vst.msk [vmem:[#allocation3 + $0x18] sm:$0xff] %vm1001_vm14, %v8046_v23  ;;  %v8083_v36 = vld [vmem:[#allocation2 + $0x2c] sm:$0x1]  ;;  %v4499_v31 = vrot.slane %v4497_v60, 4  ;;  %v3737_v45 = vld [vmem:[#allocation2 + $0x68] sm:$0x1]  ;;  %v4009_v34 = vsel %vm6381_vm10, %v4004_v8, %v8058_v37  ;;  %v4065_v2 = vor.u32 %v4064_v39, %v4061_v44 }
 0x414   : > { %3725 = vst [vmem:[#allocation2 + $0x50] sm:$0x1] %v3724_v51  ;;  %v3567_v25 = vpop.permute.xlu1 %3566  ;;  %v4033_v17 = vsel %vm6381_vm10, %v4028_v58, %v4032_v22  ;;  %v4500_v53 = vrot.slane %v8083_v36, 5  ;;  %v8109_v0 = vrot.slane %v4044_v62, 5  ;;  %v4050_v33 = vrot.slane %v4048_v61, 4 }
 0x415   : > { %3715 = vst.msk [vmem:[#allocation2 + $0x40] sm:$0xf] %vm9106_vm7, %v3567_v25  ;;  %5104 = vrot.lane.b32.xlu0 %v5766_v41, %s6249_s29  ;;  %v8111_v32 = vcombine.low %v4023_v59, %v4033_v17  ;;  %v5751_v49 = vrot.slane %v8032_v38, 9  ;;  %v4078_v55 = vshll.u32 %v3810_v13, 16  ;;  %v8121_v35 = vld [vmem:[#allocation2 + $0x48] sm:$0xf]  ;;  %v8130_v18 = vcombine.low %v3999_v3, %v4009_v34  ;;  %vm9111_vm7 = vmmov %vm9102_vm4 }
 0x416   : > { %4636 = vrot.lane.b32.xlu1 %v5765_v28, %s6244_s24  ;;  %v3569_v43 = vpop.permute.xlu0 %3568  ;;  %v8068_v10 = vld [vmem:[#allocation2 + $0x34] sm:$0xf]  ;;  %v4507_v37 = vrot.slane %v3810_v13, 5  ;;  %v4501_v25 = vsel %vm6367_vm9, %v4499_v31, %v4500_v53  ;;  %v4051_v4 = vor.u32 %v4050_v33, %v8109_v0  ;;  %v4054_v48 = vshll.u32 %v8083_v36, 16  ;;  %v3730_v58 = vld [vmem:[#allocation2 + $0x5c] sm:$0x1] }
 0x417   : > { %v3717_v47 = vsel %vm6408_vm13, %v3569_v43, %v3716_v56  ;;  %v8080_v16 = vcombine.low %v8041_v26, %v8068_v10  ;;  %v4072_v6 = vshrl.u32 %v8068_v10, 16  ;;  %v4068_v50 = vshll.u32 %v8068_v10, 16  ;;  %v3747_v61 = vld [vmem:[#allocation2 + $0x78] sm:$0xf]  ;;  %v3740_v31 = vld [vmem:[#allocation2 + $0x6c] sm:$0xf] }
 0x418   : > { %3718 = vst [vmem:[#allocation2 + $0x44] sm:$0x1] %v3717_v47  ;;  %v3583_v20 = vpop.permute.xlu1 %3582  ;;  %v4504_v57 = vrot.slane %v8068_v10, 5  ;;  %v4498_v40 = vsel %vm6367_vm9, %v5751_v49, %v4497_v60  ;;  %v4107_v22 = vshrl.u32 %v8121_v35, 16  ;;  %v4110_v42 = vshll.u32 %v8121_v35, 16 }
 0x419   : > { %v3734_v63 = vsel %vm6395_vm11, %v3583_v20, %v3733_v9  ;;  %4638 = vrot.lane.b32.xlu0 %v5766_v41, %s6244_s24  ;;  %3950 = vst.msk [vmem:[#allocation3 + $0x20] sm:$0xff] %vm1001_vm14, %v8080_v16  ;;  %v4074_v11 = vrot.slane %v4072_v6, 4  ;;  %v8100_v30 = vrot.slane %v4068_v50, 5  ;;  %v8114_v21 = vld [vmem:[#allocation2 + $0x3c] sm:$0xf]  ;;  %v4080_v43 = vrot.slane %v4078_v55, 5 }
 0x41a   : > { %3735 = vst [vmem:[#allocation2 + $0x60] sm:$0xf] %v3734_v63  ;;  %4709 = vrot.lane.b32.xlu1 %v8080_v16, %s6246_s26  ;;  %v3573_v27 = vpop.permute.xlu0 %3572  ;;  %v4506_v24 = vrot.slane %v4504_v57, 4  ;;  %v8151_v8 = vcombine.low %v4498_v40, %v4501_v25  ;;  %v4066_v60 = vrot.slane %v4065_v2, 4  ;;  %v4505_v62 = vsel %vm6367_vm9, %v5752_v15, %v4504_v57  ;;  %v3751_v34 = vld [vmem:[#allocation2 + $0x80] sm:$0x1] }
 0x41b   : > { %3722 = vst.msk [vmem:[#allocation2 + $0x4c] sm:$0xf] %vm9108_vm5, %v3573_v27  ;;  %v4075_v51 = vor.u32 %v4074_v11, %v8100_v30  ;;  %v4083_v20 = vshrl.u32 %v8114_v21, 16  ;;  %v4086_v44 = vshll.u32 %v8114_v21, 16  ;;  %v4052_v63 = vrot.slane %v4051_v4, 4  ;;  %vm9112_vm5 = vmmov %vm9102_vm4 }
 0x41c   : > { %v3577_v41 = vpop.permute.xlu1 %3576  ;;  %v8116_v5 = vld [vmem:[#allocation2 + $0x40] sm:$0xf]  ;;  %v4508_v3 = vsel %vm6367_vm9, %v4506_v24, %v4507_v37  ;;  %v4056_v17 = vrot.slane %v4054_v48, 5  ;;  %v8173_v15 = vld [vmem:[#allocation2 + $0x50] sm:$0x1]  ;;  %v5754_v57 = vrot.slane %v8121_v35, 9  ;;  %v4071_v53 = vsel %vm6381_vm10, %v4066_v60, %v8100_v30 }
 0x41d   : > { %v3727_v14 = vsel %vm6395_vm11, %v3577_v41, %v3726_v1  ;;  %4869 = vrot.lane.b32.xlu0 %v5765_v28, %s6248_s28  ;;  %v8126_v29 = vcombine.low %v8114_v21, %v8116_v5  ;;  %v4041_v28 = vor.u32 %v4040_v19, %v8087_v7  ;;  %v4511_v10 = vrot.slane %v8116_v5, 5 }
 0x41e   : > { %3728 = vst [vmem:[#allocation2 + $0x54] sm:$0xf] %v3727_v14  ;;  %4796 = vrot.lane.b32.xlu1 %v8111_v32, %s6250_s9  ;;  %v3587_v38 = vpop.permute.xlu0 %3586  ;;  %v4076_v47 = vrot.slane %v4075_v51, 4  ;;  %v8171_v13 = vcombine.low %v4505_v62, %v4508_v3  ;;  %v4096_v33 = vshrl.u32 %v8116_v5, 16  ;;  %v8195_v49 = vrot.slane %v4107_v22, 4 }
 0x41f   : > { %v3738_v56 = vsel %vm6408_vm13, %v3587_v38, %v3737_v45  ;;  %3951 = vst.msk [vmem:[#allocation3 + $0x28] sm:$0xff] %vm1001_vm14, %v8126_v29  ;;  %v8153_v6 = vld [vmem:[#allocation2 + $0x44] sm:$0x1]  ;;  %v4042_v39 = vrot.slane %v4041_v28, 4  ;;  %v4513_v11 = vrot.slane %v4511_v10, 4  ;;  %v8197_v30 = vrot.slane %v4110_v42, 5 }
 0x420   : > { %3739 = vst [vmem:[#allocation2 + $0x68] sm:$0x1] %v3738_v56  ;;  %v3579_v9 = vpop.permute.xlu1 %3578  ;;  %v4514_v27 = vrot.slane %v8153_v6, 5  ;;  %v4081_v19 = vsel %vm6381_vm10, %v4076_v47, %v4080_v43  ;;  %v4057_v2 = vsel %vm6381_vm10, %v4052_v63, %v4056_v17  ;;  %v4521_v55 = vrot.slane %v8173_v15, 5  ;;  %v3761_v63 = vld [vmem:[#allocation2 + $0x90] sm:$0xf] }
 0x421   : > { %3729 = vst.msk [vmem:[#allocation2 + $0x58] sm:$0xf] %vm9102_vm4, %v3579_v9  ;;  %4942 = vrot.lane.b32.xlu0 %v8080_v16, %s6247_s27  ;;  %v4047_v41 = vsel %vm6381_vm10, %v4042_v39, %v8109_v0  ;;  %v8204_v14 = vld [vmem:[#allocation2 + $0x60] sm:$0xf]  ;;  %v8208_v51 = vcombine.low %v4071_v53, %v4081_v19 }
 0x422   : > { %4940 = vrot.lane.b32.xlu1 %v8046_v23, %s6247_s27  ;;  %v3581_v36 = vpop.permute.xlu0 %3580  ;;  %v8161_v16 = vld [vmem:[#allocation2 + $0x4c] sm:$0xf]  ;;  %v4515_v38 = vsel %vm6367_vm9, %v4513_v11, %v4514_v27  ;;  %v4155_v22 = vshrl.u32 %v8204_v14, 16  ;;  %v4158_v42 = vshll.u32 %v8204_v14, 16 }
 0x423   : > { %v3731_v50 = vsel %vm6408_vm13, %v3581_v36, %v3730_v58  ;;  %v8169_v7 = vcombine.low %v8121_v35, %v8161_v16  ;;  %v4518_v59 = vrot.slane %v8161_v16, 5  ;;  %v4116_v24 = vshll.u32 %v8161_v16, 16  ;;  %v3744_v36 = vld [vmem:[#allocation2 + $0x74] sm:$0x1] }
 0x424   : > { %3732 = vst [vmem:[#allocation2 + $0x5c] sm:$0x1] %v3731_v50  ;;  %v3595_v26 = vpop.permute.xlu1 %3594  ;;  %v4120_v0 = vshrl.u32 %v8161_v16, 16  ;;  %v8229_v58 = vcombine.low %v4047_v41, %v4057_v2  ;;  %v4157_v19 = vrot.slane %v4155_v22, 4  ;;  %v8279_v41 = vrot.slane %v4086_v44, 5 }
 0x425   : > { %v3748_v1 = vsel %vm6395_vm11, %v3595_v26, %v3747_v61  ;;  %5029 = vrot.lane.b32.xlu0 %v8111_v32, %s6251_s10  ;;  %3952 = vst.msk [vmem:[#allocation3 + $0x30] sm:$0xff] %vm1001_vm14, %v8169_v7  ;;  %v8213_v25 = vld [vmem:[#allocation2 + $0x54] sm:$0xf]  ;;  %v4520_v40 = vrot.slane %v4518_v59, 4  ;;  %v8241_v3 = vrot.slane %v4116_v24, 5 }
 0x426   : > { %3749 = vst [vmem:[#allocation2 + $0x78] sm:$0xf] %v3748_v1  ;;  %4398 = vrot.lane.b32.xlu1 %v8111_v32, %s6245_s25  ;;  %v3585_v45 = vpop.permute.xlu0 %3584  ;;  %v5753_v32 = vrot.slane %v8114_v21, 9  ;;  %v8247_v62 = vrot.slane %v4120_v0, 4  ;;  %v4131_v16 = vshrl.u32 %v8213_v25, 16  ;;  %v5755_v39 = vrot.slane %v8213_v25, 9 }
 0x427   : > { %3736 = vst.msk [vmem:[#allocation2 + $0x64] sm:$0xf] %vm9109_vm12, %v3585_v45  ;;  %v4522_v17 = vsel %vm6367_vm9, %v4520_v40, %v4521_v55  ;;  %v4134_v26 = vshll.u32 %v8213_v25, 16  ;;  %v4160_v0 = vrot.slane %v4158_v42, 5  ;;  %vm9119_vm12 = vmmov %vm9102_vm4 }
 0x428   : > { %v3589_v35 = vpop.permute.xlu1 %3588  ;;  %v8215_v28 = vld [vmem:[#allocation2 + $0x58] sm:$0xf]  ;;  %v4512_v4 = vsel %vm6367_vm9, %v5753_v32, %v4511_v10  ;;  %v4519_v10 = vsel %vm6367_vm9, %v5754_v57, %v4518_v59  ;;  %v4092_v57 = vshll.u32 %v8116_v5, 16  ;;  %v4123_v55 = vor.u32 %v8247_v62, %v8241_v3  ;;  %v8285_v32 = vld [vmem:[#allocation2 + $0x68] sm:$0x1] }
 0x429   : > { %v3741_v56 = vsel %vm6395_vm11, %v3589_v35, %v3740_v31  ;;  %4707 = vrot.lane.b32.xlu0 %v8046_v23, %s6246_s26  ;;  %v8225_v48 = vcombine.low %v8213_v25, %v8215_v28  ;;  %v8239_v61 = vcombine.low %v4512_v4, %v4515_v38  ;;  %v4525_v50 = vrot.slane %v8215_v28, 5  ;;  %v3754_v4 = vld [vmem:[#allocation2 + $0x84] sm:$0xf] }
 0x42a   : > { %3742 = vst [vmem:[#allocation2 + $0x6c] sm:$0xf] %v3741_v56  ;;  %4396 = vrot.lane.b32.xlu1 %v8130_v18, %s6245_s25  ;;  %v3599_v9 = vpop.permute.xlu0 %3598  ;;  %v8266_v31 = vrot.slane %v4083_v20, 4  ;;  %v8281_v2 = vcombine.low %v4519_v10, %v4522_v17  ;;  %v4144_v44 = vshrl.u32 %v8215_v28, 16  ;;  %v8298_v38 = vrot.slane %v4092_v57, 5 }
 0x42b   : > { %v3752_v43 = vsel %vm6408_vm13, %v3599_v9, %v3751_v34  ;;  %3953 = vst.msk [vmem:[#allocation3 + $0x38] sm:$0xff] %vm1001_vm14, %v8225_v48  ;;  %v8245_v60 = vld [vmem:[#allocation2 + $0x5c] sm:$0x1]  ;;  %v4527_v53 = vrot.slane %v4525_v50, 4  ;;  %v8302_v25 = vrot.slane %v4096_v33, 4  ;;  %v4161_v22 = vor.u32 %v4160_v0, %v4157_v19  ;;  %v6098_v0 = vld [vmem:[%s9073_s4] sm:$0xff]  }
 0x42c   : > { %3753 = vst [vmem:[#allocation2 + $0x80] sm:$0x1] %v3752_v43  ;;  %v3591_v47 = vpop.permute.xlu1 %3590  ;;  %v4528_v11 = vrot.slane %v8245_v60, 5  ;;  %v3765_v10 = vld [vmem:[#allocation2 + $0x98] sm:$0x1]  ;;  %6002 = vmatprep.subr.bf16.mxu1 %v6098_v0 }
 0x42d   : > { %3743 = vst.msk [vmem:[#allocation2 + $0x70] sm:$0xf] %vm9110_vm6, %v3591_v47  ;;  %4794 = vrot.lane.b32.xlu0 %v8130_v18, %s6250_s9  ;;  %v4526_v18 = vsel %vm6367_vm9, %v5755_v39, %v4525_v50  ;;  %v8289_v35 = vld [vmem:[#allocation2 + $0x78] sm:$0xf]  ;;  %v4174_v47 = vshll.u32 %v8285_v32, 16  ;;  %v4162_v50 = vrot.slane %v4161_v22, 4  ;;  %6003 = vmatpush3.bf16.msra.mxu1 %v6098_v0  ;;  %vm9121_vm6 = vmmov %vm9102_vm4 }
 0x42e   : > { %4875 = vrot.lane.b32.xlu1 %v8171_v13, %s6248_s28  ;;  %v3593_v27 = vpop.permute.xlu0 %3592  ;;  %v8262_v1 = vld [vmem:[#allocation2 + $0x64] sm:$0xf]  ;;  %v4529_v24 = vsel %vm6367_vm9, %v4527_v53, %v4528_v11  ;;  %v4203_v5 = vshrl.u32 %v8289_v35, 16  ;;  %v4206_v33 = vshll.u32 %v8289_v35, 16  ;;  %v4133_v11 = vrot.slane %v4131_v16, 4 }
 0x42f   : > { %v3745_v59 = vsel %vm6408_vm13, %v3593_v27, %v3744_v36  ;;  %v8274_v45 = vcombine.low %v8204_v14, %v8262_v1  ;;  %v4168_v34 = vshrl.u32 %v8262_v1, 16  ;;  %v8308_v9 = vcombine.low %v4526_v18, %v4529_v24 }
 0x430   : > { %3746 = vst [vmem:[#allocation2 + $0x74] sm:$0x1] %v3745_v59  ;;  %v3607_v20 = vpop.permute.xlu1 %3606  ;;  %v4164_v42 = vshll.u32 %v8262_v1, 16  ;;  %v4176_v18 = vrot.slane %v4174_v47, 5  ;;  %v4136_v24 = vrot.slane %v4134_v26, 5  ;;  %v5758_v22 = vrot.slane %v8289_v35, 9 }
 0x431   : > { %v3762_v21 = vsel %vm6395_vm11, %v3607_v20, %v3761_v63  ;;  %5108 = vrot.lane.b32.xlu0 %v8171_v13, %s6249_s29  ;;  %3954 = vst.msk [vmem:[#allocation3 + $0x40] sm:$0xff] %vm1001_vm14, %v8274_v45  ;;  %v8304_v56 = vld [vmem:[#allocation2 + $0x6c] sm:$0xf]  ;;  %v4170_v43 = vrot.slane %v4168_v34, 4 }
 0x432   : > { %3763 = vst [vmem:[#allocation2 + $0x90] sm:$0xf] %v3762_v21  ;;  %4640 = vrot.lane.b32.xlu1 %v8151_v8, %s6244_s24  ;;  %v3597_v40 = vpop.permute.xlu0 %3596  ;;  %v4179_v36 = vshrl.u32 %v8304_v56, 16  ;;  %v4166_v63 = vrot.slane %v4164_v42, 5  ;;  %v4182_v57 = vshll.u32 %v8304_v56, 16  ;;  %v4137_v47 = vor.u32 %v4136_v24, %v4133_v11 }
 0x433   : > { %3750 = vst.msk [vmem:[#allocation2 + $0x7c] sm:$0xf] %vm9111_vm7, %v3597_v40  ;;  %v8328_v59 = vld [vmem:[#allocation2 + $0x80] sm:$0x1]  ;;  %v4146_v40 = vrot.slane %v4144_v44, 4 }
 0x434   : > { %v3601_v39 = vpop.permute.xlu1 %3600  ;;  %v8316_v17 = vld [vmem:[#allocation2 + $0x70] sm:$0xf]  ;;  %v4167_v34 = vsel %vm6381_vm10, %v4162_v50, %v4166_v63  ;;  %v4171_v20 = vor.u32 %v4170_v43, %v4166_v63  ;;  %v4549_v50 = vrot.slane %v8328_v59, 5  ;;  %v4138_v24 = vrot.slane %v4137_v47, 4 }
 0x435   : > { %v3755_v27 = vsel %vm6395_vm11, %v3601_v39, %v3754_v4  ;;  %4642 = vrot.lane.b32.xlu0 %v8171_v13, %s6244_s24  ;;  %v8325_v53 = vcombine.low %v8304_v56, %v8316_v17  ;;  %v4192_v19 = vshrl.u32 %v8316_v17, 16  ;;  %v4140_v13 = vshll.u32 %v8215_v28, 16  ;;  %v3758_v28 = vld [vmem:[#allocation2 + $0x8c] sm:$0x1] }
 0x436   : > { %3756 = vst [vmem:[#allocation2 + $0x84] sm:$0xf] %v3755_v27  ;;  %4713 = vrot.lane.b32.xlu1 %v8169_v7, %s6246_s26  ;;  %v3611_v16 = vpop.permute.xlu0 %3610  ;;  %v4150_v4 = vshll.u32 %v8245_v60, 16  ;;  %v4172_v43 = vrot.slane %v4171_v20, 4  ;;  %v5757_v60 = vrot.slane %v8304_v56, 9 }
 0x437   : > { %v3766_v21 = vsel %vm6408_vm13, %v3611_v16, %v3765_v10  ;;  %3955 = vst.msk [vmem:[#allocation3 + $0x48] sm:$0xff] %vm1001_vm14, %v8325_v53  ;;  %v8344_v42 = vld [vmem:[#allocation2 + $0x74] sm:$0x1]  ;;  %v4142_v39 = vrot.slane %v4140_v13, 5  ;;  %v4539_v10 = vrot.slane %v8316_v17, 5 }
 0x438   : > { %3767 = vst [vmem:[#allocation2 + $0x98] sm:$0x1] %v3766_v21  ;;  %v3603_v26 = vpop.permute.xlu1 %3602  ;;  %v4152_v44 = vrot.slane %v4150_v4, 5  ;;  %v4542_v63 = vrot.slane %v8344_v42, 5  ;;  %v4177_v20 = vsel %vm6381_vm10, %v4172_v43, %v4176_v18  ;;  %v6100_v4 = vld [vmem:[%s9073_s4 + $0x8] sm:$0xff]  }
 0x439   : > { %3757 = vst.msk [vmem:[#allocation2 + $0x88] sm:$0xf] %vm9112_vm5, %v3603_v26  ;;  %5106 = vrot.lane.b32.xlu0 %v8151_v8, %s6249_s29  ;;  %v8353_v27 = vld [vmem:[#allocation2 + $0x90] sm:$0xf]  ;;  %v4147_v13 = vor.u32 %v4146_v40, %v4142_v39  ;;  %v8368_v37 = vcombine.low %v4167_v34, %v4177_v20  ;;  %v4143_v18 = vsel %vm6381_vm10, %v4138_v24, %v4142_v39  ;;  %v4208_v39 = vrot.slane %v4206_v33, 5 }
 0x43a   : > { %4800 = vrot.lane.b32.xlu1 %v8208_v51, %s6250_s9  ;;  %v3605_v11 = vpop.permute.xlu0 %3604  ;;  %v3827_v16 = vld [vmem:[#allocation2 + $0x7c] sm:$0xf]  ;;  %v4251_v21 = vshrl.u32 %v8353_v27, 16  ;;  %v4540_v47 = vsel %vm6367_vm9, %v5757_v60, %v4539_v10  ;;  %6004 = vmatprep.subr.bf16.mxu1 %v6100_v4  ;;  %v4254_v34 = vshll.u32 %v8353_v27, 16  ;;  %vm9124_vm5 = vcmask 195744  }
 0x43b   : > { %v3759_v26 = vsel %vm6408_vm13, %v3605_v11, %v3758_v28  ;;  %v8366_v0 = vcombine.low %v8289_v35, %v3827_v16  ;;  %v4216_v23 = vshrl.u32 %v3827_v16, 16  ;;  %v4148_v40 = vrot.slane %v4147_v13, 4  ;;  %6005 = vmatpush3.bf16.msra.mxu1 %v6100_v4 }
 0x43c   : > { %3760 = vst [vmem:[#allocation2 + $0x8c] sm:$0x1] %v3759_v26  ;;  %v4546_v43 = vrot.slane %v3827_v16, 5  ;;  %v4541_v28 = vrot.slane %v4539_v10, 4  ;;  %v4205_v11 = vrot.slane %v4203_v5, 4  ;;  %v4212_v24 = vshll.u32 %v3827_v16, 16 }
 0x43d   : > { %4873 = vrot.lane.b32.xlu0 %v8151_v8, %s6248_s28  ;;  %3956 = vst.msk [vmem:[#allocation3 + $0x50] sm:$0xff] %vm1001_vm14, %v8366_v0  ;;  %v4153_v8 = vsel %vm6381_vm10, %v4148_v40, %v4152_v44  ;;  %v8389_v13 = vld [vmem:[#allocation2 + $0x84] sm:$0xf]  ;;  %v4218_v4 = vrot.slane %v4216_v23, 4 }
 0x43e   : > { %4944 = vrot.lane.b32.xlu1 %v8126_v29, %s6247_s27  ;;  %v3609_v60 = vpop.permute.xlu0 %3608  ;;  %v4547_v20 = vsel %vm6367_vm9, %v5758_v22, %v4546_v43  ;;  %v4548_v10 = vrot.slane %v4546_v43, 4  ;;  %v8392_v5 = vcombine.low %v4143_v18, %v4153_v8  ;;  %v4543_v35 = vsel %vm6367_vm9, %v4541_v28, %v4542_v63 }
 0x43f   : > { %3764 = vst.msk [vmem:[#allocation2 + $0x94] sm:$0xf] %vm9102_vm4, %v3609_v60  ;;  %v4209_v33 = vor.u32 %v4208_v39, %v4205_v11  ;;  %v8398_v44 = vcombine.low %v4540_v47, %v4543_v35  ;;  %v4214_v40 = vrot.slane %v4212_v24, 5  ;;  %v4222_v22 = vshll.u32 %v8328_v59, 16  ;;  %v8419_v11 = vld [vmem:[#allocation2 + $0x98] sm:$0x1] }
 0x440   : > { %v4550_v26 = vsel %vm6367_vm9, %v4548_v10, %v4549_v50  ;;  %v8401_v16 = vld [vmem:[#allocation2 + $0x88] sm:$0xf]  ;;  %v6101_v50 = vld [vmem:[%s9073_s4 + $0x10] ss:$0 sps:$4 sm:$0x33]   ;;  %v4181_v60 = vrot.slane %v4179_v36, 4 }
 0x441   : > { %4946 = vrot.lane.b32.xlu0 %v8169_v7, %s6247_s27  ;;  %v8405_v18 = vcombine.low %v4547_v20, %v4550_v26  ;;  %v4210_v43 = vrot.slane %v4209_v33, 4  ;;  %v8409_v63 = vcombine.low %v8389_v13, %v8401_v16  ;;  %v4219_v59 = vor.u32 %v4218_v4, %v4214_v40  ;;  %6045 = vmatprep.subr.msk.bf16.mxu1 %vm2323_vm15, %v6101_v50 }
 0x442   : > { %4402 = vrot.lane.b32.xlu1 %v8208_v51, %s6245_s25  ;;  %v4224_v47 = vrot.slane %v4222_v22, 5  ;;  %v4184_v8 = vrot.slane %v4182_v57, 5  ;;  %v4188_v20 = vshll.u32 %v8316_v17, 16  ;;  %v4194_v35 = vrot.slane %v4192_v19, 4 }
 0x443   : > { %v4215_v39 = vsel %vm6381_vm10, %v4210_v43, %v4214_v40  ;;  %3957 = vst.msk [vmem:[#allocation3 + $0x58] sm:$0xff] %vm1001_vm14, %v8409_v63  ;;  %v8430_v10 = vld [vmem:[#allocation2 + $0x8c] sm:$0x1]  ;;  %v4220_v24 = vrot.slane %v4219_v59, 4  ;;  %v4198_v33 = vshll.u32 %v8344_v42, 16  ;;  %v5760_v4 = vrot.slane %v8353_v27, 9 }
 0x444   : > { %v4185_v36 = vor.u32 %v4184_v8, %v4181_v60  ;;  %v4190_v56 = vrot.slane %v4188_v20, 5  ;;  %v4563_v57 = vrot.slane %v8419_v11, 5  ;;  %v5759_v26 = vrot.slane %v8389_v13, 9 }
 0x445   : > { %5033 = vrot.lane.b32.xlu0 %v8208_v51, %s6251_s10  ;;  %v4225_v17 = vsel %vm6381_vm10, %v4220_v24, %v4224_v47  ;;  %v4200_v19 = vrot.slane %v4198_v33, 5  ;;  %v4553_v42 = vrot.slane %v8401_v16, 5  ;;  %v4556_v22 = vrot.slane %v8430_v10, 5  ;;  %v3775_v33 = vld [vmem:[#allocation2 + $0xa8] sm:$0xf] }
 0x446   : > { %5031 = vrot.lane.b32.xlu1 %v8229_v58, %s6251_s10  ;;  %v3833_v40 = vld [vmem:[#allocation2 + $0x94] sm:$0xf]  ;;  %v8450_v59 = vcombine.low %v4215_v39, %v4225_v17  ;;  %v4186_v60 = vrot.slane %v4185_v36, 4  ;;  %v4195_v8 = vor.u32 %v4194_v35, %v4190_v56  ;;  %v4253_v39 = vrot.slane %v4251_v21, 4 }
 0x447   : > { %v8448_v51 = vcombine.low %v8353_v27, %v3833_v40  ;;  %v4264_v43 = vshrl.u32 %v3833_v40, 16  ;;  %v4560_v20 = vrot.slane %v3833_v40, 5  ;;  %v4554_v28 = vsel %vm6367_vm9, %v5759_v26, %v4553_v42 }
 0x448   : > { %v4555_v7 = vrot.slane %v4553_v42, 4  ;;  %v4191_v47 = vsel %vm6381_vm10, %v4186_v60, %v4190_v56  ;;  %v4256_v24 = vrot.slane %v4254_v34, 5  ;;  %v4260_v35 = vshll.u32 %v3833_v40, 16  ;;  %v3779_v34 = vld [vmem:[#allocation2 + $0xb0] sm:$0x1] }
 0x449   : > { %4711 = vrot.lane.b32.xlu0 %v8126_v29, %s6246_s26  ;;  %3958 = vst.msk [vmem:[#allocation3 + $0x60] sm:$0xff] %vm1001_vm14, %v8448_v51  ;;  %v4196_v36 = vrot.slane %v4195_v8, 4  ;;  %v4561_v29 = vsel %vm6367_vm9, %v5760_v4, %v4560_v20  ;;  %v4562_v26 = vrot.slane %v4560_v20, 4  ;;  %v4266_v60 = vrot.slane %v4264_v43, 4 }
 0x44a   : > { %4400 = vrot.lane.b32.xlu1 %v8229_v58, %s6245_s25  ;;  %v4557_v17 = vsel %vm6367_vm9, %v4555_v7, %v4556_v22  ;;  %v4257_v42 = vor.u32 %v4256_v24, %v4253_v39  ;;  %v4262_v21 = vrot.slane %v4260_v35, 5  ;;  %v4270_v23 = vshll.u32 %v8419_v11, 16  ;;  %v3768_v11 = vld [vmem:[#allocation2 + $0x9c] sm:$0xf] }
 0x44b   : > { %v8470_v56 = vcombine.low %v4554_v28, %v4557_v17  ;;  %v4201_v40 = vsel %vm6381_vm10, %v4196_v36, %v4200_v19  ;;  %v4564_v8 = vsel %vm6367_vm9, %v4562_v26, %v4563_v57  ;;  %v5253_v4 = vsel %vm2323_vm15, %v6101_v50, 0  ;;  %vm9118_vm15 = vmmov %vm9102_vm4 }
 0x44c   : > { %v3619_v27 = vpop.permute.xlu1 %3618  ;;  %v8482_v28 = vcombine.low %v4191_v47, %v4201_v40  ;;  %v8484_v22 = vcombine.low %v4561_v29, %v4564_v8  ;;  %v4258_v43 = vrot.slane %v4257_v42, 4  ;;  %6007 = vmatpush3.bf16.msra.mxu1 %v5253_v4  ;;  %v4124_v50 = vrot.slane %v4123_v55, 4 }
 0x44d   : > { %4798 = vrot.lane.b32.xlu0 %v8229_v58, %s6250_s9  ;;  %v3776_v7 = vsel %vm6395_vm11, %v3619_v27, %v3775_v33  ;;  %v4267_v58 = vor.u32 %v4266_v60, %v4262_v21  ;;  %v9113_v19 = vshrl.u32 %v8389_v13, 16  ;;  %v9114_v47 = vshll.u32 %v8389_v13, 16  ;;  %v3772_v60 = vld [vmem:[#allocation2 + $0xa4] sm:$0x1] }
 0x44e   : > { %3777 = vst [vmem:[#allocation2 + $0xa8] sm:$0xf] %v3776_v7  ;;  %4879 = vrot.lane.b32.xlu1 %v8281_v2, %s6248_s28  ;;  %v3623_v57 = vpop.permute.xlu0 %3622  ;;  %v4263_v35 = vsel %vm6381_vm10, %v4258_v43, %v4262_v21  ;;  %v4236_v33 = vshll.u32 %v8401_v16, 16  ;;  %v9115_v36 = vshrl.u32 %v8401_v16, 16  ;;  %v4272_v26 = vrot.slane %v4270_v23, 5 }
 0x44f   : > { %v4229_v20 = vrot.slane %v9113_v19, 4  ;;  %v4232_v39 = vrot.slane %v9114_v47, 5  ;;  %v3780_v24 = vsel %vm6408_vm13, %v3623_v57, %v3779_v34  ;;  %v4268_v55 = vrot.slane %v4267_v58, 4 }
 0x450   : > { %v4242_v29 = vrot.slane %v9115_v36, 4  ;;  %3781 = vst [vmem:[#allocation2 + $0xb0] sm:$0x1] %v3780_v24  ;;  %v3613_v62 = vpop.permute.xlu1 %3612  ;;  %v4246_v42 = vshll.u32 %v8430_v10, 16  ;;  %v4099_v21 = vor.u32 %v8302_v25, %v8298_v38  ;;  %v4102_v16 = vshll.u32 %v8153_v6, 16 }
 0x451   : > { %v4233_v17 = vor.u32 %v4232_v39, %v4229_v20  ;;  %5112 = vrot.lane.b32.xlu0 %v8281_v2, %s6249_s29  ;;  %v3769_v13 = vsel %vm6395_vm11, %v3613_v62, %v3768_v11  ;;  %v4238_v27 = vrot.slane %v4236_v33, 5  ;;  %v9116_v23 = vshll.u32 %v8173_v15, 16 }
 0x452   : > { %3770 = vst [vmem:[#allocation2 + $0x9c] sm:$0xf] %v3769_v13  ;;  %4644 = vrot.lane.b32.xlu1 %v8239_v61, %s6244_s24  ;;  %v4273_v34 = vsel %vm6381_vm10, %v4268_v55, %v4272_v26  ;;  %v4089_v4 = vor.u32 %v8279_v41, %v8266_v31  ;;  %v4248_v6 = vrot.slane %v4246_v42, 5  ;;  %v9117_v15 = vor.u32 %v8197_v30, %v8195_v49 }
 0x453   : > { %v4128_v10 = vrot.slane %v9116_v23, 5  ;;  %v4234_v40 = vrot.slane %v4233_v17, 4  ;;  %v3617_v8 = vpop.permute.xlu0 %3616  ;;  %v8518_v7 = vcombine.low %v4263_v35, %v4273_v34  ;;  %v4243_v25 = vor.u32 %v4242_v29, %v4238_v27 }
 0x454   : > { %v3773_v43 = vsel %vm6408_vm13, %v3617_v8, %v3772_v60  ;;  %v3615_v57 = vpop.permute.xlu1 %3614  ;;  %v4114_v11 = vrot.slane %v9117_v15, 4  ;;  %v4100_v41 = vrot.slane %v4099_v21, 4  ;;  %v4104_v19 = vrot.slane %v4102_v16, 5 }
 0x455   : > { %v4239_v58 = vsel %vm6381_vm10, %v4234_v40, %v4238_v27  ;;  %3774 = vst [vmem:[#allocation2 + $0xa4] sm:$0x1] %v3773_v43  ;;  %4646 = vrot.lane.b32.xlu0 %v8281_v2, %s6244_s24  ;;  %3771 = vst.msk [vmem:[#allocation2 + $0xa0] sm:$0xf] %vm9118_vm15, %v3615_v57  ;;  %v4129_v31 = vsel %vm6381_vm10, %v4124_v50, %v4128_v10  ;;  %v3838_v20 = vld [vmem:[#allocation2 + $0xa8] sm:$0xf] }
 0x456   : > { %v4244_v47 = vrot.slane %v4243_v25, 4  ;;  %4717 = vrot.lane.b32.xlu1 %v8274_v45, %s6246_s26  ;;  %v4299_v49 = vshrl.u32 %v3838_v20, 16  ;;  %v4302_v30 = vshll.u32 %v3838_v20, 16  ;;  %v4119_v24 = vsel %vm6381_vm10, %v4114_v11, %v8241_v3 }
 0x457   : > { %v3621_v39 = vpop.permute.xlu0 %3620  ;;  %v4090_v2 = vrot.slane %v4089_v4, 4  ;;  %v5738_v50 = vcombine.low %v4119_v24, %v4129_v31  ;;  %v4105_v62 = vsel %vm6381_vm10, %v4100_v41, %v4104_v19  ;;  %v4532_v42 = vrot.slane %v8262_v1, 5  ;;  %v3840_v13 = vld [vmem:[#allocation2 + $0xb0] sm:$0x1]  ;;  %v3793_v1 = vld [vmem:[#allocation2 + $0xc8] sm:$0x1] }
 0x458   : > { %v4249_v35 = vsel %vm6381_vm10, %v4244_v47, %v4248_v6  ;;  %3778 = vst.msk [vmem:[#allocation2 + $0xac] sm:$0xf] %vm9119_vm12, %v3621_v39  ;;  %v4301_v36 = vrot.slane %v4299_v49, 4  ;;  %v4304_v29 = vrot.slane %v4302_v30, 5  ;;  %v5762_v16 = vrot.slane %v3838_v20, 9 }
 0x459   : > { %v8540_v33 = vcombine.low %v4239_v58, %v4249_v35  ;;  %5110 = vrot.lane.b32.xlu0 %v8239_v61, %s6249_s29  ;;  %v3835_v55 = vld [vmem:[#allocation2 + $0x9c] sm:$0xf]  ;;  %v4095_v17 = vsel %vm6381_vm10, %v4090_v2, %v8298_v38  ;;  %v4577_v38 = vrot.slane %v3840_v13, 5  ;;  %vm9126_vm15 = vcmask 228544  }
 0x45a   : > { %4804 = vrot.lane.b32.xlu1 %v5738_v50, %s6250_s9  ;;  %v4275_v3 = vshrl.u32 %v3835_v55, 16  ;;  %v4278_v26 = vshll.u32 %v3835_v55, 16  ;;  %v8551_v60 = vcombine.low %v4095_v17, %v4105_v62  ;;  %v5761_v23 = vrot.slane %v3835_v55, 9  ;;  %vm9127_vm12 = vmmov %vm9126_vm15 }
 0x45b   : > { %v4305_v10 = vor.u32 %v4304_v29, %v4301_v36 }
 0x45c   : > { %v3836_v21 = vld [vmem:[#allocation2 + $0xa0] sm:$0xf]  ;;  %v3837_v27 = vld [vmem:[#allocation2 + $0xa4] sm:$0x1]  ;;  %v4277_v4 = vrot.slane %v4275_v3, 4  ;;  %v4280_v6 = vrot.slane %v4278_v26, 5 }
 0x45d   : > { %4877 = vrot.lane.b32.xlu0 %v8239_v61, %s6248_s28  ;;  %v8555_v34 = vcombine.low %v3835_v55, %v3836_v21  ;;  %v4288_v40 = vshrl.u32 %v3836_v21, 16  ;;  %v4567_v8 = vrot.slane %v3836_v21, 5  ;;  %v4570_v25 = vrot.slane %v3837_v27, 5 }
 0x45e   : > { %4948 = vrot.lane.b32.xlu1 %v8225_v48, %s6247_s27  ;;  %v4284_v43 = vshll.u32 %v3836_v21, 16  ;;  %v4294_v58 = vshll.u32 %v3837_v27, 16  ;;  %v4306_v30 = vrot.slane %v4305_v10, 4  ;;  %v4281_v39 = vor.u32 %v4280_v6, %v4277_v4 }
 0x45f   : > { %v3839_v57 = vld [vmem:[#allocation2 + $0xac] sm:$0xf]  ;;  %3959 = vst.msk [vmem:[#allocation3 + $0x68] sm:$0xff] %vm1001_vm14, %v8555_v34  ;;  %v4568_v15 = vsel %vm6367_vm9, %v5761_v23, %v4567_v8  ;;  %v4569_v61 = vrot.slane %v4567_v8, 4  ;;  %v4290_v11 = vrot.slane %v4288_v40, 4  ;;  %v4534_v3 = vrot.slane %v4532_v42, 4 }
 0x460   : > { %v8563_v31 = vcombine.low %v3838_v20, %v3839_v57  ;;  %v4312_v41 = vshrl.u32 %v3839_v57, 16  ;;  %v4574_v19 = vrot.slane %v3839_v57, 5  ;;  %v4308_v47 = vshll.u32 %v3839_v57, 16 }
 0x461   : > { %4950 = vrot.lane.b32.xlu0 %v8274_v45, %s6247_s27  ;;  %v4571_v49 = vsel %vm6367_vm9, %v4569_v61, %v4570_v25  ;;  %v4286_v24 = vrot.slane %v4284_v43, 5  ;;  %v4318_v45 = vshll.u32 %v3840_v13, 16  ;;  %v4282_v62 = vrot.slane %v4281_v39, 4  ;;  %v3782_v61 = vld [vmem:[#allocation2 + $0xb4] sm:$0xf] }
 0x462   : > { %4406 = vrot.lane.b32.xlu1 %v5738_v50, %s6245_s25  ;;  %3960 = vst.msk [vmem:[#allocation3 + $0x70] sm:$0xff] %vm1001_vm14, %v8563_v31  ;;  %v4575_v20 = vsel %vm6367_vm9, %v5762_v16, %v4574_v19  ;;  %v4576_v2 = vrot.slane %v4574_v19, 4  ;;  %v8574_v35 = vcombine.low %v4568_v15, %v4571_v49  ;;  %v4310_v36 = vrot.slane %v4308_v47, 5 }
 0x463   : > { %v4314_v29 = vrot.slane %v4312_v41, 4  ;;  %v4291_v55 = vor.u32 %v4290_v11, %v4286_v24  ;;  %v4296_v21 = vrot.slane %v4294_v58, 5  ;;  %v4287_v13 = vsel %vm6381_vm10, %v4282_v62, %v4286_v24  ;;  %v3786_v41 = vld [vmem:[#allocation2 + $0xbc] sm:$0x1] }
 0x464   : > { %v4578_v26 = vsel %vm6367_vm9, %v4576_v2, %v4577_v38  ;;  %v4311_v17 = vsel %vm6381_vm10, %v4306_v30, %v4310_v36  ;;  %v4535_v10 = vrot.slane %v8285_v32, 5  ;;  %v4320_v8 = vrot.slane %v4318_v45, 5 }
 0x465   : > { %5037 = vrot.lane.b32.xlu0 %v5738_v50, %s6251_s10  ;;  %v8583_v16 = vcombine.low %v4575_v20, %v4578_v26  ;;  %v4315_v27 = vor.u32 %v4314_v29, %v4310_v36  ;;  %v4292_v23 = vrot.slane %v4291_v55, 4  ;;  %v3789_v50 = vld [vmem:[#allocation2 + $0xc0] sm:$0xf]  ;;  %v5756_v25 = vrot.slane %v8204_v14, 9 }
 0x466   : > { %5035 = vrot.lane.b32.xlu1 %v8551_v60, %s6251_s10  ;;  %v4536_v6 = vsel %vm6367_vm9, %v4534_v3, %v4535_v10 }
 0x467   : > { %v4316_v40 = vrot.slane %v4315_v27, 4  ;;  %v4297_v4 = vsel %vm6381_vm10, %v4292_v23, %v4296_v21 }
 0x468   : > { %v8592_v38 = vcombine.low %v4287_v13, %v4297_v4 }
 0x469   : > { %4715 = vrot.lane.b32.xlu0 %v8225_v48, %s6246_s26  ;;  %v4321_v43 = vsel %vm6381_vm10, %v4316_v40, %v4320_v8  ;;  %v4533_v48 = vsel %vm6367_vm9, %v5756_v25, %v4532_v42 }
 0x46a   : > { %4404 = vrot.lane.b32.xlu1 %v8551_v60, %s6245_s25  ;;  %v8603_v32 = vcombine.low %v4311_v17, %v4321_v43  ;;  %v5772_v15 = vcombine.low %v4533_v48, %v4536_v6 }
 0x46b   : > { %v3631_v57 = vpop.permute.xlu1 %3630 }
 0x46c   : > { %v3790_v14 = vsel %vm6395_vm11, %v3631_v57, %v3789_v50 }
 0x46d   : > { %3791 = vst [vmem:[#allocation2 + $0xc0] sm:$0xf] %v3790_v14  ;;  %4802 = vrot.lane.b32.xlu0 %v8551_v60, %s6250_s9 }
 0x46e   : > { %4883 = vrot.lane.b32.xlu1 %v5772_v15, %s6248_s28 }
 0x46f   : > { %v3625_v11 = vpop.permute.xlu1 %3624 }
 0x470   : > { %v3783_v58 = vsel %vm6395_vm11, %v3625_v11, %v3782_v61  ;;  %vm9120_vm11 = vmmov %vm9102_vm4 }
 0x471   : > { %3784 = vst [vmem:[#allocation2 + $0xb4] sm:$0xf] %v3783_v58  ;;  %5116 = vrot.lane.b32.xlu0 %v5772_v15, %s6249_s29  ;;  %vm9125_vm4 = vmmov %vm9124_vm5 }
 0x472   : > { %v3629_v42 = vpop.permute.xlu0 %3628  ;;  %4648 = vrot.lane.b32.xlu1 %v8308_v9, %s6244_s24 }
 0x473   : > { %v3787_v19 = vsel %vm6408_vm13, %v3629_v42, %v3786_v41  ;;  %v3635_v60 = vpop.permute.xlu1 %3634 }
 0x474   : > { %3788 = vst [vmem:[#allocation2 + $0xbc] sm:$0x1] %v3787_v19  ;;  %v3794_v47 = vsel %vm6408_vm13, %v3635_v60, %v3793_v1  ;;  %vm9122_vm13 = vcmask 162944  }
 0x475   : > { %3795 = vst [vmem:[#allocation2 + $0xc8] sm:$0x1] %v3794_v47  ;;  %4650 = vrot.lane.b32.xlu0 %v5772_v15, %s6244_s24  ;;  %vm9123_vm7 = vmmov %vm9122_vm13 }
 0x476   : > { %v3633_v46 = vpop.permute.xlu0 %3632  ;;  %4721 = vrot.lane.b32.xlu1 %v8366_v0, %s6246_s26 }
 0x477   : > { %3792 = vst.msk [vmem:[#allocation2 + $0xc4] sm:$0xf] %vm9120_vm11, %v3633_v46  ;;  %v3627_v49 = vpop.permute.xlu1 %3626  ;;  %vm9128_vm11 = vcmask 261344  }
 0x478   : > { %3785 = vst.msk [vmem:[#allocation2 + $0xb8] sm:$0xf] %vm9121_vm6, %v3627_v49  ;;  %v3841_v30 = vld [vmem:[#allocation2 + $0xb4] sm:$0xf]  ;;  %vm9129_vm6 = vmmov %vm9128_vm11 }
 0x479   : > { %5114 = vrot.lane.b32.xlu0 %v8308_v9, %s6249_s29  ;;  %v4323_v39 = vshrl.u32 %v3841_v30, 16  ;;  %v4326_v24 = vshll.u32 %v3841_v30, 16  ;;  %v5763_v62 = vrot.slane %v3841_v30, 9 }
 0x47a   : > { %4808 = vrot.lane.b32.xlu1 %v8368_v37, %s6250_s9 }
 0x47b   : > { %v4325_v54 = vrot.slane %v4323_v39, 4  ;;  %v4328_v20 = vrot.slane %v4326_v24, 5  ;;  %v3843_v45 = vld [vmem:[#allocation2 + $0xbc] sm:$0x1] }
 0x47c   : > { %v4584_v27 = vrot.slane %v3843_v45, 5  ;;  %v4342_v50 = vshll.u32 %v3843_v45, 16 }
 0x47d   : > { %4881 = vrot.lane.b32.xlu0 %v8308_v9, %s6248_s28  ;;  %v4329_v17 = vor.u32 %v4328_v20, %v4325_v54 }
 0x47e   : > { %4952 = vrot.lane.b32.xlu1 %v8325_v53, %s6247_s27  ;;  %v4344_v15 = vrot.slane %v4342_v50, 5 }
 0x47f   : > { %v4706_v2 = vpop.permute.xlu1 %4705  ;;  %v8636_v36 = vpop.permute.xlu0 %4938  ;;  %v3842_v29 = vld [vmem:[#allocation2 + $0xb8] sm:$0xf]  ;;  %v4330_v8 = vrot.slane %v4329_v17, 4 }
 0x480   : > { %v8638_v55 = vcombine.low %v3841_v30, %v3842_v29  ;;  %v4336_v3 = vshrl.u32 %v3842_v29, 16  ;;  %v4581_v26 = vrot.slane %v3842_v29, 5  ;;  %v4332_v13 = vshll.u32 %v3842_v29, 16 }
 0x481   : > { %4954 = vrot.lane.b32.xlu0 %v8366_v0, %s6247_s27 }
 0x482   : > { %4410 = vrot.lane.b32.xlu1 %v8368_v37, %s6245_s25  ;;  %3961 = vst.msk [vmem:[#allocation3 + $0x78] sm:$0xff] %vm1001_vm14, %v8638_v55  ;;  %v4582_v9 = vsel %vm6367_vm9, %v5763_v62, %v4581_v26  ;;  %v4583_v21 = vrot.slane %v4581_v26, 4  ;;  %v4338_v10 = vrot.slane %v4336_v3, 4  ;;  %v4334_v4 = vrot.slane %v4332_v13, 5 }
 0x483   : > { %v4704_v23 = vpop.permute.xlu0 %4703 }
 0x484   : > { %4751 = vst.msk [vmem:[#allocation3] sm:$0xff] %vm1815_vm3, %v4704_v23  ;;  %v4872_v40 = vpop.permute.xlu1 %4871  ;;  %v4585_v0 = vsel %vm6367_vm9, %v4583_v21, %v4584_v27  ;;  %v4335_v6 = vsel %vm6381_vm10, %v4330_v8, %v4334_v4  ;;  %v4339_v43 = vor.u32 %v4338_v10, %v4334_v4  ;;  %v8789_v10 = vld [vmem:[#allocation2 + $0xc0] sm:$0xf] }
 0x485   : > { %5041 = vrot.lane.b32.xlu0 %v8368_v37, %s6251_s10  ;;  %v8653_v25 = vcombine.low %v4582_v9, %v4585_v0 }
 0x486   : > { %5039 = vrot.lane.b32.xlu1 %v8392_v5, %s6251_s10  ;;  %v4340_v14 = vrot.slane %v4339_v43, 4 }
 0x487   : > { %v5105_v57 = vpop.permute.xlu0 %5104 }
 0x488   : > { %v4637_v48 = vpop.permute.xlu1 %4636  ;;  %v4345_v37 = vsel %vm6381_vm10, %v4340_v14, %v4344_v15  ;;  %v4768_v15 = vshrl.u32 %v8789_v10, 16 }
 0x489   : > { %4719 = vrot.lane.b32.xlu0 %v8325_v53, %s6246_s26  ;;  %v8665_v11 = vcombine.low %v4335_v6, %v4345_v37 }
 0x48a   : > { %4408 = vrot.lane.b32.xlu1 %v8392_v5, %s6245_s25 }
 0x48b   : > { %v4639_v61 = vpop.permute.xlu0 %4638 }
 0x48c   : > { %v8667_v58 = vpop.permute.xlu1 %4709 }
 0x48d   : > { %4806 = vrot.lane.b32.xlu0 %v8392_v5, %s6250_s9 }
 0x48e   : > { %4887 = vrot.lane.b32.xlu1 %v8405_v18, %s6248_s28 }
 0x48f   : > { %v4870_v41 = vpop.permute.xlu0 %4869 }
 0x490   : > { %v4797_v1 = vpop.permute.xlu1 %4796 }
 0x491   : > { %5120 = vrot.lane.b32.xlu0 %v8405_v18, %s6249_s29 }
 0x492   : > { %4652 = vrot.lane.b32.xlu1 %v8398_v44, %s6244_s24 }
 0x493   : > { %v8677_v53 = vpop.permute.xlu0 %4942 }
 0x494   : > { %v4941_v42 = vpop.permute.xlu1 %4940 }
 0x495   : > { %4654 = vrot.lane.b32.xlu0 %v8405_v18, %s6244_s24 }
 0x496   : > { %4725 = vrot.lane.b32.xlu1 %v8448_v51, %s6246_s26 }
 0x497   : > { %v5030_v5 = vpop.permute.xlu0 %5029 }
 0x498   : > { %v4399_v19 = vpop.permute.xlu1 %4398 }
 0x499   : > { %4444 = vst.msk [vmem:[#allocation3 + $0x10] sm:$0xff] %vm1501_vm1, %v4399_v19  ;;  %5118 = vrot.lane.b32.xlu0 %v8398_v44, %s6249_s29 }
 0x49a   : > { %4684 = vst.msk [vmem:[#allocation3 + $0x10] sm:$0xff] %vm1745_vm2, %v4639_v61  ;;  %4812 = vrot.lane.b32.xlu1 %v8450_v59, %s6250_s9  ;;  %v3846_v61 = vld [vmem:[#allocation2 + $0xc8] sm:$0x1] }
 0x49b   : > { %v4708_v60 = vpop.permute.xlu0 %4707 }
 0x49c   : > { %4753 = vst.msk [vmem:[#allocation3 + $0x10] sm:$0xff] %vm1815_vm3, %v4708_v60  ;;  %v4397_v47 = vpop.permute.xlu1 %4396  ;;  %v5782_v60 = vrot.slane %v8789_v10, 9 }
 0x49d   : > { %4443 = vst.msk [vmem:[#allocation3 + $0x8] sm:$0xff] %vm1501_vm1, %v4397_v47  ;;  %4885 = vrot.lane.b32.xlu0 %v8398_v44, %s6248_s28 }
 0x49e   : > { %4683 = vst.msk [vmem:[#allocation3 + $0x8] sm:$0xff] %vm1745_vm2, %v4637_v48  ;;  %4956 = vrot.lane.b32.xlu1 %v8409_v63, %s6247_s27 }
 0x49f   : > { %4752 = vst.msk [vmem:[#allocation3 + $0x8] sm:$0xff] %vm1815_vm3, %v4706_v2  ;;  %v4795_v18 = vpop.permute.xlu0 %4794 }
 0x4a0   : > { %4843 = vst.msk [vmem:[#allocation3 + $0x8] sm:$0xff] %vm9122_vm13, %v4797_v1  ;;  %v4876_v46 = vpop.permute.xlu1 %4875  ;;  %vm9130_vm13 = vmmov %vm9123_vm7 }
 0x4a1   : > { %4842 = vst.msk [vmem:[#allocation3] sm:$0xff] %vm9123_vm7, %v4795_v18  ;;  %4958 = vrot.lane.b32.xlu0 %v8448_v51, %s6247_s27  ;;  %v4770_v18 = vrot.slane %v4768_v15, 4 }
 0x4a2   : > { %4918 = vst.msk [vmem:[#allocation3 + $0x8] sm:$0xff] %vm9124_vm5, %v4872_v40  ;;  %4414 = vrot.lane.b32.xlu1 %v8450_v59, %s6245_s25  ;;  %vm9131_vm5 = vmmov %vm9125_vm4 }
 0x4a3   : > { %4917 = vst.msk [vmem:[#allocation3] sm:$0xff] %vm9125_vm4, %v4870_v41  ;;  %v5109_v44 = vpop.permute.xlu0 %5108 }
 0x4a4   : > { %4987 = vst.msk [vmem:[#allocation3 + $0x8] sm:$0xff] %vm9126_vm15, %v4941_v42  ;;  %v4641_v49 = vpop.permute.xlu1 %4640  ;;  %vm9132_vm15 = vmmov %vm9127_vm12 }
 0x4a5   : > { %4986 = vst.msk [vmem:[#allocation3] sm:$0xff] %vm9127_vm12, %v8636_v36  ;;  %5045 = vrot.lane.b32.xlu0 %v8450_v59, %s6251_s10 }
 0x4a6   : > { %5077 = vst.msk [vmem:[#allocation3] sm:$0xff] %vm9128_vm11, %v5030_v5  ;;  %5043 = vrot.lane.b32.xlu1 %v8482_v28, %s6251_s10  ;;  %vm9133_vm11 = vmmov %vm9129_vm6  ;;  %v4864_v5 = vrot.slane %v3846_v61, 5 }
 0x4a7   : > { %5152 = vst.msk [vmem:[#allocation3] sm:$0xff] %vm2221_vm8, %v5105_v57  ;;  %v4643_v51 = vpop.permute.xlu0 %4642 }
 0x4a8   : > { %v8714_v30 = vpop.permute.xlu1 %4713 }
 0x4a9   : > { %4723 = vrot.lane.b32.xlu0 %v8409_v63, %s6246_s26 }
 0x4aa   : > { %4412 = vrot.lane.b32.xlu1 %v8482_v28, %s6245_s25 }
 0x4ab   : > { %v5107_v39 = vpop.permute.xlu0 %5106 }
 0x4ac   : > { %v4801_v54 = vpop.permute.xlu1 %4800 }
 0x4ad   : > { %4810 = vrot.lane.b32.xlu0 %v8482_v28, %s6250_s9 }
 0x4ae   : > { %v5168_v24 = vld [vmem:[#allocation3] sm:$0xff]  ;;  %4891 = vrot.lane.b32.xlu1 %v8484_v22, %s6248_s28 }
 0x4af   : > { %6008 = vmatprep.mubr.msk.bf16.mxu1 %vm2274_vm0, %v5168_v24  ;;  %v4874_v59 = vpop.permute.xlu0 %4873 }
 0x4b0   : > { %v4945_v20 = vpop.permute.xlu1 %4944 }
 0x4b1   : > { %5124 = vrot.lane.b32.xlu0 %v8484_v22, %s6249_s29 }
 0x4b2   : > { %4656 = vrot.lane.b32.xlu1 %v8470_v56, %s6244_s24 }
 0x4b3   : > { %v8729_v63 = vpop.permute.xlu0 %4946 }
 0x4b4   : > { %v4403_v2 = vpop.permute.xlu1 %4402 }
 0x4b5   : > { %4446 = vst.msk [vmem:[#allocation3 + $0x20] sm:$0xff] %vm1501_vm1, %v4403_v2  ;;  %4658 = vrot.lane.b32.xlu0 %v8484_v22, %s6244_s24 }
 0x4b6   : > { %4686 = vst.msk [vmem:[#allocation3 + $0x20] sm:$0xff] %vm1745_vm2, %v4643_v51  ;;  %4729 = vrot.lane.b32.xlu1 %v8563_v31, %s6246_s26  ;;  %v4787_v51 = vshll.u32 %v3846_v61, 16 }
 0x4b7   : > { %v5034_v28 = vpop.permute.xlu0 %5033 }
 0x4b8   : > { %v5032_v36 = vpop.permute.xlu1 %5031 }
 0x4b9   : > { %5078 = vst.msk [vmem:[#allocation3 + $0x8] sm:$0xff] %vm9129_vm6, %v5032_v36  ;;  %5122 = vrot.lane.b32.xlu0 %v8470_v56, %s6249_s29 }
 0x4ba   : > { %5153 = vst.msk [vmem:[#allocation3 + $0x8] sm:$0xff] %vm2221_vm8, %v5107_v39  ;;  %4816 = vrot.lane.b32.xlu1 %v8518_v7, %s6250_s9  ;;  %v8854_v39 = vld [vmem:[#allocation2 + $0xd0] sm:$0xf] }
 0x4bb   : > { %v4712_v29 = vpop.permute.xlu0 %4711 }
 0x4bc   : > { %4755 = vst.msk [vmem:[#allocation3 + $0x20] sm:$0xff] %vm1815_vm3, %v4712_v29  ;;  %v4401_v22 = vpop.permute.xlu1 %4400  ;;  %v4789_v29 = vrot.slane %v4787_v51, 5 }
 0x4bd   : > { %4445 = vst.msk [vmem:[#allocation3 + $0x18] sm:$0xff] %vm1501_vm1, %v4401_v22  ;;  %4889 = vrot.lane.b32.xlu0 %v8470_v56, %s6248_s28 }
 0x4be   : > { %4685 = vst.msk [vmem:[#allocation3 + $0x18] sm:$0xff] %vm1745_vm2, %v4641_v49  ;;  %4960 = vrot.lane.b32.xlu1 %v8555_v34, %s6247_s27 }
 0x4bf   : > { %4754 = vst.msk [vmem:[#allocation3 + $0x18] sm:$0xff] %vm1815_vm3, %v8667_v58  ;;  %v4799_v45 = vpop.permute.xlu0 %4798  ;;  %v4771_v58 = vshll.u32 %v8789_v10, 16 }
 0x4c0   : > { %4845 = vst.msk [vmem:[#allocation3 + $0x18] sm:$0xff] %vm9130_vm13, %v4801_v54  ;;  %v4880_v62 = vpop.permute.xlu1 %4879  ;;  %vm9134_vm13 = vmmov %vm9123_vm7 }
 0x4c1   : > { %4844 = vst.msk [vmem:[#allocation3 + $0x10] sm:$0xff] %vm9123_vm7, %v4799_v45  ;;  %4962 = vrot.lane.b32.xlu0 %v8563_v31, %s6247_s27  ;;  %v5169_v56 = vld [vmem:[#allocation3 + $0x8] sm:$0xff] }
 0x4c2   : > { %4920 = vst.msk [vmem:[#allocation3 + $0x18] sm:$0xff] %vm9131_vm5, %v4876_v46  ;;  %4418 = vrot.lane.b32.xlu1 %v8518_v7, %s6245_s25  ;;  %6009 = vmatmul.mubr.msk.bf16.vlgmr.msra.gmra.mrb[20].mxu1 %vm2274_vm0, %v5169_v56  ;;  %vm9135_vm5 = vmmov %vm9125_vm4 }
 0x4c3   : > { %4919 = vst.msk [vmem:[#allocation3 + $0x10] sm:$0xff] %vm9125_vm4, %v4874_v59  ;;  %v5113_v3 = vpop.permute.xlu0 %5112 }
 0x4c4   : > { %4989 = vst.msk [vmem:[#allocation3 + $0x18] sm:$0xff] %vm9132_vm15, %v4945_v20  ;;  %v4645_v26 = vpop.permute.xlu1 %4644  ;;  %vm9136_vm15 = vmmov %vm9127_vm12  ;;  %v5012_v20 = vshll.u32 %v8854_v39, 16 }
 0x4c5   : > { %4988 = vst.msk [vmem:[#allocation3 + $0x10] sm:$0xff] %vm9127_vm12, %v8677_v53  ;;  %5049 = vrot.lane.b32.xlu0 %v8518_v7, %s6251_s10 }
 0x4c6   : > { %5079 = vst.msk [vmem:[#allocation3 + $0x10] sm:$0xff] %vm9133_vm11, %v5034_v28  ;;  %5047 = vrot.lane.b32.xlu1 %v8540_v33, %s6251_s10  ;;  %vm9137_vm11 = vmmov %vm9129_vm6  ;;  %v5014_v56 = vrot.slane %v5012_v20, 5 }
 0x4c7   : > { %5154 = vst.msk [vmem:[#allocation3 + $0x10] sm:$0xff] %vm2221_vm8, %v5109_v44  ;;  %v4647_v31 = vpop.permute.xlu0 %4646  ;;  %v8848_v44 = vld [vmem:[#allocation2 + $0xcc] sm:$0xf] }
 0x4c8   : > { %v8770_v17 = vpop.permute.xlu1 %4717  ;;  %v5003_v49 = vshrl.u32 %v8848_v44, 16 }
 0x4c9   : > { %4727 = vrot.lane.b32.xlu0 %v8555_v34, %s6246_s26  ;;  %v8783_v34 = vld [vmem:[#allocation2 + $0xc4] sm:$0xf] }
 0x4ca   : > { %4416 = vrot.lane.b32.xlu1 %v8540_v33, %s6245_s25  ;;  %v4781_v43 = vshrl.u32 %v8783_v34, 16  ;;  %v4861_v57 = vrot.slane %v8783_v34, 5  ;;  %v4777_v48 = vshll.u32 %v8783_v34, 16  ;;  %v5005_v45 = vrot.slane %v5003_v49, 4 }
 0x4cb   : > { %v5111_v9 = vpop.permute.xlu0 %5110 }
 0x4cc   : > { %v4805_v27 = vpop.permute.xlu1 %4804  ;;  %v4863_v41 = vrot.slane %v4861_v57, 4  ;;  %v4779_v1 = vrot.slane %v4777_v48, 5  ;;  %v4783_v53 = vrot.slane %v4781_v43, 4  ;;  %v4862_v59 = vsel %vm6367_vm9, %v5782_v60, %v4861_v57 }
 0x4cd   : > { %4814 = vrot.lane.b32.xlu0 %v8540_v33, %s6250_s9  ;;  %v5780_v33 = vcombine.low %v8789_v10, %v8783_v34 }
 0x4ce   : > { %v5170_v21 = vld [vmem:[#allocation3 + $0x10] sm:$0xff]  ;;  %4895 = vrot.lane.b32.xlu1 %v8583_v16, %s6248_s28  ;;  %v4865_v47 = vsel %vm6367_vm9, %v4863_v41, %v4864_v5  ;;  %v4784_v46 = vor.u32 %v4783_v53, %v4779_v1 }
 0x4cf   : > { %6012 = vmatprep.mubr.msk.bf16.mxu1 %vm2274_vm0, %v5170_v21  ;;  %v4878_v7 = vpop.permute.xlu0 %4877  ;;  %v5783_v2 = vcombine.low %v4862_v59, %v4865_v47 }
 0x4d0   : > { %v4949_v13 = vpop.permute.xlu1 %4948  ;;  %v4785_v36 = vrot.slane %v4784_v46, 4 }
 0x4d1   : > { %5128 = vrot.lane.b32.xlu0 %v8583_v16, %s6249_s29 }
 0x4d2   : > { %4660 = vrot.lane.b32.xlu1 %v8574_v35, %s6244_s24  ;;  %v4790_v21 = vsel %vm6381_vm10, %v4785_v36, %v4789_v29 }
 0x4d3   : > { %v8787_v23 = vpop.permute.xlu0 %4950 }
 0x4d4   : > { %v4407_v40 = vpop.permute.xlu1 %4406 }
 0x4d5   : > { %4448 = vst.msk [vmem:[#allocation3 + $0x30] sm:$0xff] %vm1501_vm1, %v4407_v40  ;;  %4662 = vrot.lane.b32.xlu0 %v8583_v16, %s6244_s24 }
 0x4d6   : > { %4688 = vst.msk [vmem:[#allocation3 + $0x30] sm:$0xff] %vm1745_vm2, %v4647_v31  ;;  %4733 = vrot.lane.b32.xlu1 %v5780_v33, %s6246_s26  ;;  %v3849_v31 = vld [vmem:[#allocation2 + $0xd4] sm:$0x1] }
 0x4d7   : > { %v5038_v0 = vpop.permute.xlu0 %5037  ;;  %v5022_v34 = vshll.u32 %v3849_v31, 16  ;;  %v5099_v15 = vrot.slane %v3849_v31, 5 }
 0x4d8   : > { %v5036_v8 = vpop.permute.xlu1 %5035 }
 0x4d9   : > { %5080 = vst.msk [vmem:[#allocation3 + $0x18] sm:$0xff] %vm9129_vm6, %v5036_v8  ;;  %5126 = vrot.lane.b32.xlu0 %v8574_v35, %s6249_s29 }
 0x4da   : > { %5155 = vst.msk [vmem:[#allocation3 + $0x18] sm:$0xff] %vm2221_vm8, %v5111_v9  ;;  %4820 = vrot.lane.b32.xlu1 %v8603_v32, %s6250_s9 }
 0x4db   : > { %v4716_v4 = vpop.permute.xlu0 %4715 }
 0x4dc   : > { %4757 = vst.msk [vmem:[#allocation3 + $0x30] sm:$0xff] %vm1815_vm3, %v4716_v4  ;;  %v4405_v16 = vpop.permute.xlu1 %4404  ;;  %v5024_v4 = vrot.slane %v5022_v34, 5 }
 0x4dd   : > { %4447 = vst.msk [vmem:[#allocation3 + $0x28] sm:$0xff] %vm1501_vm1, %v4405_v16  ;;  %4893 = vrot.lane.b32.xlu0 %v8574_v35, %s6248_s28  ;;  %v5096_v16 = vrot.slane %v8854_v39, 5 }
 0x4de   : > { %4687 = vst.msk [vmem:[#allocation3 + $0x28] sm:$0xff] %vm1745_vm2, %v4645_v26  ;;  %4964 = vrot.lane.b32.xlu1 %v8638_v55, %s6247_s27 }
 0x4df   : > { %4756 = vst.msk [vmem:[#allocation3 + $0x28] sm:$0xff] %vm1815_vm3, %v8714_v30  ;;  %v4803_v50 = vpop.permute.xlu0 %4802  ;;  %v5006_v30 = vshll.u32 %v8848_v44, 16  ;;  %v5098_v48 = vrot.slane %v5096_v16, 4 }
 0x4e0   : > { %4847 = vst.msk [vmem:[#allocation3 + $0x28] sm:$0xff] %vm9134_vm13, %v4805_v27  ;;  %v8815_v6 = vpop.permute.xlu1 %4883  ;;  %vm9139_vm13 = vmmov %vm9123_vm7 }
 0x4e1   : > { %4846 = vst.msk [vmem:[#allocation3 + $0x20] sm:$0xff] %vm9123_vm7, %v4803_v50  ;;  %4966 = vrot.lane.b32.xlu0 %v5780_v33, %s6247_s27  ;;  %v5171_v35 = vld [vmem:[#allocation3 + $0x18] sm:$0xff] }
 0x4e2   : > { %4922 = vst.msk [vmem:[#allocation3 + $0x28] sm:$0xff] %vm9135_vm5, %v4880_v62  ;;  %4422 = vrot.lane.b32.xlu1 %v8603_v32, %s6245_s25  ;;  %6013 = vmatmul.mubr.msk.bf16.gmra.mrb[24].mxu1 %vm2274_vm0, %v5171_v35  ;;  %v5008_v62 = vrot.slane %v5006_v30, 5  ;;  %vm9141_vm5 = vmmov %vm9125_vm4 }
 0x4e3   : > { %4921 = vst.msk [vmem:[#allocation3 + $0x20] sm:$0xff] %vm9125_vm4, %v4878_v7  ;;  %v8830_v14 = vpop.permute.xlu0 %5116 }
 0x4e4   : > { %4991 = vst.msk [vmem:[#allocation3 + $0x28] sm:$0xff] %vm9136_vm15, %v4949_v13  ;;  %v8834_v37 = vpop.permute.xlu1 %4648  ;;  %v5009_v7 = vor.u32 %v5008_v62, %v5005_v45 }
 0x4e5   : > { %4990 = vst.msk [vmem:[#allocation3 + $0x20] sm:$0xff] %vm9127_vm12, %v8729_v63  ;;  %5053 = vrot.lane.b32.xlu0 %v8603_v32, %s6251_s10  ;;  %v4773_v32 = vrot.slane %v4771_v58, 5 }
 0x4e6   : > { %5081 = vst.msk [vmem:[#allocation3 + $0x20] sm:$0xff] %vm9137_vm11, %v5038_v0  ;;  %5051 = vrot.lane.b32.xlu1 %v8592_v38, %s6251_s10  ;;  %v5010_v0 = vrot.slane %v5009_v7, 4 }
 0x4e7   : > { %5156 = vst.msk [vmem:[#allocation3 + $0x20] sm:$0xff] %vm2221_vm8, %v5113_v3  ;;  %v4651_v42 = vpop.permute.xlu0 %4650  ;;  %v4774_v28 = vor.u32 %v4773_v32, %v4770_v18 }
 0x4e8   : > { %v8841_v19 = vpop.permute.xlu1 %4721  ;;  %v5015_v35 = vsel %vm6381_vm10, %v5010_v0, %v5014_v56 }
 0x4e9   : > { %4731 = vrot.lane.b32.xlu0 %v8638_v55, %s6246_s26  ;;  %v5016_v55 = vshrl.u32 %v8854_v39, 16  ;;  %v4775_v9 = vrot.slane %v4774_v28, 4  ;;  %s9000_s26 = scalar_lea.vmem %s9074_s5, %s5809_s20 }
 0x4ea   : > { %4420 = vrot.lane.b32.xlu1 %v8592_v38, %s6245_s25 }
 0x4eb   : > { %v5115_v24 = vpop.permute.xlu0 %5114  ;;  %v5018_v3 = vrot.slane %v5016_v55, 4  ;;  %v4780_v27 = vsel %vm6381_vm10, %v4775_v9, %v4779_v1  ;;  %v5100_v1 = vsel %vm6367_vm9, %v5098_v48, %v5099_v15 }
 0x4ec   : > { %v4809_v63 = vpop.permute.xlu1 %4808  ;;  %v5781_v40 = vcombine.low %v4780_v27, %v4790_v21 }
 0x4ed   : > { %4818 = vrot.lane.b32.xlu0 %v8592_v38, %s6250_s9  ;;  %v5019_v13 = vor.u32 %v5018_v3, %v5014_v56 }
 0x4ee   : > { %v5172_v54 = vld [vmem:[#allocation3 + $0x20] sm:$0xff]  ;;  %4899 = vrot.lane.b32.xlu1 %v5783_v2, %s6248_s28 }
 0x4ef   : > { %6016 = vmatprep.mubr.msk.bf16.mxu1 %vm2274_vm0, %v5172_v54  ;;  %v4882_v22 = vpop.permute.xlu0 %4881  ;;  %v5020_v8 = vrot.slane %v5019_v13, 4 }
 0x4f0   : > { %v4953_v26 = vpop.permute.xlu1 %4952 }
 0x4f1   : > { %5130 = vrot.lane.b32.xlu0 %v8653_v25, %s6249_s29  ;;  %v5025_v57 = vsel %vm6381_vm10, %v5020_v8, %v5024_v4  ;;  %vm9138_vm10 = vmmov %vm9123_vm7 }
 0x4f2   : > { %4664 = vrot.lane.b32.xlu1 %v8653_v25, %s6244_s24  ;;  %v5785_v58 = vcombine.low %v5015_v35, %v5025_v57  ;;  %vm9140_vm7 = vmmov %vm9125_vm4 }
 0x4f3   : > { %v8870_v38 = vpop.permute.xlu0 %4954  ;;  %vm9142_vm4 = vmmov %vm9127_vm12 }
 0x4f4   : > { %v4411_v10 = vpop.permute.xlu1 %4410  ;;  %vm9143_vm15 = vmmov %vm9142_vm4 }
 0x4f5   : > { %4450 = vst.msk [vmem:[#allocation3 + $0x40] sm:$0xff] %vm1501_vm1, %v4411_v10  ;;  %4897 = vrot.lane.b32.xlu0 %v8653_v25, %s6248_s28  ;;  %v5786_v25 = vrot.slane %v8848_v44, 9  ;;  %vm9145_vm12 = vmmov %vm9129_vm6 }
 0x4f6   : > { %4690 = vst.msk [vmem:[#allocation3 + $0x40] sm:$0xff] %vm1745_vm2, %v4651_v42  ;;  %4824 = vrot.lane.b32.xlu1 %v5781_v40, %s6250_s9  ;;  %vm9146_vm11 = vmmov %vm9138_vm10 }
 0x4f7   : > { %v5042_v33 = vpop.permute.xlu0 %5041  ;;  %v5097_v41 = vsel %vm6367_vm9, %v5786_v25, %v5096_v16  ;;  %vm9144_vm9 = vmmov %vm9129_vm6 }
 0x4f8   : > { %v5040_v50 = vpop.permute.xlu1 %5039  ;;  %v5787_v52 = vcombine.low %v5097_v41, %v5100_v1 }
 0x4f9   : > { %5082 = vst.msk [vmem:[#allocation3 + $0x28] sm:$0xff] %vm9129_vm6, %v5040_v50  ;;  %5057 = vrot.lane.b32.xlu0 %v5781_v40, %s6251_s10  ;;  %vm9147_vm6 = vmmov %vm9138_vm10 }
 0x4fa   : > { %5157 = vst.msk [vmem:[#allocation3 + $0x28] sm:$0xff] %vm2221_vm8, %v5115_v24  ;;  %5055 = vrot.lane.b32.xlu1 %v8665_v11, %s6251_s10 }
 0x4fb   : > { %v4720_v43 = vpop.permute.xlu0 %4719 }
 0x4fc   : > { %4759 = vst.msk [vmem:[#allocation3 + $0x40] sm:$0xff] %vm1815_vm3, %v4720_v43  ;;  %v4409_v61 = vpop.permute.xlu1 %4408 }
 0x4fd   : > { %4449 = vst.msk [vmem:[#allocation3 + $0x38] sm:$0xff] %vm1501_vm1, %v4409_v61  ;;  %4822 = vrot.lane.b32.xlu0 %v8665_v11, %s6250_s9 }
 0x4fe   : > { %4689 = vst.msk [vmem:[#allocation3 + $0x38] sm:$0xff] %vm1745_vm2, %v8834_v37  ;;  %4424 = vrot.lane.b32.xlu1 %v8665_v11, %s6245_s25 }
 0x4ff   : > { %4758 = vst.msk [vmem:[#allocation3 + $0x38] sm:$0xff] %vm1815_vm3, %v8770_v17  ;;  %v4807_v12 = vpop.permute.xlu0 %4806 }
 0x500   : > { %4849 = vst.msk [vmem:[#allocation3 + $0x38] sm:$0xff] %vm9138_vm10, %v4809_v63  ;;  %v4888_v53 = vpop.permute.xlu1 %4887  ;;  %vm9148_vm10 = vmmov %vm9141_vm5 }
 0x501   : > { %4848 = vst.msk [vmem:[#allocation3 + $0x30] sm:$0xff] %vm9139_vm13, %v4807_v12  ;;  %5132 = vrot.lane.b32.xlu0 %v5783_v2, %s6249_s29  ;;  %v5173_v11 = vld [vmem:[#allocation3 + $0x28] sm:$0xff]  ;;  %vm9149_vm13 = vmmov %vm9141_vm5 }
 0x502   : > { %4924 = vst.msk [vmem:[#allocation3 + $0x38] sm:$0xff] %vm9140_vm7, %v8815_v6  ;;  %5059 = vrot.lane.b32.xlu1 %v5785_v58, %s6251_s10  ;;  %6017 = vmatmul.mubr.msk.bf16.gmra.mrb[28].mxu1 %vm2274_vm0, %v5173_v11  ;;  %vm9150_vm7 = vmmov %vm9142_vm4 }
 0x503   : > { %4923 = vst.msk [vmem:[#allocation3 + $0x30] sm:$0xff] %vm9141_vm5, %v4882_v22  ;;  %v5121_v17 = vpop.permute.xlu0 %5120  ;;  %vm9151_vm5 = vmmov %vm9142_vm4 }
 0x504   : > { %4993 = vst.msk [vmem:[#allocation3 + $0x38] sm:$0xff] %vm9142_vm4, %v4953_v26  ;;  %v4653_v6 = vpop.permute.xlu1 %4652  ;;  %vm9152_vm4 = vmmov %vm9144_vm9 }
 0x505   : > { %4992 = vst.msk [vmem:[#allocation3 + $0x30] sm:$0xff] %vm9143_vm15, %v8787_v23  ;;  %vm9153_vm15 = vmmov %vm9152_vm4 }
 0x506   : > { %5083 = vst.msk [vmem:[#allocation3 + $0x30] sm:$0xff] %vm9144_vm9, %v5042_v33  ;;  %5134 = vrot.lane.b32.xlu1 %v5787_v52, %s6249_s29  ;;  %vm9154_vm9 = vmmov %vm9147_vm6 }
 0x507   : > { %5158 = vst.msk [vmem:[#allocation3 + $0x30] sm:$0xff] %vm2221_vm8, %v8830_v14  ;;  %v4655_v37 = vpop.permute.xlu0 %4654 }
 0x508   : > { %v4726_v42 = vpop.permute.xlu1 %4725 }
 0x50b   : > { %v5119_v5 = vpop.permute.xlu0 %5118 }
 0x50c   : > { %v4813_v47 = vpop.permute.xlu1 %4812 }
 0x50e   : > { %v5174_v60 = vld [vmem:[#allocation3 + $0x30] sm:$0xff] }
 0x50f   : > { %6020 = vmatprep.mubr.msk.bf16.mxu1 %vm2274_vm0, %v5174_v60  ;;  %v4886_v23 = vpop.permute.xlu0 %4885 }
 0x510   : > { %v4957_v18 = vpop.permute.xlu1 %4956 }
 0x513   : > { %v4959_v32 = vpop.permute.xlu0 %4958 }
 0x514   : > { %v4415_v46 = vpop.permute.xlu1 %4414 }
 0x515   : > { %4452 = vst.msk [vmem:[#allocation3 + $0x50] sm:$0xff] %vm1501_vm1, %v4415_v46 }
 0x516   : > { %4692 = vst.msk [vmem:[#allocation3 + $0x50] sm:$0xff] %vm1745_vm2, %v4655_v37  ;;  %v9176_v37 = vld [vmem:[#allocation7_spill] sm:$0xff] }
 0x517   : > { %v5046_v44 = vpop.permute.xlu0 %5045 }
 0x518   : > { %v5044_v14 = vpop.permute.xlu1 %5043 }
 0x519   : > { %5084 = vst.msk [vmem:[#allocation3 + $0x38] sm:$0xff] %vm9145_vm12, %v5044_v14  ;;  %vm9155_vm12 = vmmov %vm9147_vm6 }
 0x51a   : > { %5159 = vst.msk [vmem:[#allocation3 + $0x38] sm:$0xff] %vm2221_vm8, %v5119_v5 }
 0x51b   : > { %v4724_v49 = vpop.permute.xlu0 %4723 }
 0x51c   : > { %4761 = vst.msk [vmem:[#allocation3 + $0x50] sm:$0xff] %vm1815_vm3, %v4724_v49  ;;  %v4413_v51 = vpop.permute.xlu1 %4412 }
 0x51d   : > { %4451 = vst.msk [vmem:[#allocation3 + $0x48] sm:$0xff] %vm1501_vm1, %v4413_v51 }
 0x51e   : > { %4691 = vst.msk [vmem:[#allocation3 + $0x48] sm:$0xff] %vm1745_vm2, %v4653_v6 }
 0x51f   : > { %4760 = vst.msk [vmem:[#allocation3 + $0x48] sm:$0xff] %vm1815_vm3, %v8841_v19  ;;  %v4811_v30 = vpop.permute.xlu0 %4810 }
 0x520   : > { %4851 = vst.msk [vmem:[#allocation3 + $0x48] sm:$0xff] %vm9146_vm11, %v4813_v47  ;;  %v4892_v39 = vpop.permute.xlu1 %4891  ;;  %vm9156_vm11 = vmmov %vm9148_vm10 }
 0x521   : > { %4850 = vst.msk [vmem:[#allocation3 + $0x40] sm:$0xff] %vm9147_vm6, %v4811_v30  ;;  %v5175_v55 = vld [vmem:[#allocation3 + $0x38] sm:$0xff]  ;;  %vm9157_vm6 = vmmov %vm9148_vm10 }
 0x522   : > { %4925 = vst.msk [vmem:[#allocation3 + $0x40] sm:$0xff] %vm9148_vm10, %v4886_v23  ;;  %6021 = vmatmul.mubr.msk.bf16.gmra.mrb[32].mxu1 %vm2274_vm0, %v5175_v55  ;;  %vm9158_vm10 = vmmov %vm9151_vm5 }
 0x523   : > { %4926 = vst.msk [vmem:[#allocation3 + $0x48] sm:$0xff] %vm9149_vm13, %v4888_v53  ;;  %v5125_v19 = vpop.permute.xlu0 %5124  ;;  %vm9159_vm13 = vmmov %vm9151_vm5 }
 0x524   : > { %4994 = vst.msk [vmem:[#allocation3 + $0x40] sm:$0xff] %vm9150_vm7, %v8870_v38  ;;  %v4657_v24 = vpop.permute.xlu1 %4656  ;;  %vm9160_vm7 = vmmov %vm9152_vm4 }
 0x525   : > { %4995 = vst.msk [vmem:[#allocation3 + $0x48] sm:$0xff] %vm9151_vm5, %v4957_v18  ;;  %vm9161_vm5 = vmmov %vm9152_vm4 }
 0x526   : > { %5085 = vst.msk [vmem:[#allocation3 + $0x40] sm:$0xff] %vm9152_vm4, %v5046_v44  ;;  %vm9162_vm4 = vmmov %vm9154_vm9 }
 0x527   : > { %5160 = vst.msk [vmem:[#allocation3 + $0x40] sm:$0xff] %vm2221_vm8, %v5121_v17  ;;  %v4659_v54 = vpop.permute.xlu0 %4658 }
 0x528   : > { %v4730_v59 = vpop.permute.xlu1 %4729 }
 0x52b   : > { %v5123_v20 = vpop.permute.xlu0 %5122 }
 0x52c   : > { %v4817_v2 = vpop.permute.xlu1 %4816 }
 0x52e   : > { %v5176_v63 = vld [vmem:[#allocation3 + $0x40] sm:$0xff] }
 0x52f   : > { %6024 = vmatprep.mubr.msk.bf16.mxu1 %vm2274_vm0, %v5176_v63  ;;  %v4890_v28 = vpop.permute.xlu0 %4889 }
 0x530   : > { %v4961_v36 = vpop.permute.xlu1 %4960 }
 0x533   : > { %v4963_v29 = vpop.permute.xlu0 %4962 }
 0x534   : > { %v4419_v22 = vpop.permute.xlu1 %4418 }
 0x535   : > { %4454 = vst.msk [vmem:[#allocation3 + $0x60] sm:$0xff] %vm1501_vm1, %v4419_v22 }
 0x536   : > { %4694 = vst.msk [vmem:[#allocation3 + $0x60] sm:$0xff] %vm1745_vm2, %v4659_v54 }
 0x537   : > { %v5050_v45 = vpop.permute.xlu0 %5049 }
 0x538   : > { %v5048_v62 = vpop.permute.xlu1 %5047 }
 0x539   : > { %5086 = vst.msk [vmem:[#allocation3 + $0x48] sm:$0xff] %vm9153_vm15, %v5048_v62  ;;  %vm9163_vm15 = vmmov %vm9162_vm4 }
 0x53a   : > { %5161 = vst.msk [vmem:[#allocation3 + $0x48] sm:$0xff] %vm2221_vm8, %v5123_v20 }
 0x53b   : > { %v4728_v56 = vpop.permute.xlu0 %4727 }
 0x53c   : > { %4763 = vst.msk [vmem:[#allocation3 + $0x60] sm:$0xff] %vm1815_vm3, %v4728_v56  ;;  %v4417_v3 = vpop.permute.xlu1 %4416 }
 0x53d   : > { %4453 = vst.msk [vmem:[#allocation3 + $0x58] sm:$0xff] %vm1501_vm1, %v4417_v3 }
 0x53e   : > { %4693 = vst.msk [vmem:[#allocation3 + $0x58] sm:$0xff] %vm1745_vm2, %v4657_v24 }
 0x53f   : > { %4762 = vst.msk [vmem:[#allocation3 + $0x58] sm:$0xff] %vm1815_vm3, %v4726_v42  ;;  %v4815_v26 = vpop.permute.xlu0 %4814 }
 0x540   : > { %4853 = vst.msk [vmem:[#allocation3 + $0x58] sm:$0xff] %vm9154_vm9, %v4817_v2  ;;  %v4896_v31 = vpop.permute.xlu1 %4895  ;;  %vm9164_vm9 = vmmov %vm9157_vm6 }
 0x541   : > { %4852 = vst.msk [vmem:[#allocation3 + $0x50] sm:$0xff] %vm9155_vm12, %v4815_v26  ;;  %v5177_v9 = vld [vmem:[#allocation3 + $0x48] sm:$0xff]  ;;  %vm9165_vm12 = vmmov %vm9157_vm6 }
 0x542   : > { %4927 = vst.msk [vmem:[#allocation3 + $0x50] sm:$0xff] %vm9156_vm11, %v4890_v28  ;;  %6025 = vmatmul.mubr.msk.bf16.gmra.mrb[36].mxu1 %vm2274_vm0, %v5177_v9  ;;  %vm9166_vm11 = vmmov %vm9158_vm10 }
 0x543   : > { %4928 = vst.msk [vmem:[#allocation3 + $0x58] sm:$0xff] %vm9157_vm6, %v4892_v39  ;;  %v5129_v21 = vpop.permute.xlu0 %5128  ;;  %vm9167_vm6 = vmmov %vm9158_vm10 }
 0x544   : > { %4996 = vst.msk [vmem:[#allocation3 + $0x50] sm:$0xff] %vm9158_vm10, %v4959_v32  ;;  %v4661_v38 = vpop.permute.xlu1 %4660  ;;  %vm9168_vm10 = vmmov %vm9161_vm5 }
 0x545   : > { %4997 = vst.msk [vmem:[#allocation3 + $0x58] sm:$0xff] %vm9159_vm13, %v4961_v36  ;;  %vm9169_vm13 = vmmov %vm9161_vm5 }
 0x546   : > { %5087 = vst.msk [vmem:[#allocation3 + $0x50] sm:$0xff] %vm9160_vm7, %v5050_v45  ;;  %vm9170_vm7 = vmmov %vm9162_vm4 }
 0x547   : > { %5162 = vst.msk [vmem:[#allocation3 + $0x50] sm:$0xff] %vm2221_vm8, %v5125_v19  ;;  %v4663_v27 = vpop.permute.xlu0 %4662 }
 0x548   : > { %v4734_v7 = vpop.permute.xlu1 %4733 }
 0x54b   : > { %v5127_v13 = vpop.permute.xlu0 %5126 }
 0x54c   : > { %v4821_v10 = vpop.permute.xlu1 %4820 }
 0x54e   : > { %v5178_v34 = vld [vmem:[#allocation3 + $0x50] sm:$0xff] }
 0x54f   : > { %6028 = vmatprep.mubr.msk.bf16.mxu1 %vm2274_vm0, %v5178_v34  ;;  %v4894_v40 = vpop.permute.xlu0 %4893 }
 0x550   : > { %v4965_v33 = vpop.permute.xlu1 %4964 }
 0x553   : > { %v4967_v0 = vpop.permute.xlu0 %4966 }
 0x554   : > { %v4423_v8 = vpop.permute.xlu1 %4422 }
 0x555   : > { %4456 = vst.msk [vmem:[#allocation3 + $0x70] sm:$0xff] %vm1501_vm1, %v4423_v8 }
 0x556   : > { %4696 = vst.msk [vmem:[#allocation3 + $0x70] sm:$0xff] %vm1745_vm2, %v4663_v27 }
 0x557   : > { %v5054_v4 = vpop.permute.xlu0 %5053 }
 0x558   : > { %v5052_v16 = vpop.permute.xlu1 %5051 }
 0x559   : > { %5088 = vst.msk [vmem:[#allocation3 + $0x58] sm:$0xff] %vm9161_vm5, %v5052_v16  ;;  %vm9171_vm5 = vmmov %vm9164_vm9 }
 0x55a   : > { %5163 = vst.msk [vmem:[#allocation3 + $0x58] sm:$0xff] %vm2221_vm8, %v5127_v13 }
 0x55b   : > { %v4732_v50 = vpop.permute.xlu0 %4731 }
 0x55c   : > { %4765 = vst.msk [vmem:[#allocation3 + $0x70] sm:$0xff] %vm1815_vm3, %v4732_v50  ;;  %v4421_v25 = vpop.permute.xlu1 %4420 }
 0x55d   : > { %4455 = vst.msk [vmem:[#allocation3 + $0x68] sm:$0xff] %vm1501_vm1, %v4421_v25 }
 0x55e   : > { %4695 = vst.msk [vmem:[#allocation3 + $0x68] sm:$0xff] %vm1745_vm2, %v4661_v38 }
 0x55f   : > { %4764 = vst.msk [vmem:[#allocation3 + $0x68] sm:$0xff] %vm1815_vm3, %v4730_v59  ;;  %v4819_v43 = vpop.permute.xlu0 %4818 }
 0x560   : > { %4855 = vst.msk [vmem:[#allocation3 + $0x68] sm:$0xff] %vm9162_vm4, %v4821_v10  ;;  %v4900_v35 = vpop.permute.xlu1 %4899  ;;  %vm9172_vm4 = vmmov %vm9167_vm6 }
 0x561   : > { %4854 = vst.msk [vmem:[#allocation3 + $0x60] sm:$0xff] %vm9163_vm15, %v4819_v43  ;;  %v5179_v57 = vld [vmem:[#allocation3 + $0x58] sm:$0xff]  ;;  %vm9173_vm15 = vmmov %vm9168_vm10 }
 0x562   : > { %4929 = vst.msk [vmem:[#allocation3 + $0x60] sm:$0xff] %vm9164_vm9, %v4894_v40  ;;  %6029 = vmatmul.mubr.msk.bf16.gmra.mrb[40].mxu1 %vm2274_vm0, %v5179_v57  ;;  %vm9174_vm9 = vmmov %vm9170_vm7 }
 0x563   : > { %4930 = vst.msk [vmem:[#allocation3 + $0x68] sm:$0xff] %vm9165_vm12, %v4896_v31  ;;  %v5131_v48 = vpop.permute.xlu0 %5130  ;;  %vm9175_vm12 = vmmov %vm9171_vm5 }
 0x564   : > { %4998 = vst.msk [vmem:[#allocation3 + $0x60] sm:$0xff] %vm9166_vm11, %v4963_v29  ;;  %v4665_v15 = vpop.permute.xlu1 %4664 }
 0x565   : > { %4999 = vst.msk [vmem:[#allocation3 + $0x68] sm:$0xff] %vm9167_vm6, %v4965_v33 }
 0x566   : > { %5089 = vst.msk [vmem:[#allocation3 + $0x60] sm:$0xff] %vm9168_vm10, %v5054_v4 }
 0x567   : > { %5164 = vst.msk [vmem:[#allocation3 + $0x60] sm:$0xff] %vm2221_vm8, %v5129_v21  ;;  %v4898_v61 = vpop.permute.xlu0 %4897 }
 0x568   : > { %v4825_v58 = vpop.permute.xlu1 %4824 }
 0x56b   : > { %v5058_v12 = vpop.permute.xlu0 %5057 }
 0x56c   : > { %v5056_v1 = vpop.permute.xlu1 %5055 }
 0x56d   : > { %5090 = vst.msk [vmem:[#allocation3 + $0x68] sm:$0xff] %vm9169_vm13, %v5056_v1 }
 0x56e   : > { %v5180_v41 = vld [vmem:[#allocation3 + $0x60] sm:$0xff]  ;;  %5165 = vst.msk [vmem:[#allocation3 + $0x68] sm:$0xff] %vm2221_vm8, %v5131_v48 }
 0x56f   : > { %6032 = vmatprep.mubr.msk.bf16.mxu1 %vm2274_vm0, %v5180_v41  ;;  %v4823_v53 = vpop.permute.xlu0 %4822 }
 0x570   : > { %4856 = vst.msk [vmem:[#allocation3 + $0x70] sm:$0xff] %vm9170_vm7, %v4823_v53  ;;  %v4425_v11 = vpop.permute.xlu1 %4424 }
 0x571   : > { %4931 = vst.msk [vmem:[#allocation3 + $0x70] sm:$0xff] %vm9171_vm5, %v4898_v61 }
 0x572   : > { %4457 = vst.msk [vmem:[#allocation3 + $0x78] sm:$0xff] %vm1501_vm1, %v4425_v11  ;;  %vm9177_vm1 = vmmov %vm9172_vm4 }
 0x573   : > { %5000 = vst.msk [vmem:[#allocation3 + $0x70] sm:$0xff] %vm9172_vm4, %v4967_v0  ;;  %v5133_v52 = vpop.permute.xlu0 %5132 }
 0x574   : > { %4697 = vst.msk [vmem:[#allocation3 + $0x78] sm:$0xff] %vm1745_vm2, %v4665_v15  ;;  %v5060_v17 = vpop.permute.xlu1 %5059  ;;  %vm9178_vm2 = vmmov %vm9168_vm10 }
 0x575   : > { %4766 = vst.msk [vmem:[#allocation3 + $0x78] sm:$0xff] %vm1815_vm3, %v4734_v7  ;;  %v5181_v6 = vld [vmem:[#allocation3 + $0x68] sm:$0xff] }
 0x576   : > { %5091 = vst.msk [vmem:[#allocation3 + $0x70] sm:$0xff] %vm9173_vm15, %v5058_v12  ;;  %6033 = vmatmul.mubr.msk.bf16.gmra.mrb[44].mxu1 %vm2274_vm0, %v5181_v6 }
 0x577   : > { %4857 = vst.msk [vmem:[#allocation3 + $0x78] sm:$0xff] %vm9174_vm9, %v4825_v58 }
 0x578   : > { %5166 = vst.msk [vmem:[#allocation3 + $0x70] sm:$0xff] %vm2221_vm8, %v5133_v52  ;;  %v5135_v42 = vpop.permute.xlu1 %5134 }
 0x579   : > { %4932 = vst.msk [vmem:[#allocation3 + $0x78] sm:$0xff] %vm9175_vm12, %v4900_v35 }
 0x57a   : > { %5001 = vst.msk [vmem:[#allocation3 + $0x78] sm:$0xff] %vm9177_vm1, %v9176_v37 }
 0x57b   : > { %5092 = vst.msk [vmem:[#allocation3 + $0x78] sm:$0xff] %vm9178_vm2, %v5060_v17 }
 0x57c   : > { %5167 = vst.msk [vmem:[#allocation3 + $0x78] sm:$0xff] %vm2221_vm8, %v5135_v42 }
 0x57f   : > { %v5182_v5 = vld [vmem:[#allocation3 + $0x70] sm:$0xff] }
 0x580   : > { %6036 = vmatprep.mubr.msk.bf16.mxu1 %vm2274_vm0, %v5182_v5 }
 0x583   : > { %v5183_v60 = vld [vmem:[#allocation3 + $0x78] sm:$0xff] }
 0x584   : > { %6037 = vmatmul.mubr.msk.bf16.gmra.mrb[48].mxu1 %vm2274_vm0, %v5183_v60 }
 0x595   : > { %v6010_v47 = vpop.f32.mrb[20].mxu1 }
 0x596   : > { %5418 = vst.msk [vmem:[%s9000_s26 + $0x10] sm:$0xff] %vm1001_vm14, %v6010_v47  ;;  %v5289_v23 = vpop.f32.mrb[21].mxu1 }
 0x597   : > { %5416 = vst.msk [vmem:[%s9000_s26] sm:$0xff] %vm1001_vm14, %v5289_v23  ;;  %v6011_v18 = vpop.f32.mrb[22].mxu1 }
 0x598   : > { %5419 = vst.msk [vmem:[%s9000_s26 + $0x18] sm:$0xff] %vm1001_vm14, %v6011_v18  ;;  %v5292_v32 = vpop.f32.mrb[23].mxu1 }
 0x599   : > { %5417 = vst.msk [vmem:[%s9000_s26 + $0x8] sm:$0xff] %vm1001_vm14, %v5292_v32 }
 0x5b5   : > { %v6014_v46 = vpop.f32.mrb[24].mxu1 }
 0x5b6   : > { %5422 = vst.msk [vmem:[%s9000_s26 + $0x30] sm:$0xff] %vm1001_vm14, %v6014_v46  ;;  %v5305_v44 = vpop.f32.mrb[25].mxu1 }
 0x5b7   : > { %5420 = vst.msk [vmem:[%s9000_s26 + $0x20] sm:$0xff] %vm1001_vm14, %v5305_v44  ;;  %v6015_v14 = vpop.f32.mrb[26].mxu1 }
 0x5b8   : > { %5423 = vst.msk [vmem:[%s9000_s26 + $0x38] sm:$0xff] %vm1001_vm14, %v6015_v14  ;;  %v5308_v49 = vpop.f32.mrb[27].mxu1 }
 0x5b9   : > { %5421 = vst.msk [vmem:[%s9000_s26 + $0x28] sm:$0xff] %vm1001_vm14, %v5308_v49 }
 0x5d5   : > { %v6018_v51 = vpop.f32.mrb[28].mxu1 }
 0x5d6   : > { %5426 = vst.msk [vmem:[%s9000_s26 + $0x50] sm:$0xff] %vm1001_vm14, %v6018_v51  ;;  %v5321_v30 = vpop.f32.mrb[29].mxu1 }
 0x5d7   : > { %5424 = vst.msk [vmem:[%s9000_s26 + $0x40] sm:$0xff] %vm1001_vm14, %v5321_v30  ;;  %v6019_v39 = vpop.f32.mrb[30].mxu1 }
 0x5d8   : > { %5427 = vst.msk [vmem:[%s9000_s26 + $0x58] sm:$0xff] %vm1001_vm14, %v6019_v39  ;;  %v5324_v55 = vpop.f32.mrb[31].mxu1 }
 0x5d9   : > { %5425 = vst.msk [vmem:[%s9000_s26 + $0x48] sm:$0xff] %vm1001_vm14, %v5324_v55 }
 0x5f5   : > { %v6022_v19 = vpop.f32.mrb[32].mxu1 }
 0x5f6   : > { %5430 = vst.msk [vmem:[%s9000_s26 + $0x70] sm:$0xff] %vm1001_vm14, %v6022_v19  ;;  %v5337_v24 = vpop.f32.mrb[33].mxu1 }
 0x5f7   : > { %5428 = vst.msk [vmem:[%s9000_s26 + $0x60] sm:$0xff] %vm1001_vm14, %v5337_v24  ;;  %v6023_v54 = vpop.f32.mrb[34].mxu1 }
 0x5f8   : > { %5431 = vst.msk [vmem:[%s9000_s26 + $0x78] sm:$0xff] %vm1001_vm14, %v6023_v54  ;;  %v5340_v59 = vpop.f32.mrb[35].mxu1 }
 0x5f9   : > { %5429 = vst.msk [vmem:[%s9000_s26 + $0x68] sm:$0xff] %vm1001_vm14, %v5340_v59 }
 0x615   : > { %v6026_v20 = vpop.f32.mrb[36].mxu1 }
 0x616   : > { %5434 = vst.msk [vmem:[%s9000_s26 + $0x90] sm:$0xff] %vm1001_vm14, %v6026_v20  ;;  %v5353_v63 = vpop.f32.mrb[37].mxu1 }
 0x617   : > { %5432 = vst.msk [vmem:[%s9000_s26 + $0x80] sm:$0xff] %vm1001_vm14, %v5353_v63  ;;  %v6027_v2 = vpop.f32.mrb[38].mxu1 }
 0x618   : > { %5435 = vst.msk [vmem:[%s9000_s26 + $0x98] sm:$0xff] %vm1001_vm14, %v6027_v2  ;;  %v5356_v28 = vpop.f32.mrb[39].mxu1 }
 0x619   : > { %5433 = vst.msk [vmem:[%s9000_s26 + $0x88] sm:$0xff] %vm1001_vm14, %v5356_v28 }
 0x635   : > { %v6030_v36 = vpop.f32.mrb[40].mxu1 }
 0x636   : > { %5438 = vst.msk [vmem:[%s9000_s26 + $0xb0] sm:$0xff] %vm1001_vm14, %v6030_v36  ;;  %v5369_v29 = vpop.f32.mrb[41].mxu1 }
 0x637   : > { %5436 = vst.msk [vmem:[%s9000_s26 + $0xa0] sm:$0xff] %vm1001_vm14, %v5369_v29  ;;  %v6031_v22 = vpop.f32.mrb[42].mxu1 }
 0x638   : > { %5439 = vst.msk [vmem:[%s9000_s26 + $0xb8] sm:$0xff] %vm1001_vm14, %v6031_v22  ;;  %v5372_v45 = vpop.f32.mrb[43].mxu1 }
 0x639   : > { %5437 = vst.msk [vmem:[%s9000_s26 + $0xa8] sm:$0xff] %vm1001_vm14, %v5372_v45 }
 0x649   : > { %v6034_v62 = vpop.f32.mrb[44].mxu1 }
 0x64a   : > { %5442 = vst.msk [vmem:[%s9000_s26 + $0xd0] sm:$0xff] %vm1001_vm14, %v6034_v62  ;;  %v5385_v56 = vpop.f32.mrb[45].mxu1 }
 0x64b   : > { %5440 = vst.msk [vmem:[%s9000_s26 + $0xc0] sm:$0xff] %vm1001_vm14, %v5385_v56  ;;  %v6035_v3 = vpop.f32.mrb[46].mxu1 }
 0x64c   : > { %5443 = vst.msk [vmem:[%s9000_s26 + $0xd8] sm:$0xff] %vm1001_vm14, %v6035_v3  ;;  %v5388_v26 = vpop.f32.mrb[47].mxu1 }
 0x64d   : > { %5441 = vst.msk [vmem:[%s9000_s26 + $0xc8] sm:$0xff] %vm1001_vm14, %v5388_v26 }
 0x657   : > { %v6038_v31 = vpop.f32.mrb[48].mxu1 }
 0x658   : > { %5446 = vst.msk [vmem:[%s9000_s26 + $0xf0] sm:$0xff] %vm1001_vm14, %v6038_v31  ;;  %v5401_v9 = vpop.f32.mrb[49].mxu1 }
 0x659   : > { %5444 = vst.msk [vmem:[%s9000_s26 + $0xe0] sm:$0xff] %vm1001_vm14, %v5401_v9  ;;  %v6039_v21 = vpop.f32.mrb[50].mxu1 }
 0x65a   : > { %5447 = vst.msk [vmem:[%s9000_s26 + $0xf8] sm:$0xff] %vm1001_vm14, %v6039_v21  ;;  %v5404_v38 = vpop.f32.mrb[51].mxu1 }
 0x65b   : > { %5445 = vst.msk [vmem:[%s9000_s26 + $0xe8] sm:$0xff] %vm1001_vm14, %v5404_v38 }
 0x65c PF: > { %s15_s18 = sadd.s32 1, %s6241_s18  }
 0x65d   : > { %p12_p4 = scmp.ge.s32.totalorder %s15_s18, 4  }
 0x65f   :  { %14 = sbr.rel (!%p12_p4) target bundleno = 1 (0x1), region = 71 }

</bundles_post_ra>
